<compile_context>
chip_gen: v7x
topology: tpu7x:2x2x1
jax: 0.10.0
libtpu: 0.0.40
codegen_flags: <defaults>
</compile_context>

<pallas_src>
import jax
import jax.numpy as jnp
from jax import lax
from jax.experimental import pallas as pl
from jax.experimental.pallas import tpu as pltpu


def _pick_c_chunk(C):
    """Multiple of 8 dividing C if possible, else a single chunk."""
    for cand in (32, 24, 16, 8):
        if C % cand == 0:
            return cand
    return C


def _vmem_limit_bytes(C, HW, itemsize):
    c_pad = ((C + 7) // 8) * 8
    hw_pad = ((HW + 127) // 128) * 128
    block = c_pad * hw_pad * itemsize
    # x + out blocks, double-buffered, plus headroom for pooled planes, masks
    # and compiler-internal scratch; keep well under the 64 MiB of a v7x TC.
    need = 4 * block + (4 << 20)
    return int(min(max(need, 8 << 20), 40 << 20))


def _make_kernel(K, H, W, C, c_chunk):
    pad = (K - 1) // 2
    KK = K * K
    HW = H * W
    n_chunks = C // c_chunk

    def kernel(x_ref, col_ref, w_ref, b_ref, o_ref):
        # x_ref/o_ref: (C, H*W) VMEM blocks (one image, lane-dense spatial)
        # col_ref:     (1, H*W) int32 column indices (idx % W), VMEM
        # w_ref:       (2*K*K,) f32 SMEM (BN-folded conv weights, [c, kh, kw])
        # b_ref:       (1,)     f32 SMEM (BN-folded bias)

        # ---- ChannelPool: max & mean over C (chunked fori_loop) ----
        def pool_body(i, carry):
            run_max, run_sum = carry
            c0 = pl.multiple_of(i * c_chunk, c_chunk)
            xa = x_ref[pl.ds(c0, c_chunk), :]
            run_max = jnp.maximum(run_max, jnp.max(xa, axis=0, keepdims=True))
            run_sum = run_sum + jnp.sum(xa.astype(jnp.float32), axis=0,
                                        keepdims=True)
            return run_max, run_sum

        init = (jnp.full((1, HW), -jnp.inf, x_ref.dtype),
                jnp.zeros((1, HW), jnp.float32))
        run_max, run_sum = lax.fori_loop(0, n_chunks, pool_body, init,
                                         unroll=n_chunks <= 8)
        planes = (run_max.astype(jnp.float32), run_sum * (1.0 / C))

        # ---- hoisted row / column masks (7 + 7, shared by all 98 taps) ----
        idx = lax.broadcasted_iota(jnp.int32, (1, HW), 1)
        col = col_ref[...]
        row_masks = []
        col_masks = []
        for d in range(K):
            s = pad - d
            # row >= s  <=>  idx >= s*W ;  row < H+s  <=>  idx < (H+s)*W
            row_masks.append((idx >= s * W) & (idx < (H + s) * W))
            col_masks.append((col >= s) & (col < W + s))

        # ---- 7x7 conv (2->1, zero pad) + folded BN: flat roll + mask taps ----
        acc = jnp.zeros((1, HW), jnp.float32) + b_ref[0]
        for dh in range(K):
            sh = pad - dh
            for dw in range(K):
                sw = pad - dw
                mask = row_masks[dh] & col_masks[dw]
                shift = (sh * W + sw) % HW
                for p in range(2):
                    plane = planes[p]
                    rolled = plane if shift == 0 else pltpu.roll(
                        plane, shift=shift, axis=1)
                    wgt = w_ref[p * KK + dh * K + dw]          # SMEM scalar
                    acc = acc + jnp.where(mask, rolled, 0.0) * wgt

        scaled = jax.nn.sigmoid(acc)                            # (1, H*W) f32

        # ---- out = x * scaled (channel broadcast hoisted out of the loop) ----
        scaled_b = jnp.broadcast_to(scaled.astype(o_ref.dtype), (c_chunk, HW))

        def out_body(i, _):
            c0 = pl.multiple_of(i * c_chunk, c_chunk)
            o_ref[pl.ds(c0, c_chunk), :] = (
                x_ref[pl.ds(c0, c_chunk), :] * scaled_b)
            return 0

        lax.fori_loop(0, n_chunks, out_body, 0, unroll=n_chunks <= 8)

    return kernel


def spatial_attention(x_nchw, conv_w, bn_gamma, bn_beta, bn_mean, bn_var,
                      *, eps=1e-5):
    """x_nchw: (N, C, H, W). conv_w: (1, 2, K, K) (OIHW, no bias).
    bn_*: shape (1,) BatchNorm2d(1) params / running stats (inference)."""
    N, C, H, W = x_nchw.shape
    K = conv_w.shape[-1]
    assert conv_w.shape == (1, 2, K, K)
    HW = H * W

    # Fold BatchNorm (inference) into the conv weights + scalar bias.
    scale = (bn_gamma.reshape(()) /
             jnp.sqrt(bn_var.reshape(()) + eps)).astype(jnp.float32)
    w_folded = (conv_w[0].astype(jnp.float32) * scale).reshape(-1)   # (2*K*K,)
    b_folded = (bn_beta.reshape(()).astype(jnp.float32)
                - bn_mean.reshape(()).astype(jnp.float32) * scale).reshape(1)

    # Lane-dense layout: flatten the spatial dims onto the lane axis.
    x_flat = x_nchw.reshape(N, C, HW)
    col_ids = (jnp.arange(HW, dtype=jnp.int32) % W).reshape(1, HW)

    c_chunk = _pick_c_chunk(C)
    assert C % c_chunk == 0
    kernel = _make_kernel(K, H, W, C, c_chunk)

    out_flat = pl.pallas_call(
        kernel,
        out_shape=jax.ShapeDtypeStruct((N, C, HW), x_nchw.dtype),
        grid_spec=pltpu.PrefetchScalarGridSpec(
            num_scalar_prefetch=0,
            grid=(N,),
            in_specs=[
                pl.BlockSpec((None, C, HW), lambda n: (n, 0, 0)),   # x (1 image)
                pl.BlockSpec((1, HW), lambda n: (0, 0)),            # column ids
                pl.BlockSpec(memory_space=pltpu.MemorySpace.SMEM),  # conv weights
                pl.BlockSpec(memory_space=pltpu.MemorySpace.SMEM),  # folded bias
            ],
            out_specs=pl.BlockSpec((None, C, HW), lambda n: (n, 0, 0)),
        ),
        compiler_params=pltpu.CompilerParams(
            dimension_semantics=("parallel",),
            vmem_limit_bytes=_vmem_limit_bytes(C, HW, x_nchw.dtype.itemsize),
        ),
    )(x_flat, col_ids, w_folded, b_folded)
    return out_flat.reshape(N, C, H, W)


def reference(x, conv_w, bn_gamma, bn_beta, bn_mean, bn_var, eps=1e-5):
    mx = jnp.max(x, axis=1, keepdims=True)
    mean = jnp.mean(x, axis=1, keepdims=True)
    comp = jnp.concatenate([mx, mean], axis=1)                      # (N,2,H,W)
    K = conv_w.shape[-1]
    p = (K - 1) // 2
    z = lax.conv_general_dilated(
        comp, conv_w, window_strides=(1, 1), padding=((p, p), (p, p)),
        dimension_numbers=("NCHW", "OIHW", "NCHW"))
    g = bn_gamma.reshape(())
    b = bn_beta.reshape(())
    m = bn_mean.reshape(())
    v = bn_var.reshape(())
    z = g * (z - m) / jnp.sqrt(v + eps) + b
    return x * jax.nn.sigmoid(z)


if __name__ == "__main__":
    N, C, H, W = 2, 32, 16, 16
    K = 7

    key = jax.random.PRNGKey(0)
    kx, kw, kg, kb, km, kv = jax.random.split(key, 6)

    x = jax.random.normal(kx, (N, C, H, W), dtype=jnp.float32)
    conv_w = jax.random.normal(kw, (1, 2, K, K), dtype=jnp.float32) * 0.1
    bn_gamma = 1.0 + 0.1 * jax.random.normal(kg, (1,), dtype=jnp.float32)
    bn_beta = 0.1 * jax.random.normal(kb, (1,), dtype=jnp.float32)
    bn_mean = 0.1 * jax.random.normal(km, (1,), dtype=jnp.float32)
    bn_var = jnp.abs(jax.random.normal(kv, (1,), dtype=jnp.float32)) + 0.5

    out = spatial_attention(x, conv_w, bn_gamma, bn_beta, bn_mean, bn_var)
    out = jax.block_until_ready(out)

    ref = reference(x, conv_w, bn_gamma, bn_beta, bn_mean, bn_var)
    assert out.shape == (N, C, H, W)
    assert jnp.allclose(out, ref, atol=5e-5, rtol=1e-4), "mismatch vs reference"

    print("KERNEL_OK")
</pallas_src>

<mosaic_0001>
module attributes {stable_mosaic.version = 11 : i64} {
  func.func @kernel(%arg0: i32, %arg1: memref<1x32x256xf32, #tpu.memory_space<vmem>>, %arg2: memref<1x256xi32, #tpu.memory_space<vmem>>, %arg3: memref<98xf32, #tpu.memory_space<smem>>, %arg4: memref<1xf32, #tpu.memory_space<smem>>, %arg5: memref<1x32x256xf32, #tpu.memory_space<vmem>>) attributes {dimension_semantics = [#tpu.dimension_semantics<parallel>], iteration_bounds = array<i64: 2>, scalar_prefetch = 0 : i64, scratch_operands = 0 : i64, tpu.core_type = #tpu.core_type<tc>, window_params = [{transform_indices = @transform_0, window_bounds = array<i64: 1, 32, 256>}, {pipeline_mode = #tpu.pipeline_mode<synchronous>, transform_indices = @transform_1, window_bounds = array<i64: 1, 256>}, {transform_indices = @transform_2, window_bounds = array<i64: 98>}, {transform_indices = @transform_3, window_bounds = array<i64: 1>}, {transform_indices = @transform_4, window_bounds = array<i64: 1, 32, 256>}]} {
    %cst = arith.constant 0xFF800000 : f32
    %0 = vector.broadcast %cst : f32 to vector<1x256xf32>
    %cst_0 = arith.constant 0.000000e+00 : f32
    %1 = vector.broadcast %cst_0 : f32 to vector<1x256xf32>
    %c0_i32 = arith.constant 0 : i32
    %c32_i32 = arith.constant 32 : i32
    %2 = arith.muli %c0_i32, %c32_i32 : i32
    %3 = tpu.assume_multiple %2, 32 : i32
    %c0 = arith.constant 0 : index
    %4 = arith.index_cast %3 : i32 to index
    %c0_1 = arith.constant 0 : index
    %5 = vector.load %arg1[%c0, %4, %c0_1] : memref<1x32x256xf32, #tpu.memory_space<vmem>>, vector<1x32x256xf32>
    %6 = vector.shape_cast %5 : vector<1x32x256xf32> to vector<32x256xf32>
    %cst_2 = arith.constant dense<0xFF800000> : vector<256xf32>
    %7 = vector.multi_reduction <maximumf>, %6, %cst_2 [0] : vector<32x256xf32> to vector<256xf32>
    %8 = vector.shape_cast %7 : vector<256xf32> to vector<1x256xf32>
    %9 = arith.maximumf %0, %8 : vector<1x256xf32>
    %cst_3 = arith.constant dense<0.000000e+00> : vector<256xf32>
    %10 = vector.multi_reduction <add>, %6, %cst_3 [0] : vector<32x256xf32> to vector<256xf32>
    %11 = vector.shape_cast %10 : vector<256xf32> to vector<1x256xf32>
    %12 = arith.addf %1, %11 : vector<1x256xf32>
    %c1_i32 = arith.constant 1 : i32
    %cst_4 = arith.constant 3.125000e-02 : f32
    %13 = vector.broadcast %cst_4 : f32 to vector<1x256xf32>
    %14 = arith.mulf %12, %13 : vector<1x256xf32>
    %15 = tpu.iota {dimensions = array<i32: 1>} : vector<1x256xi32>
    %c0_5 = arith.constant 0 : index
    %c0_6 = arith.constant 0 : index
    %16 = vector.load %arg2[%c0_5, %c0_6] : memref<1x256xi32, #tpu.memory_space<vmem>>, vector<1x256xi32>
    %c48_i32 = arith.constant 48 : i32
    %17 = vector.broadcast %c48_i32 : i32 to vector<1x256xi32>
    %18 = arith.cmpi sge, %15, %17 : vector<1x256xi32>
    %c304_i32 = arith.constant 304 : i32
    %19 = vector.broadcast %c304_i32 : i32 to vector<1x256xi32>
    %20 = arith.cmpi slt, %15, %19 : vector<1x256xi32>
    %21 = arith.andi %18, %20 : vector<1x256xi1>
    %c3_i32 = arith.constant 3 : i32
    %22 = vector.broadcast %c3_i32 : i32 to vector<1x256xi32>
    %23 = arith.cmpi sge, %16, %22 : vector<1x256xi32>
    %c19_i32 = arith.constant 19 : i32
    %24 = vector.broadcast %c19_i32 : i32 to vector<1x256xi32>
    %25 = arith.cmpi slt, %16, %24 : vector<1x256xi32>
    %26 = arith.andi %23, %25 : vector<1x256xi1>
    %c32_i32_7 = arith.constant 32 : i32
    %27 = vector.broadcast %c32_i32_7 : i32 to vector<1x256xi32>
    %28 = arith.cmpi sge, %15, %27 : vector<1x256xi32>
    %c288_i32 = arith.constant 288 : i32
    %29 = vector.broadcast %c288_i32 : i32 to vector<1x256xi32>
    %30 = arith.cmpi slt, %15, %29 : vector<1x256xi32>
    %31 = arith.andi %28, %30 : vector<1x256xi1>
    %c2_i32 = arith.constant 2 : i32
    %32 = vector.broadcast %c2_i32 : i32 to vector<1x256xi32>
    %33 = arith.cmpi sge, %16, %32 : vector<1x256xi32>
    %c18_i32 = arith.constant 18 : i32
    %34 = vector.broadcast %c18_i32 : i32 to vector<1x256xi32>
    %35 = arith.cmpi slt, %16, %34 : vector<1x256xi32>
    %36 = arith.andi %33, %35 : vector<1x256xi1>
    %c16_i32 = arith.constant 16 : i32
    %37 = vector.broadcast %c16_i32 : i32 to vector<1x256xi32>
    %38 = arith.cmpi sge, %15, %37 : vector<1x256xi32>
    %c272_i32 = arith.constant 272 : i32
    %39 = vector.broadcast %c272_i32 : i32 to vector<1x256xi32>
    %40 = arith.cmpi slt, %15, %39 : vector<1x256xi32>
    %41 = arith.andi %38, %40 : vector<1x256xi1>
    %c1_i32_8 = arith.constant 1 : i32
    %42 = vector.broadcast %c1_i32_8 : i32 to vector<1x256xi32>
    %43 = arith.cmpi sge, %16, %42 : vector<1x256xi32>
    %c17_i32 = arith.constant 17 : i32
    %44 = vector.broadcast %c17_i32 : i32 to vector<1x256xi32>
    %45 = arith.cmpi slt, %16, %44 : vector<1x256xi32>
    %46 = arith.andi %43, %45 : vector<1x256xi1>
    %c0_i32_9 = arith.constant 0 : i32
    %47 = vector.broadcast %c0_i32_9 : i32 to vector<1x256xi32>
    %48 = arith.cmpi sge, %15, %47 : vector<1x256xi32>
    %c256_i32 = arith.constant 256 : i32
    %49 = vector.broadcast %c256_i32 : i32 to vector<1x256xi32>
    %50 = arith.cmpi slt, %15, %49 : vector<1x256xi32>
    %51 = arith.andi %48, %50 : vector<1x256xi1>
    %c0_i32_10 = arith.constant 0 : i32
    %52 = vector.broadcast %c0_i32_10 : i32 to vector<1x256xi32>
    %53 = arith.cmpi sge, %16, %52 : vector<1x256xi32>
    %c16_i32_11 = arith.constant 16 : i32
    %54 = vector.broadcast %c16_i32_11 : i32 to vector<1x256xi32>
    %55 = arith.cmpi slt, %16, %54 : vector<1x256xi32>
    %56 = arith.andi %53, %55 : vector<1x256xi1>
    %c-16_i32 = arith.constant -16 : i32
    %57 = vector.broadcast %c-16_i32 : i32 to vector<1x256xi32>
    %58 = arith.cmpi sge, %15, %57 : vector<1x256xi32>
    %c240_i32 = arith.constant 240 : i32
    %59 = vector.broadcast %c240_i32 : i32 to vector<1x256xi32>
    %60 = arith.cmpi slt, %15, %59 : vector<1x256xi32>
    %61 = arith.andi %58, %60 : vector<1x256xi1>
    %c-1_i32 = arith.constant -1 : i32
    %62 = vector.broadcast %c-1_i32 : i32 to vector<1x256xi32>
    %63 = arith.cmpi sge, %16, %62 : vector<1x256xi32>
    %c15_i32 = arith.constant 15 : i32
    %64 = vector.broadcast %c15_i32 : i32 to vector<1x256xi32>
    %65 = arith.cmpi slt, %16, %64 : vector<1x256xi32>
    %66 = arith.andi %63, %65 : vector<1x256xi1>
    %c-32_i32 = arith.constant -32 : i32
    %67 = vector.broadcast %c-32_i32 : i32 to vector<1x256xi32>
    %68 = arith.cmpi sge, %15, %67 : vector<1x256xi32>
    %c224_i32 = arith.constant 224 : i32
    %69 = vector.broadcast %c224_i32 : i32 to vector<1x256xi32>
    %70 = arith.cmpi slt, %15, %69 : vector<1x256xi32>
    %71 = arith.andi %68, %70 : vector<1x256xi1>
    %c-2_i32 = arith.constant -2 : i32
    %72 = vector.broadcast %c-2_i32 : i32 to vector<1x256xi32>
    %73 = arith.cmpi sge, %16, %72 : vector<1x256xi32>
    %c14_i32 = arith.constant 14 : i32
    %74 = vector.broadcast %c14_i32 : i32 to vector<1x256xi32>
    %75 = arith.cmpi slt, %16, %74 : vector<1x256xi32>
    %76 = arith.andi %73, %75 : vector<1x256xi1>
    %c-48_i32 = arith.constant -48 : i32
    %77 = vector.broadcast %c-48_i32 : i32 to vector<1x256xi32>
    %78 = arith.cmpi sge, %15, %77 : vector<1x256xi32>
    %c208_i32 = arith.constant 208 : i32
    %79 = vector.broadcast %c208_i32 : i32 to vector<1x256xi32>
    %80 = arith.cmpi slt, %15, %79 : vector<1x256xi32>
    %81 = arith.andi %78, %80 : vector<1x256xi1>
    %c-3_i32 = arith.constant -3 : i32
    %82 = vector.broadcast %c-3_i32 : i32 to vector<1x256xi32>
    %83 = arith.cmpi sge, %16, %82 : vector<1x256xi32>
    %c13_i32 = arith.constant 13 : i32
    %84 = vector.broadcast %c13_i32 : i32 to vector<1x256xi32>
    %85 = arith.cmpi slt, %16, %84 : vector<1x256xi32>
    %86 = arith.andi %83, %85 : vector<1x256xi1>
    %cst_12 = arith.constant 0.000000e+00 : f32
    %87 = vector.broadcast %cst_12 : f32 to vector<1x256xf32>
    %c0_13 = arith.constant 0 : index
    %88 = memref.load %arg4[%c0_13] : memref<1xf32, #tpu.memory_space<smem>>
    %89 = vector.broadcast %88 : f32 to vector<1x256xf32>
    %90 = arith.addf %87, %89 : vector<1x256xf32>
    %91 = arith.andi %21, %26 : vector<1x256xi1>
    %c51_i32 = arith.constant 51 : i32
    %92 = tpu.dynamic_rotate %9 by %c51_i32 dim 1 : vector<1x256xf32>, i32 -> vector<1x256xf32>
    %c0_14 = arith.constant 0 : index
    %93 = memref.load %arg3[%c0_14] : memref<98xf32, #tpu.memory_space<smem>>
    %cst_15 = arith.constant 0.000000e+00 : f32
    %94 = vector.broadcast %cst_15 : f32 to vector<1x256xf32>
    %95 = arith.select %91, %92, %94 : vector<1x256xi1>, vector<1x256xf32>
    %96 = vector.broadcast %93 : f32 to vector<1x256xf32>
    %97 = arith.mulf %95, %96 : vector<1x256xf32>
    %98 = arith.addf %90, %97 : vector<1x256xf32>
    %c51_i32_16 = arith.constant 51 : i32
    %99 = tpu.dynamic_rotate %14 by %c51_i32_16 dim 1 : vector<1x256xf32>, i32 -> vector<1x256xf32>
    %c49 = arith.constant 49 : index
    %100 = memref.load %arg3[%c49] : memref<98xf32, #tpu.memory_space<smem>>
    %cst_17 = arith.constant 0.000000e+00 : f32
    %101 = vector.broadcast %cst_17 : f32 to vector<1x256xf32>
    %102 = arith.select %91, %99, %101 : vector<1x256xi1>, vector<1x256xf32>
    %103 = vector.broadcast %100 : f32 to vector<1x256xf32>
    %104 = arith.mulf %102, %103 : vector<1x256xf32>
    %105 = arith.addf %98, %104 : vector<1x256xf32>
    %106 = arith.andi %21, %36 : vector<1x256xi1>
    %c50_i32 = arith.constant 50 : i32
    %107 = tpu.dynamic_rotate %9 by %c50_i32 dim 1 : vector<1x256xf32>, i32 -> vector<1x256xf32>
    %c1 = arith.constant 1 : index
    %108 = memref.load %arg3[%c1] : memref<98xf32, #tpu.memory_space<smem>>
    %cst_18 = arith.constant 0.000000e+00 : f32
    %109 = vector.broadcast %cst_18 : f32 to vector<1x256xf32>
    %110 = arith.select %106, %107, %109 : vector<1x256xi1>, vector<1x256xf32>
    %111 = vector.broadcast %108 : f32 to vector<1x256xf32>
    %112 = arith.mulf %110, %111 : vector<1x256xf32>
    %113 = arith.addf %105, %112 : vector<1x256xf32>
    %c50_i32_19 = arith.constant 50 : i32
    %114 = tpu.dynamic_rotate %14 by %c50_i32_19 dim 1 : vector<1x256xf32>, i32 -> vector<1x256xf32>
    %c50 = arith.constant 50 : index
    %115 = memref.load %arg3[%c50] : memref<98xf32, #tpu.memory_space<smem>>
    %cst_20 = arith.constant 0.000000e+00 : f32
    %116 = vector.broadcast %cst_20 : f32 to vector<1x256xf32>
    %117 = arith.select %106, %114, %116 : vector<1x256xi1>, vector<1x256xf32>
    %118 = vector.broadcast %115 : f32 to vector<1x256xf32>
    %119 = arith.mulf %117, %118 : vector<1x256xf32>
    %120 = arith.addf %113, %119 : vector<1x256xf32>
    %121 = arith.andi %21, %46 : vector<1x256xi1>
    %c49_i32 = arith.constant 49 : i32
    %122 = tpu.dynamic_rotate %9 by %c49_i32 dim 1 : vector<1x256xf32>, i32 -> vector<1x256xf32>
    %c2 = arith.constant 2 : index
    %123 = memref.load %arg3[%c2] : memref<98xf32, #tpu.memory_space<smem>>
    %cst_21 = arith.constant 0.000000e+00 : f32
    %124 = vector.broadcast %cst_21 : f32 to vector<1x256xf32>
    %125 = arith.select %121, %122, %124 : vector<1x256xi1>, vector<1x256xf32>
    %126 = vector.broadcast %123 : f32 to vector<1x256xf32>
    %127 = arith.mulf %125, %126 : vector<1x256xf32>
    %128 = arith.addf %120, %127 : vector<1x256xf32>
    %c49_i32_22 = arith.constant 49 : i32
    %129 = tpu.dynamic_rotate %14 by %c49_i32_22 dim 1 : vector<1x256xf32>, i32 -> vector<1x256xf32>
    %c51 = arith.constant 51 : index
    %130 = memref.load %arg3[%c51] : memref<98xf32, #tpu.memory_space<smem>>
    %cst_23 = arith.constant 0.000000e+00 : f32
    %131 = vector.broadcast %cst_23 : f32 to vector<1x256xf32>
    %132 = arith.select %121, %129, %131 : vector<1x256xi1>, vector<1x256xf32>
    %133 = vector.broadcast %130 : f32 to vector<1x256xf32>
    %134 = arith.mulf %132, %133 : vector<1x256xf32>
    %135 = arith.addf %128, %134 : vector<1x256xf32>
    %136 = arith.andi %21, %56 : vector<1x256xi1>
    %c48_i32_24 = arith.constant 48 : i32
    %137 = tpu.dynamic_rotate %9 by %c48_i32_24 dim 1 : vector<1x256xf32>, i32 -> vector<1x256xf32>
    %c3 = arith.constant 3 : index
    %138 = memref.load %arg3[%c3] : memref<98xf32, #tpu.memory_space<smem>>
    %cst_25 = arith.constant 0.000000e+00 : f32
    %139 = vector.broadcast %cst_25 : f32 to vector<1x256xf32>
    %140 = arith.select %136, %137, %139 : vector<1x256xi1>, vector<1x256xf32>
    %141 = vector.broadcast %138 : f32 to vector<1x256xf32>
    %142 = arith.mulf %140, %141 : vector<1x256xf32>
    %143 = arith.addf %135, %142 : vector<1x256xf32>
    %c48_i32_26 = arith.constant 48 : i32
    %144 = tpu.dynamic_rotate %14 by %c48_i32_26 dim 1 : vector<1x256xf32>, i32 -> vector<1x256xf32>
    %c52 = arith.constant 52 : index
    %145 = memref.load %arg3[%c52] : memref<98xf32, #tpu.memory_space<smem>>
    %cst_27 = arith.constant 0.000000e+00 : f32
    %146 = vector.broadcast %cst_27 : f32 to vector<1x256xf32>
    %147 = arith.select %136, %144, %146 : vector<1x256xi1>, vector<1x256xf32>
    %148 = vector.broadcast %145 : f32 to vector<1x256xf32>
    %149 = arith.mulf %147, %148 : vector<1x256xf32>
    %150 = arith.addf %143, %149 : vector<1x256xf32>
    %151 = arith.andi %21, %66 : vector<1x256xi1>
    %c47_i32 = arith.constant 47 : i32
    %152 = tpu.dynamic_rotate %9 by %c47_i32 dim 1 : vector<1x256xf32>, i32 -> vector<1x256xf32>
    %c4 = arith.constant 4 : index
    %153 = memref.load %arg3[%c4] : memref<98xf32, #tpu.memory_space<smem>>
    %cst_28 = arith.constant 0.000000e+00 : f32
    %154 = vector.broadcast %cst_28 : f32 to vector<1x256xf32>
    %155 = arith.select %151, %152, %154 : vector<1x256xi1>, vector<1x256xf32>
    %156 = vector.broadcast %153 : f32 to vector<1x256xf32>
    %157 = arith.mulf %155, %156 : vector<1x256xf32>
    %158 = arith.addf %150, %157 : vector<1x256xf32>
    %c47_i32_29 = arith.constant 47 : i32
    %159 = tpu.dynamic_rotate %14 by %c47_i32_29 dim 1 : vector<1x256xf32>, i32 -> vector<1x256xf32>
    %c53 = arith.constant 53 : index
    %160 = memref.load %arg3[%c53] : memref<98xf32, #tpu.memory_space<smem>>
    %cst_30 = arith.constant 0.000000e+00 : f32
    %161 = vector.broadcast %cst_30 : f32 to vector<1x256xf32>
    %162 = arith.select %151, %159, %161 : vector<1x256xi1>, vector<1x256xf32>
    %163 = vector.broadcast %160 : f32 to vector<1x256xf32>
    %164 = arith.mulf %162, %163 : vector<1x256xf32>
    %165 = arith.addf %158, %164 : vector<1x256xf32>
    %166 = arith.andi %21, %76 : vector<1x256xi1>
    %c46_i32 = arith.constant 46 : i32
    %167 = tpu.dynamic_rotate %9 by %c46_i32 dim 1 : vector<1x256xf32>, i32 -> vector<1x256xf32>
    %c5 = arith.constant 5 : index
    %168 = memref.load %arg3[%c5] : memref<98xf32, #tpu.memory_space<smem>>
    %cst_31 = arith.constant 0.000000e+00 : f32
    %169 = vector.broadcast %cst_31 : f32 to vector<1x256xf32>
    %170 = arith.select %166, %167, %169 : vector<1x256xi1>, vector<1x256xf32>
    %171 = vector.broadcast %168 : f32 to vector<1x256xf32>
    %172 = arith.mulf %170, %171 : vector<1x256xf32>
    %173 = arith.addf %165, %172 : vector<1x256xf32>
    %c46_i32_32 = arith.constant 46 : i32
    %174 = tpu.dynamic_rotate %14 by %c46_i32_32 dim 1 : vector<1x256xf32>, i32 -> vector<1x256xf32>
    %c54 = arith.constant 54 : index
    %175 = memref.load %arg3[%c54] : memref<98xf32, #tpu.memory_space<smem>>
    %cst_33 = arith.constant 0.000000e+00 : f32
    %176 = vector.broadcast %cst_33 : f32 to vector<1x256xf32>
    %177 = arith.select %166, %174, %176 : vector<1x256xi1>, vector<1x256xf32>
    %178 = vector.broadcast %175 : f32 to vector<1x256xf32>
    %179 = arith.mulf %177, %178 : vector<1x256xf32>
    %180 = arith.addf %173, %179 : vector<1x256xf32>
    %181 = arith.andi %21, %86 : vector<1x256xi1>
    %c45_i32 = arith.constant 45 : i32
    %182 = tpu.dynamic_rotate %9 by %c45_i32 dim 1 : vector<1x256xf32>, i32 -> vector<1x256xf32>
    %c6 = arith.constant 6 : index
    %183 = memref.load %arg3[%c6] : memref<98xf32, #tpu.memory_space<smem>>
    %cst_34 = arith.constant 0.000000e+00 : f32
    %184 = vector.broadcast %cst_34 : f32 to vector<1x256xf32>
    %185 = arith.select %181, %182, %184 : vector<1x256xi1>, vector<1x256xf32>
    %186 = vector.broadcast %183 : f32 to vector<1x256xf32>
    %187 = arith.mulf %185, %186 : vector<1x256xf32>
    %188 = arith.addf %180, %187 : vector<1x256xf32>
    %c45_i32_35 = arith.constant 45 : i32
    %189 = tpu.dynamic_rotate %14 by %c45_i32_35 dim 1 : vector<1x256xf32>, i32 -> vector<1x256xf32>
    %c55 = arith.constant 55 : index
    %190 = memref.load %arg3[%c55] : memref<98xf32, #tpu.memory_space<smem>>
    %cst_36 = arith.constant 0.000000e+00 : f32
    %191 = vector.broadcast %cst_36 : f32 to vector<1x256xf32>
    %192 = arith.select %181, %189, %191 : vector<1x256xi1>, vector<1x256xf32>
    %193 = vector.broadcast %190 : f32 to vector<1x256xf32>
    %194 = arith.mulf %192, %193 : vector<1x256xf32>
    %195 = arith.addf %188, %194 : vector<1x256xf32>
    %196 = arith.andi %31, %26 : vector<1x256xi1>
    %c35_i32 = arith.constant 35 : i32
    %197 = tpu.dynamic_rotate %9 by %c35_i32 dim 1 : vector<1x256xf32>, i32 -> vector<1x256xf32>
    %c7 = arith.constant 7 : index
    %198 = memref.load %arg3[%c7] : memref<98xf32, #tpu.memory_space<smem>>
    %cst_37 = arith.constant 0.000000e+00 : f32
    %199 = vector.broadcast %cst_37 : f32 to vector<1x256xf32>
    %200 = arith.select %196, %197, %199 : vector<1x256xi1>, vector<1x256xf32>
    %201 = vector.broadcast %198 : f32 to vector<1x256xf32>
    %202 = arith.mulf %200, %201 : vector<1x256xf32>
    %203 = arith.addf %195, %202 : vector<1x256xf32>
    %c35_i32_38 = arith.constant 35 : i32
    %204 = tpu.dynamic_rotate %14 by %c35_i32_38 dim 1 : vector<1x256xf32>, i32 -> vector<1x256xf32>
    %c56 = arith.constant 56 : index
    %205 = memref.load %arg3[%c56] : memref<98xf32, #tpu.memory_space<smem>>
    %cst_39 = arith.constant 0.000000e+00 : f32
    %206 = vector.broadcast %cst_39 : f32 to vector<1x256xf32>
    %207 = arith.select %196, %204, %206 : vector<1x256xi1>, vector<1x256xf32>
    %208 = vector.broadcast %205 : f32 to vector<1x256xf32>
    %209 = arith.mulf %207, %208 : vector<1x256xf32>
    %210 = arith.addf %203, %209 : vector<1x256xf32>
    %211 = arith.andi %31, %36 : vector<1x256xi1>
    %c34_i32 = arith.constant 34 : i32
    %212 = tpu.dynamic_rotate %9 by %c34_i32 dim 1 : vector<1x256xf32>, i32 -> vector<1x256xf32>
    %c8 = arith.constant 8 : index
    %213 = memref.load %arg3[%c8] : memref<98xf32, #tpu.memory_space<smem>>
    %cst_40 = arith.constant 0.000000e+00 : f32
    %214 = vector.broadcast %cst_40 : f32 to vector<1x256xf32>
    %215 = arith.select %211, %212, %214 : vector<1x256xi1>, vector<1x256xf32>
    %216 = vector.broadcast %213 : f32 to vector<1x256xf32>
    %217 = arith.mulf %215, %216 : vector<1x256xf32>
    %218 = arith.addf %210, %217 : vector<1x256xf32>
    %c34_i32_41 = arith.constant 34 : i32
    %219 = tpu.dynamic_rotate %14 by %c34_i32_41 dim 1 : vector<1x256xf32>, i32 -> vector<1x256xf32>
    %c57 = arith.constant 57 : index
    %220 = memref.load %arg3[%c57] : memref<98xf32, #tpu.memory_space<smem>>
    %cst_42 = arith.constant 0.000000e+00 : f32
    %221 = vector.broadcast %cst_42 : f32 to vector<1x256xf32>
    %222 = arith.select %211, %219, %221 : vector<1x256xi1>, vector<1x256xf32>
    %223 = vector.broadcast %220 : f32 to vector<1x256xf32>
    %224 = arith.mulf %222, %223 : vector<1x256xf32>
    %225 = arith.addf %218, %224 : vector<1x256xf32>
    %226 = arith.andi %31, %46 : vector<1x256xi1>
    %c33_i32 = arith.constant 33 : i32
    %227 = tpu.dynamic_rotate %9 by %c33_i32 dim 1 : vector<1x256xf32>, i32 -> vector<1x256xf32>
    %c9 = arith.constant 9 : index
    %228 = memref.load %arg3[%c9] : memref<98xf32, #tpu.memory_space<smem>>
    %cst_43 = arith.constant 0.000000e+00 : f32
    %229 = vector.broadcast %cst_43 : f32 to vector<1x256xf32>
    %230 = arith.select %226, %227, %229 : vector<1x256xi1>, vector<1x256xf32>
    %231 = vector.broadcast %228 : f32 to vector<1x256xf32>
    %232 = arith.mulf %230, %231 : vector<1x256xf32>
    %233 = arith.addf %225, %232 : vector<1x256xf32>
    %c33_i32_44 = arith.constant 33 : i32
    %234 = tpu.dynamic_rotate %14 by %c33_i32_44 dim 1 : vector<1x256xf32>, i32 -> vector<1x256xf32>
    %c58 = arith.constant 58 : index
    %235 = memref.load %arg3[%c58] : memref<98xf32, #tpu.memory_space<smem>>
    %cst_45 = arith.constant 0.000000e+00 : f32
    %236 = vector.broadcast %cst_45 : f32 to vector<1x256xf32>
    %237 = arith.select %226, %234, %236 : vector<1x256xi1>, vector<1x256xf32>
    %238 = vector.broadcast %235 : f32 to vector<1x256xf32>
    %239 = arith.mulf %237, %238 : vector<1x256xf32>
    %240 = arith.addf %233, %239 : vector<1x256xf32>
    %241 = arith.andi %31, %56 : vector<1x256xi1>
    %c32_i32_46 = arith.constant 32 : i32
    %242 = tpu.dynamic_rotate %9 by %c32_i32_46 dim 1 : vector<1x256xf32>, i32 -> vector<1x256xf32>
    %c10 = arith.constant 10 : index
    %243 = memref.load %arg3[%c10] : memref<98xf32, #tpu.memory_space<smem>>
    %cst_47 = arith.constant 0.000000e+00 : f32
    %244 = vector.broadcast %cst_47 : f32 to vector<1x256xf32>
    %245 = arith.select %241, %242, %244 : vector<1x256xi1>, vector<1x256xf32>
    %246 = vector.broadcast %243 : f32 to vector<1x256xf32>
    %247 = arith.mulf %245, %246 : vector<1x256xf32>
    %248 = arith.addf %240, %247 : vector<1x256xf32>
    %c32_i32_48 = arith.constant 32 : i32
    %249 = tpu.dynamic_rotate %14 by %c32_i32_48 dim 1 : vector<1x256xf32>, i32 -> vector<1x256xf32>
    %c59 = arith.constant 59 : index
    %250 = memref.load %arg3[%c59] : memref<98xf32, #tpu.memory_space<smem>>
    %cst_49 = arith.constant 0.000000e+00 : f32
    %251 = vector.broadcast %cst_49 : f32 to vector<1x256xf32>
    %252 = arith.select %241, %249, %251 : vector<1x256xi1>, vector<1x256xf32>
    %253 = vector.broadcast %250 : f32 to vector<1x256xf32>
    %254 = arith.mulf %252, %253 : vector<1x256xf32>
    %255 = arith.addf %248, %254 : vector<1x256xf32>
    %256 = arith.andi %31, %66 : vector<1x256xi1>
    %c31_i32 = arith.constant 31 : i32
    %257 = tpu.dynamic_rotate %9 by %c31_i32 dim 1 : vector<1x256xf32>, i32 -> vector<1x256xf32>
    %c11 = arith.constant 11 : index
    %258 = memref.load %arg3[%c11] : memref<98xf32, #tpu.memory_space<smem>>
    %cst_50 = arith.constant 0.000000e+00 : f32
    %259 = vector.broadcast %cst_50 : f32 to vector<1x256xf32>
    %260 = arith.select %256, %257, %259 : vector<1x256xi1>, vector<1x256xf32>
    %261 = vector.broadcast %258 : f32 to vector<1x256xf32>
    %262 = arith.mulf %260, %261 : vector<1x256xf32>
    %263 = arith.addf %255, %262 : vector<1x256xf32>
    %c31_i32_51 = arith.constant 31 : i32
    %264 = tpu.dynamic_rotate %14 by %c31_i32_51 dim 1 : vector<1x256xf32>, i32 -> vector<1x256xf32>
    %c60 = arith.constant 60 : index
    %265 = memref.load %arg3[%c60] : memref<98xf32, #tpu.memory_space<smem>>
    %cst_52 = arith.constant 0.000000e+00 : f32
    %266 = vector.broadcast %cst_52 : f32 to vector<1x256xf32>
    %267 = arith.select %256, %264, %266 : vector<1x256xi1>, vector<1x256xf32>
    %268 = vector.broadcast %265 : f32 to vector<1x256xf32>
    %269 = arith.mulf %267, %268 : vector<1x256xf32>
    %270 = arith.addf %263, %269 : vector<1x256xf32>
    %271 = arith.andi %31, %76 : vector<1x256xi1>
    %c30_i32 = arith.constant 30 : i32
    %272 = tpu.dynamic_rotate %9 by %c30_i32 dim 1 : vector<1x256xf32>, i32 -> vector<1x256xf32>
    %c12 = arith.constant 12 : index
    %273 = memref.load %arg3[%c12] : memref<98xf32, #tpu.memory_space<smem>>
    %cst_53 = arith.constant 0.000000e+00 : f32
    %274 = vector.broadcast %cst_53 : f32 to vector<1x256xf32>
    %275 = arith.select %271, %272, %274 : vector<1x256xi1>, vector<1x256xf32>
    %276 = vector.broadcast %273 : f32 to vector<1x256xf32>
    %277 = arith.mulf %275, %276 : vector<1x256xf32>
    %278 = arith.addf %270, %277 : vector<1x256xf32>
    %c30_i32_54 = arith.constant 30 : i32
    %279 = tpu.dynamic_rotate %14 by %c30_i32_54 dim 1 : vector<1x256xf32>, i32 -> vector<1x256xf32>
    %c61 = arith.constant 61 : index
    %280 = memref.load %arg3[%c61] : memref<98xf32, #tpu.memory_space<smem>>
    %cst_55 = arith.constant 0.000000e+00 : f32
    %281 = vector.broadcast %cst_55 : f32 to vector<1x256xf32>
    %282 = arith.select %271, %279, %281 : vector<1x256xi1>, vector<1x256xf32>
    %283 = vector.broadcast %280 : f32 to vector<1x256xf32>
    %284 = arith.mulf %282, %283 : vector<1x256xf32>
    %285 = arith.addf %278, %284 : vector<1x256xf32>
    %286 = arith.andi %31, %86 : vector<1x256xi1>
    %c29_i32 = arith.constant 29 : i32
    %287 = tpu.dynamic_rotate %9 by %c29_i32 dim 1 : vector<1x256xf32>, i32 -> vector<1x256xf32>
    %c13 = arith.constant 13 : index
    %288 = memref.load %arg3[%c13] : memref<98xf32, #tpu.memory_space<smem>>
    %cst_56 = arith.constant 0.000000e+00 : f32
    %289 = vector.broadcast %cst_56 : f32 to vector<1x256xf32>
    %290 = arith.select %286, %287, %289 : vector<1x256xi1>, vector<1x256xf32>
    %291 = vector.broadcast %288 : f32 to vector<1x256xf32>
    %292 = arith.mulf %290, %291 : vector<1x256xf32>
    %293 = arith.addf %285, %292 : vector<1x256xf32>
    %c29_i32_57 = arith.constant 29 : i32
    %294 = tpu.dynamic_rotate %14 by %c29_i32_57 dim 1 : vector<1x256xf32>, i32 -> vector<1x256xf32>
    %c62 = arith.constant 62 : index
    %295 = memref.load %arg3[%c62] : memref<98xf32, #tpu.memory_space<smem>>
    %cst_58 = arith.constant 0.000000e+00 : f32
    %296 = vector.broadcast %cst_58 : f32 to vector<1x256xf32>
    %297 = arith.select %286, %294, %296 : vector<1x256xi1>, vector<1x256xf32>
    %298 = vector.broadcast %295 : f32 to vector<1x256xf32>
    %299 = arith.mulf %297, %298 : vector<1x256xf32>
    %300 = arith.addf %293, %299 : vector<1x256xf32>
    %301 = arith.andi %41, %26 : vector<1x256xi1>
    %c19_i32_59 = arith.constant 19 : i32
    %302 = tpu.dynamic_rotate %9 by %c19_i32_59 dim 1 : vector<1x256xf32>, i32 -> vector<1x256xf32>
    %c14 = arith.constant 14 : index
    %303 = memref.load %arg3[%c14] : memref<98xf32, #tpu.memory_space<smem>>
    %cst_60 = arith.constant 0.000000e+00 : f32
    %304 = vector.broadcast %cst_60 : f32 to vector<1x256xf32>
    %305 = arith.select %301, %302, %304 : vector<1x256xi1>, vector<1x256xf32>
    %306 = vector.broadcast %303 : f32 to vector<1x256xf32>
    %307 = arith.mulf %305, %306 : vector<1x256xf32>
    %308 = arith.addf %300, %307 : vector<1x256xf32>
    %c19_i32_61 = arith.constant 19 : i32
    %309 = tpu.dynamic_rotate %14 by %c19_i32_61 dim 1 : vector<1x256xf32>, i32 -> vector<1x256xf32>
    %c63 = arith.constant 63 : index
    %310 = memref.load %arg3[%c63] : memref<98xf32, #tpu.memory_space<smem>>
    %cst_62 = arith.constant 0.000000e+00 : f32
    %311 = vector.broadcast %cst_62 : f32 to vector<1x256xf32>
    %312 = arith.select %301, %309, %311 : vector<1x256xi1>, vector<1x256xf32>
    %313 = vector.broadcast %310 : f32 to vector<1x256xf32>
    %314 = arith.mulf %312, %313 : vector<1x256xf32>
    %315 = arith.addf %308, %314 : vector<1x256xf32>
    %316 = arith.andi %41, %36 : vector<1x256xi1>
    %c18_i32_63 = arith.constant 18 : i32
    %317 = tpu.dynamic_rotate %9 by %c18_i32_63 dim 1 : vector<1x256xf32>, i32 -> vector<1x256xf32>
    %c15 = arith.constant 15 : index
    %318 = memref.load %arg3[%c15] : memref<98xf32, #tpu.memory_space<smem>>
    %cst_64 = arith.constant 0.000000e+00 : f32
    %319 = vector.broadcast %cst_64 : f32 to vector<1x256xf32>
    %320 = arith.select %316, %317, %319 : vector<1x256xi1>, vector<1x256xf32>
    %321 = vector.broadcast %318 : f32 to vector<1x256xf32>
    %322 = arith.mulf %320, %321 : vector<1x256xf32>
    %323 = arith.addf %315, %322 : vector<1x256xf32>
    %c18_i32_65 = arith.constant 18 : i32
    %324 = tpu.dynamic_rotate %14 by %c18_i32_65 dim 1 : vector<1x256xf32>, i32 -> vector<1x256xf32>
    %c64 = arith.constant 64 : index
    %325 = memref.load %arg3[%c64] : memref<98xf32, #tpu.memory_space<smem>>
    %cst_66 = arith.constant 0.000000e+00 : f32
    %326 = vector.broadcast %cst_66 : f32 to vector<1x256xf32>
    %327 = arith.select %316, %324, %326 : vector<1x256xi1>, vector<1x256xf32>
    %328 = vector.broadcast %325 : f32 to vector<1x256xf32>
    %329 = arith.mulf %327, %328 : vector<1x256xf32>
    %330 = arith.addf %323, %329 : vector<1x256xf32>
    %331 = arith.andi %41, %46 : vector<1x256xi1>
    %c17_i32_67 = arith.constant 17 : i32
    %332 = tpu.dynamic_rotate %9 by %c17_i32_67 dim 1 : vector<1x256xf32>, i32 -> vector<1x256xf32>
    %c16 = arith.constant 16 : index
    %333 = memref.load %arg3[%c16] : memref<98xf32, #tpu.memory_space<smem>>
    %cst_68 = arith.constant 0.000000e+00 : f32
    %334 = vector.broadcast %cst_68 : f32 to vector<1x256xf32>
    %335 = arith.select %331, %332, %334 : vector<1x256xi1>, vector<1x256xf32>
    %336 = vector.broadcast %333 : f32 to vector<1x256xf32>
    %337 = arith.mulf %335, %336 : vector<1x256xf32>
    %338 = arith.addf %330, %337 : vector<1x256xf32>
    %c17_i32_69 = arith.constant 17 : i32
    %339 = tpu.dynamic_rotate %14 by %c17_i32_69 dim 1 : vector<1x256xf32>, i32 -> vector<1x256xf32>
    %c65 = arith.constant 65 : index
    %340 = memref.load %arg3[%c65] : memref<98xf32, #tpu.memory_space<smem>>
    %cst_70 = arith.constant 0.000000e+00 : f32
    %341 = vector.broadcast %cst_70 : f32 to vector<1x256xf32>
    %342 = arith.select %331, %339, %341 : vector<1x256xi1>, vector<1x256xf32>
    %343 = vector.broadcast %340 : f32 to vector<1x256xf32>
    %344 = arith.mulf %342, %343 : vector<1x256xf32>
    %345 = arith.addf %338, %344 : vector<1x256xf32>
    %346 = arith.andi %41, %56 : vector<1x256xi1>
    %c16_i32_71 = arith.constant 16 : i32
    %347 = tpu.dynamic_rotate %9 by %c16_i32_71 dim 1 : vector<1x256xf32>, i32 -> vector<1x256xf32>
    %c17 = arith.constant 17 : index
    %348 = memref.load %arg3[%c17] : memref<98xf32, #tpu.memory_space<smem>>
    %cst_72 = arith.constant 0.000000e+00 : f32
    %349 = vector.broadcast %cst_72 : f32 to vector<1x256xf32>
    %350 = arith.select %346, %347, %349 : vector<1x256xi1>, vector<1x256xf32>
    %351 = vector.broadcast %348 : f32 to vector<1x256xf32>
    %352 = arith.mulf %350, %351 : vector<1x256xf32>
    %353 = arith.addf %345, %352 : vector<1x256xf32>
    %c16_i32_73 = arith.constant 16 : i32
    %354 = tpu.dynamic_rotate %14 by %c16_i32_73 dim 1 : vector<1x256xf32>, i32 -> vector<1x256xf32>
    %c66 = arith.constant 66 : index
    %355 = memref.load %arg3[%c66] : memref<98xf32, #tpu.memory_space<smem>>
    %cst_74 = arith.constant 0.000000e+00 : f32
    %356 = vector.broadcast %cst_74 : f32 to vector<1x256xf32>
    %357 = arith.select %346, %354, %356 : vector<1x256xi1>, vector<1x256xf32>
    %358 = vector.broadcast %355 : f32 to vector<1x256xf32>
    %359 = arith.mulf %357, %358 : vector<1x256xf32>
    %360 = arith.addf %353, %359 : vector<1x256xf32>
    %361 = arith.andi %41, %66 : vector<1x256xi1>
    %c15_i32_75 = arith.constant 15 : i32
    %362 = tpu.dynamic_rotate %9 by %c15_i32_75 dim 1 : vector<1x256xf32>, i32 -> vector<1x256xf32>
    %c18 = arith.constant 18 : index
    %363 = memref.load %arg3[%c18] : memref<98xf32, #tpu.memory_space<smem>>
    %cst_76 = arith.constant 0.000000e+00 : f32
    %364 = vector.broadcast %cst_76 : f32 to vector<1x256xf32>
    %365 = arith.select %361, %362, %364 : vector<1x256xi1>, vector<1x256xf32>
    %366 = vector.broadcast %363 : f32 to vector<1x256xf32>
    %367 = arith.mulf %365, %366 : vector<1x256xf32>
    %368 = arith.addf %360, %367 : vector<1x256xf32>
    %c15_i32_77 = arith.constant 15 : i32
    %369 = tpu.dynamic_rotate %14 by %c15_i32_77 dim 1 : vector<1x256xf32>, i32 -> vector<1x256xf32>
    %c67 = arith.constant 67 : index
    %370 = memref.load %arg3[%c67] : memref<98xf32, #tpu.memory_space<smem>>
    %cst_78 = arith.constant 0.000000e+00 : f32
    %371 = vector.broadcast %cst_78 : f32 to vector<1x256xf32>
    %372 = arith.select %361, %369, %371 : vector<1x256xi1>, vector<1x256xf32>
    %373 = vector.broadcast %370 : f32 to vector<1x256xf32>
    %374 = arith.mulf %372, %373 : vector<1x256xf32>
    %375 = arith.addf %368, %374 : vector<1x256xf32>
    %376 = arith.andi %41, %76 : vector<1x256xi1>
    %c14_i32_79 = arith.constant 14 : i32
    %377 = tpu.dynamic_rotate %9 by %c14_i32_79 dim 1 : vector<1x256xf32>, i32 -> vector<1x256xf32>
    %c19 = arith.constant 19 : index
    %378 = memref.load %arg3[%c19] : memref<98xf32, #tpu.memory_space<smem>>
    %cst_80 = arith.constant 0.000000e+00 : f32
    %379 = vector.broadcast %cst_80 : f32 to vector<1x256xf32>
    %380 = arith.select %376, %377, %379 : vector<1x256xi1>, vector<1x256xf32>
    %381 = vector.broadcast %378 : f32 to vector<1x256xf32>
    %382 = arith.mulf %380, %381 : vector<1x256xf32>
    %383 = arith.addf %375, %382 : vector<1x256xf32>
    %c14_i32_81 = arith.constant 14 : i32
    %384 = tpu.dynamic_rotate %14 by %c14_i32_81 dim 1 : vector<1x256xf32>, i32 -> vector<1x256xf32>
    %c68 = arith.constant 68 : index
    %385 = memref.load %arg3[%c68] : memref<98xf32, #tpu.memory_space<smem>>
    %cst_82 = arith.constant 0.000000e+00 : f32
    %386 = vector.broadcast %cst_82 : f32 to vector<1x256xf32>
    %387 = arith.select %376, %384, %386 : vector<1x256xi1>, vector<1x256xf32>
    %388 = vector.broadcast %385 : f32 to vector<1x256xf32>
    %389 = arith.mulf %387, %388 : vector<1x256xf32>
    %390 = arith.addf %383, %389 : vector<1x256xf32>
    %391 = arith.andi %41, %86 : vector<1x256xi1>
    %c13_i32_83 = arith.constant 13 : i32
    %392 = tpu.dynamic_rotate %9 by %c13_i32_83 dim 1 : vector<1x256xf32>, i32 -> vector<1x256xf32>
    %c20 = arith.constant 20 : index
    %393 = memref.load %arg3[%c20] : memref<98xf32, #tpu.memory_space<smem>>
    %cst_84 = arith.constant 0.000000e+00 : f32
    %394 = vector.broadcast %cst_84 : f32 to vector<1x256xf32>
    %395 = arith.select %391, %392, %394 : vector<1x256xi1>, vector<1x256xf32>
    %396 = vector.broadcast %393 : f32 to vector<1x256xf32>
    %397 = arith.mulf %395, %396 : vector<1x256xf32>
    %398 = arith.addf %390, %397 : vector<1x256xf32>
    %c13_i32_85 = arith.constant 13 : i32
    %399 = tpu.dynamic_rotate %14 by %c13_i32_85 dim 1 : vector<1x256xf32>, i32 -> vector<1x256xf32>
    %c69 = arith.constant 69 : index
    %400 = memref.load %arg3[%c69] : memref<98xf32, #tpu.memory_space<smem>>
    %cst_86 = arith.constant 0.000000e+00 : f32
    %401 = vector.broadcast %cst_86 : f32 to vector<1x256xf32>
    %402 = arith.select %391, %399, %401 : vector<1x256xi1>, vector<1x256xf32>
    %403 = vector.broadcast %400 : f32 to vector<1x256xf32>
    %404 = arith.mulf %402, %403 : vector<1x256xf32>
    %405 = arith.addf %398, %404 : vector<1x256xf32>
    %406 = arith.andi %51, %26 : vector<1x256xi1>
    %c3_i32_87 = arith.constant 3 : i32
    %407 = tpu.dynamic_rotate %9 by %c3_i32_87 dim 1 : vector<1x256xf32>, i32 -> vector<1x256xf32>
    %c21 = arith.constant 21 : index
    %408 = memref.load %arg3[%c21] : memref<98xf32, #tpu.memory_space<smem>>
    %cst_88 = arith.constant 0.000000e+00 : f32
    %409 = vector.broadcast %cst_88 : f32 to vector<1x256xf32>
    %410 = arith.select %406, %407, %409 : vector<1x256xi1>, vector<1x256xf32>
    %411 = vector.broadcast %408 : f32 to vector<1x256xf32>
    %412 = arith.mulf %410, %411 : vector<1x256xf32>
    %413 = arith.addf %405, %412 : vector<1x256xf32>
    %c3_i32_89 = arith.constant 3 : i32
    %414 = tpu.dynamic_rotate %14 by %c3_i32_89 dim 1 : vector<1x256xf32>, i32 -> vector<1x256xf32>
    %c70 = arith.constant 70 : index
    %415 = memref.load %arg3[%c70] : memref<98xf32, #tpu.memory_space<smem>>
    %cst_90 = arith.constant 0.000000e+00 : f32
    %416 = vector.broadcast %cst_90 : f32 to vector<1x256xf32>
    %417 = arith.select %406, %414, %416 : vector<1x256xi1>, vector<1x256xf32>
    %418 = vector.broadcast %415 : f32 to vector<1x256xf32>
    %419 = arith.mulf %417, %418 : vector<1x256xf32>
    %420 = arith.addf %413, %419 : vector<1x256xf32>
    %421 = arith.andi %51, %36 : vector<1x256xi1>
    %c2_i32_91 = arith.constant 2 : i32
    %422 = tpu.dynamic_rotate %9 by %c2_i32_91 dim 1 : vector<1x256xf32>, i32 -> vector<1x256xf32>
    %c22 = arith.constant 22 : index
    %423 = memref.load %arg3[%c22] : memref<98xf32, #tpu.memory_space<smem>>
    %cst_92 = arith.constant 0.000000e+00 : f32
    %424 = vector.broadcast %cst_92 : f32 to vector<1x256xf32>
    %425 = arith.select %421, %422, %424 : vector<1x256xi1>, vector<1x256xf32>
    %426 = vector.broadcast %423 : f32 to vector<1x256xf32>
    %427 = arith.mulf %425, %426 : vector<1x256xf32>
    %428 = arith.addf %420, %427 : vector<1x256xf32>
    %c2_i32_93 = arith.constant 2 : i32
    %429 = tpu.dynamic_rotate %14 by %c2_i32_93 dim 1 : vector<1x256xf32>, i32 -> vector<1x256xf32>
    %c71 = arith.constant 71 : index
    %430 = memref.load %arg3[%c71] : memref<98xf32, #tpu.memory_space<smem>>
    %cst_94 = arith.constant 0.000000e+00 : f32
    %431 = vector.broadcast %cst_94 : f32 to vector<1x256xf32>
    %432 = arith.select %421, %429, %431 : vector<1x256xi1>, vector<1x256xf32>
    %433 = vector.broadcast %430 : f32 to vector<1x256xf32>
    %434 = arith.mulf %432, %433 : vector<1x256xf32>
    %435 = arith.addf %428, %434 : vector<1x256xf32>
    %436 = arith.andi %51, %46 : vector<1x256xi1>
    %c1_i32_95 = arith.constant 1 : i32
    %437 = tpu.dynamic_rotate %9 by %c1_i32_95 dim 1 : vector<1x256xf32>, i32 -> vector<1x256xf32>
    %c23 = arith.constant 23 : index
    %438 = memref.load %arg3[%c23] : memref<98xf32, #tpu.memory_space<smem>>
    %cst_96 = arith.constant 0.000000e+00 : f32
    %439 = vector.broadcast %cst_96 : f32 to vector<1x256xf32>
    %440 = arith.select %436, %437, %439 : vector<1x256xi1>, vector<1x256xf32>
    %441 = vector.broadcast %438 : f32 to vector<1x256xf32>
    %442 = arith.mulf %440, %441 : vector<1x256xf32>
    %443 = arith.addf %435, %442 : vector<1x256xf32>
    %c1_i32_97 = arith.constant 1 : i32
    %444 = tpu.dynamic_rotate %14 by %c1_i32_97 dim 1 : vector<1x256xf32>, i32 -> vector<1x256xf32>
    %c72 = arith.constant 72 : index
    %445 = memref.load %arg3[%c72] : memref<98xf32, #tpu.memory_space<smem>>
    %cst_98 = arith.constant 0.000000e+00 : f32
    %446 = vector.broadcast %cst_98 : f32 to vector<1x256xf32>
    %447 = arith.select %436, %444, %446 : vector<1x256xi1>, vector<1x256xf32>
    %448 = vector.broadcast %445 : f32 to vector<1x256xf32>
    %449 = arith.mulf %447, %448 : vector<1x256xf32>
    %450 = arith.addf %443, %449 : vector<1x256xf32>
    %451 = arith.andi %51, %56 : vector<1x256xi1>
    %c24 = arith.constant 24 : index
    %452 = memref.load %arg3[%c24] : memref<98xf32, #tpu.memory_space<smem>>
    %cst_99 = arith.constant 0.000000e+00 : f32
    %453 = vector.broadcast %cst_99 : f32 to vector<1x256xf32>
    %454 = arith.select %451, %9, %453 : vector<1x256xi1>, vector<1x256xf32>
    %455 = vector.broadcast %452 : f32 to vector<1x256xf32>
    %456 = arith.mulf %454, %455 : vector<1x256xf32>
    %457 = arith.addf %450, %456 : vector<1x256xf32>
    %c73 = arith.constant 73 : index
    %458 = memref.load %arg3[%c73] : memref<98xf32, #tpu.memory_space<smem>>
    %cst_100 = arith.constant 0.000000e+00 : f32
    %459 = vector.broadcast %cst_100 : f32 to vector<1x256xf32>
    %460 = arith.select %451, %14, %459 : vector<1x256xi1>, vector<1x256xf32>
    %461 = vector.broadcast %458 : f32 to vector<1x256xf32>
    %462 = arith.mulf %460, %461 : vector<1x256xf32>
    %463 = arith.addf %457, %462 : vector<1x256xf32>
    %464 = arith.andi %51, %66 : vector<1x256xi1>
    %c255_i32 = arith.constant 255 : i32
    %465 = tpu.dynamic_rotate %9 by %c255_i32 dim 1 : vector<1x256xf32>, i32 -> vector<1x256xf32>
    %c25 = arith.constant 25 : index
    %466 = memref.load %arg3[%c25] : memref<98xf32, #tpu.memory_space<smem>>
    %cst_101 = arith.constant 0.000000e+00 : f32
    %467 = vector.broadcast %cst_101 : f32 to vector<1x256xf32>
    %468 = arith.select %464, %465, %467 : vector<1x256xi1>, vector<1x256xf32>
    %469 = vector.broadcast %466 : f32 to vector<1x256xf32>
    %470 = arith.mulf %468, %469 : vector<1x256xf32>
    %471 = arith.addf %463, %470 : vector<1x256xf32>
    %c255_i32_102 = arith.constant 255 : i32
    %472 = tpu.dynamic_rotate %14 by %c255_i32_102 dim 1 : vector<1x256xf32>, i32 -> vector<1x256xf32>
    %c74 = arith.constant 74 : index
    %473 = memref.load %arg3[%c74] : memref<98xf32, #tpu.memory_space<smem>>
    %cst_103 = arith.constant 0.000000e+00 : f32
    %474 = vector.broadcast %cst_103 : f32 to vector<1x256xf32>
    %475 = arith.select %464, %472, %474 : vector<1x256xi1>, vector<1x256xf32>
    %476 = vector.broadcast %473 : f32 to vector<1x256xf32>
    %477 = arith.mulf %475, %476 : vector<1x256xf32>
    %478 = arith.addf %471, %477 : vector<1x256xf32>
    %479 = arith.andi %51, %76 : vector<1x256xi1>
    %c254_i32 = arith.constant 254 : i32
    %480 = tpu.dynamic_rotate %9 by %c254_i32 dim 1 : vector<1x256xf32>, i32 -> vector<1x256xf32>
    %c26 = arith.constant 26 : index
    %481 = memref.load %arg3[%c26] : memref<98xf32, #tpu.memory_space<smem>>
    %cst_104 = arith.constant 0.000000e+00 : f32
    %482 = vector.broadcast %cst_104 : f32 to vector<1x256xf32>
    %483 = arith.select %479, %480, %482 : vector<1x256xi1>, vector<1x256xf32>
    %484 = vector.broadcast %481 : f32 to vector<1x256xf32>
    %485 = arith.mulf %483, %484 : vector<1x256xf32>
    %486 = arith.addf %478, %485 : vector<1x256xf32>
    %c254_i32_105 = arith.constant 254 : i32
    %487 = tpu.dynamic_rotate %14 by %c254_i32_105 dim 1 : vector<1x256xf32>, i32 -> vector<1x256xf32>
    %c75 = arith.constant 75 : index
    %488 = memref.load %arg3[%c75] : memref<98xf32, #tpu.memory_space<smem>>
    %cst_106 = arith.constant 0.000000e+00 : f32
    %489 = vector.broadcast %cst_106 : f32 to vector<1x256xf32>
    %490 = arith.select %479, %487, %489 : vector<1x256xi1>, vector<1x256xf32>
    %491 = vector.broadcast %488 : f32 to vector<1x256xf32>
    %492 = arith.mulf %490, %491 : vector<1x256xf32>
    %493 = arith.addf %486, %492 : vector<1x256xf32>
    %494 = arith.andi %51, %86 : vector<1x256xi1>
    %c253_i32 = arith.constant 253 : i32
    %495 = tpu.dynamic_rotate %9 by %c253_i32 dim 1 : vector<1x256xf32>, i32 -> vector<1x256xf32>
    %c27 = arith.constant 27 : index
    %496 = memref.load %arg3[%c27] : memref<98xf32, #tpu.memory_space<smem>>
    %cst_107 = arith.constant 0.000000e+00 : f32
    %497 = vector.broadcast %cst_107 : f32 to vector<1x256xf32>
    %498 = arith.select %494, %495, %497 : vector<1x256xi1>, vector<1x256xf32>
    %499 = vector.broadcast %496 : f32 to vector<1x256xf32>
    %500 = arith.mulf %498, %499 : vector<1x256xf32>
    %501 = arith.addf %493, %500 : vector<1x256xf32>
    %c253_i32_108 = arith.constant 253 : i32
    %502 = tpu.dynamic_rotate %14 by %c253_i32_108 dim 1 : vector<1x256xf32>, i32 -> vector<1x256xf32>
    %c76 = arith.constant 76 : index
    %503 = memref.load %arg3[%c76] : memref<98xf32, #tpu.memory_space<smem>>
    %cst_109 = arith.constant 0.000000e+00 : f32
    %504 = vector.broadcast %cst_109 : f32 to vector<1x256xf32>
    %505 = arith.select %494, %502, %504 : vector<1x256xi1>, vector<1x256xf32>
    %506 = vector.broadcast %503 : f32 to vector<1x256xf32>
    %507 = arith.mulf %505, %506 : vector<1x256xf32>
    %508 = arith.addf %501, %507 : vector<1x256xf32>
    %509 = arith.andi %61, %26 : vector<1x256xi1>
    %c243_i32 = arith.constant 243 : i32
    %510 = tpu.dynamic_rotate %9 by %c243_i32 dim 1 : vector<1x256xf32>, i32 -> vector<1x256xf32>
    %c28 = arith.constant 28 : index
    %511 = memref.load %arg3[%c28] : memref<98xf32, #tpu.memory_space<smem>>
    %cst_110 = arith.constant 0.000000e+00 : f32
    %512 = vector.broadcast %cst_110 : f32 to vector<1x256xf32>
    %513 = arith.select %509, %510, %512 : vector<1x256xi1>, vector<1x256xf32>
    %514 = vector.broadcast %511 : f32 to vector<1x256xf32>
    %515 = arith.mulf %513, %514 : vector<1x256xf32>
    %516 = arith.addf %508, %515 : vector<1x256xf32>
    %c243_i32_111 = arith.constant 243 : i32
    %517 = tpu.dynamic_rotate %14 by %c243_i32_111 dim 1 : vector<1x256xf32>, i32 -> vector<1x256xf32>
    %c77 = arith.constant 77 : index
    %518 = memref.load %arg3[%c77] : memref<98xf32, #tpu.memory_space<smem>>
    %cst_112 = arith.constant 0.000000e+00 : f32
    %519 = vector.broadcast %cst_112 : f32 to vector<1x256xf32>
    %520 = arith.select %509, %517, %519 : vector<1x256xi1>, vector<1x256xf32>
    %521 = vector.broadcast %518 : f32 to vector<1x256xf32>
    %522 = arith.mulf %520, %521 : vector<1x256xf32>
    %523 = arith.addf %516, %522 : vector<1x256xf32>
    %524 = arith.andi %61, %36 : vector<1x256xi1>
    %c242_i32 = arith.constant 242 : i32
    %525 = tpu.dynamic_rotate %9 by %c242_i32 dim 1 : vector<1x256xf32>, i32 -> vector<1x256xf32>
    %c29 = arith.constant 29 : index
    %526 = memref.load %arg3[%c29] : memref<98xf32, #tpu.memory_space<smem>>
    %cst_113 = arith.constant 0.000000e+00 : f32
    %527 = vector.broadcast %cst_113 : f32 to vector<1x256xf32>
    %528 = arith.select %524, %525, %527 : vector<1x256xi1>, vector<1x256xf32>
    %529 = vector.broadcast %526 : f32 to vector<1x256xf32>
    %530 = arith.mulf %528, %529 : vector<1x256xf32>
    %531 = arith.addf %523, %530 : vector<1x256xf32>
    %c242_i32_114 = arith.constant 242 : i32
    %532 = tpu.dynamic_rotate %14 by %c242_i32_114 dim 1 : vector<1x256xf32>, i32 -> vector<1x256xf32>
    %c78 = arith.constant 78 : index
    %533 = memref.load %arg3[%c78] : memref<98xf32, #tpu.memory_space<smem>>
    %cst_115 = arith.constant 0.000000e+00 : f32
    %534 = vector.broadcast %cst_115 : f32 to vector<1x256xf32>
    %535 = arith.select %524, %532, %534 : vector<1x256xi1>, vector<1x256xf32>
    %536 = vector.broadcast %533 : f32 to vector<1x256xf32>
    %537 = arith.mulf %535, %536 : vector<1x256xf32>
    %538 = arith.addf %531, %537 : vector<1x256xf32>
    %539 = arith.andi %61, %46 : vector<1x256xi1>
    %c241_i32 = arith.constant 241 : i32
    %540 = tpu.dynamic_rotate %9 by %c241_i32 dim 1 : vector<1x256xf32>, i32 -> vector<1x256xf32>
    %c30 = arith.constant 30 : index
    %541 = memref.load %arg3[%c30] : memref<98xf32, #tpu.memory_space<smem>>
    %cst_116 = arith.constant 0.000000e+00 : f32
    %542 = vector.broadcast %cst_116 : f32 to vector<1x256xf32>
    %543 = arith.select %539, %540, %542 : vector<1x256xi1>, vector<1x256xf32>
    %544 = vector.broadcast %541 : f32 to vector<1x256xf32>
    %545 = arith.mulf %543, %544 : vector<1x256xf32>
    %546 = arith.addf %538, %545 : vector<1x256xf32>
    %c241_i32_117 = arith.constant 241 : i32
    %547 = tpu.dynamic_rotate %14 by %c241_i32_117 dim 1 : vector<1x256xf32>, i32 -> vector<1x256xf32>
    %c79 = arith.constant 79 : index
    %548 = memref.load %arg3[%c79] : memref<98xf32, #tpu.memory_space<smem>>
    %cst_118 = arith.constant 0.000000e+00 : f32
    %549 = vector.broadcast %cst_118 : f32 to vector<1x256xf32>
    %550 = arith.select %539, %547, %549 : vector<1x256xi1>, vector<1x256xf32>
    %551 = vector.broadcast %548 : f32 to vector<1x256xf32>
    %552 = arith.mulf %550, %551 : vector<1x256xf32>
    %553 = arith.addf %546, %552 : vector<1x256xf32>
    %554 = arith.andi %61, %56 : vector<1x256xi1>
    %c240_i32_119 = arith.constant 240 : i32
    %555 = tpu.dynamic_rotate %9 by %c240_i32_119 dim 1 : vector<1x256xf32>, i32 -> vector<1x256xf32>
    %c31 = arith.constant 31 : index
    %556 = memref.load %arg3[%c31] : memref<98xf32, #tpu.memory_space<smem>>
    %cst_120 = arith.constant 0.000000e+00 : f32
    %557 = vector.broadcast %cst_120 : f32 to vector<1x256xf32>
    %558 = arith.select %554, %555, %557 : vector<1x256xi1>, vector<1x256xf32>
    %559 = vector.broadcast %556 : f32 to vector<1x256xf32>
    %560 = arith.mulf %558, %559 : vector<1x256xf32>
    %561 = arith.addf %553, %560 : vector<1x256xf32>
    %c240_i32_121 = arith.constant 240 : i32
    %562 = tpu.dynamic_rotate %14 by %c240_i32_121 dim 1 : vector<1x256xf32>, i32 -> vector<1x256xf32>
    %c80 = arith.constant 80 : index
    %563 = memref.load %arg3[%c80] : memref<98xf32, #tpu.memory_space<smem>>
    %cst_122 = arith.constant 0.000000e+00 : f32
    %564 = vector.broadcast %cst_122 : f32 to vector<1x256xf32>
    %565 = arith.select %554, %562, %564 : vector<1x256xi1>, vector<1x256xf32>
    %566 = vector.broadcast %563 : f32 to vector<1x256xf32>
    %567 = arith.mulf %565, %566 : vector<1x256xf32>
    %568 = arith.addf %561, %567 : vector<1x256xf32>
    %569 = arith.andi %61, %66 : vector<1x256xi1>
    %c239_i32 = arith.constant 239 : i32
    %570 = tpu.dynamic_rotate %9 by %c239_i32 dim 1 : vector<1x256xf32>, i32 -> vector<1x256xf32>
    %c32 = arith.constant 32 : index
    %571 = memref.load %arg3[%c32] : memref<98xf32, #tpu.memory_space<smem>>
    %cst_123 = arith.constant 0.000000e+00 : f32
    %572 = vector.broadcast %cst_123 : f32 to vector<1x256xf32>
    %573 = arith.select %569, %570, %572 : vector<1x256xi1>, vector<1x256xf32>
    %574 = vector.broadcast %571 : f32 to vector<1x256xf32>
    %575 = arith.mulf %573, %574 : vector<1x256xf32>
    %576 = arith.addf %568, %575 : vector<1x256xf32>
    %c239_i32_124 = arith.constant 239 : i32
    %577 = tpu.dynamic_rotate %14 by %c239_i32_124 dim 1 : vector<1x256xf32>, i32 -> vector<1x256xf32>
    %c81 = arith.constant 81 : index
    %578 = memref.load %arg3[%c81] : memref<98xf32, #tpu.memory_space<smem>>
    %cst_125 = arith.constant 0.000000e+00 : f32
    %579 = vector.broadcast %cst_125 : f32 to vector<1x256xf32>
    %580 = arith.select %569, %577, %579 : vector<1x256xi1>, vector<1x256xf32>
    %581 = vector.broadcast %578 : f32 to vector<1x256xf32>
    %582 = arith.mulf %580, %581 : vector<1x256xf32>
    %583 = arith.addf %576, %582 : vector<1x256xf32>
    %584 = arith.andi %61, %76 : vector<1x256xi1>
    %c238_i32 = arith.constant 238 : i32
    %585 = tpu.dynamic_rotate %9 by %c238_i32 dim 1 : vector<1x256xf32>, i32 -> vector<1x256xf32>
    %c33 = arith.constant 33 : index
    %586 = memref.load %arg3[%c33] : memref<98xf32, #tpu.memory_space<smem>>
    %cst_126 = arith.constant 0.000000e+00 : f32
    %587 = vector.broadcast %cst_126 : f32 to vector<1x256xf32>
    %588 = arith.select %584, %585, %587 : vector<1x256xi1>, vector<1x256xf32>
    %589 = vector.broadcast %586 : f32 to vector<1x256xf32>
    %590 = arith.mulf %588, %589 : vector<1x256xf32>
    %591 = arith.addf %583, %590 : vector<1x256xf32>
    %c238_i32_127 = arith.constant 238 : i32
    %592 = tpu.dynamic_rotate %14 by %c238_i32_127 dim 1 : vector<1x256xf32>, i32 -> vector<1x256xf32>
    %c82 = arith.constant 82 : index
    %593 = memref.load %arg3[%c82] : memref<98xf32, #tpu.memory_space<smem>>
    %cst_128 = arith.constant 0.000000e+00 : f32
    %594 = vector.broadcast %cst_128 : f32 to vector<1x256xf32>
    %595 = arith.select %584, %592, %594 : vector<1x256xi1>, vector<1x256xf32>
    %596 = vector.broadcast %593 : f32 to vector<1x256xf32>
    %597 = arith.mulf %595, %596 : vector<1x256xf32>
    %598 = arith.addf %591, %597 : vector<1x256xf32>
    %599 = arith.andi %61, %86 : vector<1x256xi1>
    %c237_i32 = arith.constant 237 : i32
    %600 = tpu.dynamic_rotate %9 by %c237_i32 dim 1 : vector<1x256xf32>, i32 -> vector<1x256xf32>
    %c34 = arith.constant 34 : index
    %601 = memref.load %arg3[%c34] : memref<98xf32, #tpu.memory_space<smem>>
    %cst_129 = arith.constant 0.000000e+00 : f32
    %602 = vector.broadcast %cst_129 : f32 to vector<1x256xf32>
    %603 = arith.select %599, %600, %602 : vector<1x256xi1>, vector<1x256xf32>
    %604 = vector.broadcast %601 : f32 to vector<1x256xf32>
    %605 = arith.mulf %603, %604 : vector<1x256xf32>
    %606 = arith.addf %598, %605 : vector<1x256xf32>
    %c237_i32_130 = arith.constant 237 : i32
    %607 = tpu.dynamic_rotate %14 by %c237_i32_130 dim 1 : vector<1x256xf32>, i32 -> vector<1x256xf32>
    %c83 = arith.constant 83 : index
    %608 = memref.load %arg3[%c83] : memref<98xf32, #tpu.memory_space<smem>>
    %cst_131 = arith.constant 0.000000e+00 : f32
    %609 = vector.broadcast %cst_131 : f32 to vector<1x256xf32>
    %610 = arith.select %599, %607, %609 : vector<1x256xi1>, vector<1x256xf32>
    %611 = vector.broadcast %608 : f32 to vector<1x256xf32>
    %612 = arith.mulf %610, %611 : vector<1x256xf32>
    %613 = arith.addf %606, %612 : vector<1x256xf32>
    %614 = arith.andi %71, %26 : vector<1x256xi1>
    %c227_i32 = arith.constant 227 : i32
    %615 = tpu.dynamic_rotate %9 by %c227_i32 dim 1 : vector<1x256xf32>, i32 -> vector<1x256xf32>
    %c35 = arith.constant 35 : index
    %616 = memref.load %arg3[%c35] : memref<98xf32, #tpu.memory_space<smem>>
    %cst_132 = arith.constant 0.000000e+00 : f32
    %617 = vector.broadcast %cst_132 : f32 to vector<1x256xf32>
    %618 = arith.select %614, %615, %617 : vector<1x256xi1>, vector<1x256xf32>
    %619 = vector.broadcast %616 : f32 to vector<1x256xf32>
    %620 = arith.mulf %618, %619 : vector<1x256xf32>
    %621 = arith.addf %613, %620 : vector<1x256xf32>
    %c227_i32_133 = arith.constant 227 : i32
    %622 = tpu.dynamic_rotate %14 by %c227_i32_133 dim 1 : vector<1x256xf32>, i32 -> vector<1x256xf32>
    %c84 = arith.constant 84 : index
    %623 = memref.load %arg3[%c84] : memref<98xf32, #tpu.memory_space<smem>>
    %cst_134 = arith.constant 0.000000e+00 : f32
    %624 = vector.broadcast %cst_134 : f32 to vector<1x256xf32>
    %625 = arith.select %614, %622, %624 : vector<1x256xi1>, vector<1x256xf32>
    %626 = vector.broadcast %623 : f32 to vector<1x256xf32>
    %627 = arith.mulf %625, %626 : vector<1x256xf32>
    %628 = arith.addf %621, %627 : vector<1x256xf32>
    %629 = arith.andi %71, %36 : vector<1x256xi1>
    %c226_i32 = arith.constant 226 : i32
    %630 = tpu.dynamic_rotate %9 by %c226_i32 dim 1 : vector<1x256xf32>, i32 -> vector<1x256xf32>
    %c36 = arith.constant 36 : index
    %631 = memref.load %arg3[%c36] : memref<98xf32, #tpu.memory_space<smem>>
    %cst_135 = arith.constant 0.000000e+00 : f32
    %632 = vector.broadcast %cst_135 : f32 to vector<1x256xf32>
    %633 = arith.select %629, %630, %632 : vector<1x256xi1>, vector<1x256xf32>
    %634 = vector.broadcast %631 : f32 to vector<1x256xf32>
    %635 = arith.mulf %633, %634 : vector<1x256xf32>
    %636 = arith.addf %628, %635 : vector<1x256xf32>
    %c226_i32_136 = arith.constant 226 : i32
    %637 = tpu.dynamic_rotate %14 by %c226_i32_136 dim 1 : vector<1x256xf32>, i32 -> vector<1x256xf32>
    %c85 = arith.constant 85 : index
    %638 = memref.load %arg3[%c85] : memref<98xf32, #tpu.memory_space<smem>>
    %cst_137 = arith.constant 0.000000e+00 : f32
    %639 = vector.broadcast %cst_137 : f32 to vector<1x256xf32>
    %640 = arith.select %629, %637, %639 : vector<1x256xi1>, vector<1x256xf32>
    %641 = vector.broadcast %638 : f32 to vector<1x256xf32>
    %642 = arith.mulf %640, %641 : vector<1x256xf32>
    %643 = arith.addf %636, %642 : vector<1x256xf32>
    %644 = arith.andi %71, %46 : vector<1x256xi1>
    %c225_i32 = arith.constant 225 : i32
    %645 = tpu.dynamic_rotate %9 by %c225_i32 dim 1 : vector<1x256xf32>, i32 -> vector<1x256xf32>
    %c37 = arith.constant 37 : index
    %646 = memref.load %arg3[%c37] : memref<98xf32, #tpu.memory_space<smem>>
    %cst_138 = arith.constant 0.000000e+00 : f32
    %647 = vector.broadcast %cst_138 : f32 to vector<1x256xf32>
    %648 = arith.select %644, %645, %647 : vector<1x256xi1>, vector<1x256xf32>
    %649 = vector.broadcast %646 : f32 to vector<1x256xf32>
    %650 = arith.mulf %648, %649 : vector<1x256xf32>
    %651 = arith.addf %643, %650 : vector<1x256xf32>
    %c225_i32_139 = arith.constant 225 : i32
    %652 = tpu.dynamic_rotate %14 by %c225_i32_139 dim 1 : vector<1x256xf32>, i32 -> vector<1x256xf32>
    %c86 = arith.constant 86 : index
    %653 = memref.load %arg3[%c86] : memref<98xf32, #tpu.memory_space<smem>>
    %cst_140 = arith.constant 0.000000e+00 : f32
    %654 = vector.broadcast %cst_140 : f32 to vector<1x256xf32>
    %655 = arith.select %644, %652, %654 : vector<1x256xi1>, vector<1x256xf32>
    %656 = vector.broadcast %653 : f32 to vector<1x256xf32>
    %657 = arith.mulf %655, %656 : vector<1x256xf32>
    %658 = arith.addf %651, %657 : vector<1x256xf32>
    %659 = arith.andi %71, %56 : vector<1x256xi1>
    %c224_i32_141 = arith.constant 224 : i32
    %660 = tpu.dynamic_rotate %9 by %c224_i32_141 dim 1 : vector<1x256xf32>, i32 -> vector<1x256xf32>
    %c38 = arith.constant 38 : index
    %661 = memref.load %arg3[%c38] : memref<98xf32, #tpu.memory_space<smem>>
    %cst_142 = arith.constant 0.000000e+00 : f32
    %662 = vector.broadcast %cst_142 : f32 to vector<1x256xf32>
    %663 = arith.select %659, %660, %662 : vector<1x256xi1>, vector<1x256xf32>
    %664 = vector.broadcast %661 : f32 to vector<1x256xf32>
    %665 = arith.mulf %663, %664 : vector<1x256xf32>
    %666 = arith.addf %658, %665 : vector<1x256xf32>
    %c224_i32_143 = arith.constant 224 : i32
    %667 = tpu.dynamic_rotate %14 by %c224_i32_143 dim 1 : vector<1x256xf32>, i32 -> vector<1x256xf32>
    %c87 = arith.constant 87 : index
    %668 = memref.load %arg3[%c87] : memref<98xf32, #tpu.memory_space<smem>>
    %cst_144 = arith.constant 0.000000e+00 : f32
    %669 = vector.broadcast %cst_144 : f32 to vector<1x256xf32>
    %670 = arith.select %659, %667, %669 : vector<1x256xi1>, vector<1x256xf32>
    %671 = vector.broadcast %668 : f32 to vector<1x256xf32>
    %672 = arith.mulf %670, %671 : vector<1x256xf32>
    %673 = arith.addf %666, %672 : vector<1x256xf32>
    %674 = arith.andi %71, %66 : vector<1x256xi1>
    %c223_i32 = arith.constant 223 : i32
    %675 = tpu.dynamic_rotate %9 by %c223_i32 dim 1 : vector<1x256xf32>, i32 -> vector<1x256xf32>
    %c39 = arith.constant 39 : index
    %676 = memref.load %arg3[%c39] : memref<98xf32, #tpu.memory_space<smem>>
    %cst_145 = arith.constant 0.000000e+00 : f32
    %677 = vector.broadcast %cst_145 : f32 to vector<1x256xf32>
    %678 = arith.select %674, %675, %677 : vector<1x256xi1>, vector<1x256xf32>
    %679 = vector.broadcast %676 : f32 to vector<1x256xf32>
    %680 = arith.mulf %678, %679 : vector<1x256xf32>
    %681 = arith.addf %673, %680 : vector<1x256xf32>
    %c223_i32_146 = arith.constant 223 : i32
    %682 = tpu.dynamic_rotate %14 by %c223_i32_146 dim 1 : vector<1x256xf32>, i32 -> vector<1x256xf32>
    %c88 = arith.constant 88 : index
    %683 = memref.load %arg3[%c88] : memref<98xf32, #tpu.memory_space<smem>>
    %cst_147 = arith.constant 0.000000e+00 : f32
    %684 = vector.broadcast %cst_147 : f32 to vector<1x256xf32>
    %685 = arith.select %674, %682, %684 : vector<1x256xi1>, vector<1x256xf32>
    %686 = vector.broadcast %683 : f32 to vector<1x256xf32>
    %687 = arith.mulf %685, %686 : vector<1x256xf32>
    %688 = arith.addf %681, %687 : vector<1x256xf32>
    %689 = arith.andi %71, %76 : vector<1x256xi1>
    %c222_i32 = arith.constant 222 : i32
    %690 = tpu.dynamic_rotate %9 by %c222_i32 dim 1 : vector<1x256xf32>, i32 -> vector<1x256xf32>
    %c40 = arith.constant 40 : index
    %691 = memref.load %arg3[%c40] : memref<98xf32, #tpu.memory_space<smem>>
    %cst_148 = arith.constant 0.000000e+00 : f32
    %692 = vector.broadcast %cst_148 : f32 to vector<1x256xf32>
    %693 = arith.select %689, %690, %692 : vector<1x256xi1>, vector<1x256xf32>
    %694 = vector.broadcast %691 : f32 to vector<1x256xf32>
    %695 = arith.mulf %693, %694 : vector<1x256xf32>
    %696 = arith.addf %688, %695 : vector<1x256xf32>
    %c222_i32_149 = arith.constant 222 : i32
    %697 = tpu.dynamic_rotate %14 by %c222_i32_149 dim 1 : vector<1x256xf32>, i32 -> vector<1x256xf32>
    %c89 = arith.constant 89 : index
    %698 = memref.load %arg3[%c89] : memref<98xf32, #tpu.memory_space<smem>>
    %cst_150 = arith.constant 0.000000e+00 : f32
    %699 = vector.broadcast %cst_150 : f32 to vector<1x256xf32>
    %700 = arith.select %689, %697, %699 : vector<1x256xi1>, vector<1x256xf32>
    %701 = vector.broadcast %698 : f32 to vector<1x256xf32>
    %702 = arith.mulf %700, %701 : vector<1x256xf32>
    %703 = arith.addf %696, %702 : vector<1x256xf32>
    %704 = arith.andi %71, %86 : vector<1x256xi1>
    %c221_i32 = arith.constant 221 : i32
    %705 = tpu.dynamic_rotate %9 by %c221_i32 dim 1 : vector<1x256xf32>, i32 -> vector<1x256xf32>
    %c41 = arith.constant 41 : index
    %706 = memref.load %arg3[%c41] : memref<98xf32, #tpu.memory_space<smem>>
    %cst_151 = arith.constant 0.000000e+00 : f32
    %707 = vector.broadcast %cst_151 : f32 to vector<1x256xf32>
    %708 = arith.select %704, %705, %707 : vector<1x256xi1>, vector<1x256xf32>
    %709 = vector.broadcast %706 : f32 to vector<1x256xf32>
    %710 = arith.mulf %708, %709 : vector<1x256xf32>
    %711 = arith.addf %703, %710 : vector<1x256xf32>
    %c221_i32_152 = arith.constant 221 : i32
    %712 = tpu.dynamic_rotate %14 by %c221_i32_152 dim 1 : vector<1x256xf32>, i32 -> vector<1x256xf32>
    %c90 = arith.constant 90 : index
    %713 = memref.load %arg3[%c90] : memref<98xf32, #tpu.memory_space<smem>>
    %cst_153 = arith.constant 0.000000e+00 : f32
    %714 = vector.broadcast %cst_153 : f32 to vector<1x256xf32>
    %715 = arith.select %704, %712, %714 : vector<1x256xi1>, vector<1x256xf32>
    %716 = vector.broadcast %713 : f32 to vector<1x256xf32>
    %717 = arith.mulf %715, %716 : vector<1x256xf32>
    %718 = arith.addf %711, %717 : vector<1x256xf32>
    %719 = arith.andi %81, %26 : vector<1x256xi1>
    %c211_i32 = arith.constant 211 : i32
    %720 = tpu.dynamic_rotate %9 by %c211_i32 dim 1 : vector<1x256xf32>, i32 -> vector<1x256xf32>
    %c42 = arith.constant 42 : index
    %721 = memref.load %arg3[%c42] : memref<98xf32, #tpu.memory_space<smem>>
    %cst_154 = arith.constant 0.000000e+00 : f32
    %722 = vector.broadcast %cst_154 : f32 to vector<1x256xf32>
    %723 = arith.select %719, %720, %722 : vector<1x256xi1>, vector<1x256xf32>
    %724 = vector.broadcast %721 : f32 to vector<1x256xf32>
    %725 = arith.mulf %723, %724 : vector<1x256xf32>
    %726 = arith.addf %718, %725 : vector<1x256xf32>
    %c211_i32_155 = arith.constant 211 : i32
    %727 = tpu.dynamic_rotate %14 by %c211_i32_155 dim 1 : vector<1x256xf32>, i32 -> vector<1x256xf32>
    %c91 = arith.constant 91 : index
    %728 = memref.load %arg3[%c91] : memref<98xf32, #tpu.memory_space<smem>>
    %cst_156 = arith.constant 0.000000e+00 : f32
    %729 = vector.broadcast %cst_156 : f32 to vector<1x256xf32>
    %730 = arith.select %719, %727, %729 : vector<1x256xi1>, vector<1x256xf32>
    %731 = vector.broadcast %728 : f32 to vector<1x256xf32>
    %732 = arith.mulf %730, %731 : vector<1x256xf32>
    %733 = arith.addf %726, %732 : vector<1x256xf32>
    %734 = arith.andi %81, %36 : vector<1x256xi1>
    %c210_i32 = arith.constant 210 : i32
    %735 = tpu.dynamic_rotate %9 by %c210_i32 dim 1 : vector<1x256xf32>, i32 -> vector<1x256xf32>
    %c43 = arith.constant 43 : index
    %736 = memref.load %arg3[%c43] : memref<98xf32, #tpu.memory_space<smem>>
    %cst_157 = arith.constant 0.000000e+00 : f32
    %737 = vector.broadcast %cst_157 : f32 to vector<1x256xf32>
    %738 = arith.select %734, %735, %737 : vector<1x256xi1>, vector<1x256xf32>
    %739 = vector.broadcast %736 : f32 to vector<1x256xf32>
    %740 = arith.mulf %738, %739 : vector<1x256xf32>
    %741 = arith.addf %733, %740 : vector<1x256xf32>
    %c210_i32_158 = arith.constant 210 : i32
    %742 = tpu.dynamic_rotate %14 by %c210_i32_158 dim 1 : vector<1x256xf32>, i32 -> vector<1x256xf32>
    %c92 = arith.constant 92 : index
    %743 = memref.load %arg3[%c92] : memref<98xf32, #tpu.memory_space<smem>>
    %cst_159 = arith.constant 0.000000e+00 : f32
    %744 = vector.broadcast %cst_159 : f32 to vector<1x256xf32>
    %745 = arith.select %734, %742, %744 : vector<1x256xi1>, vector<1x256xf32>
    %746 = vector.broadcast %743 : f32 to vector<1x256xf32>
    %747 = arith.mulf %745, %746 : vector<1x256xf32>
    %748 = arith.addf %741, %747 : vector<1x256xf32>
    %749 = arith.andi %81, %46 : vector<1x256xi1>
    %c209_i32 = arith.constant 209 : i32
    %750 = tpu.dynamic_rotate %9 by %c209_i32 dim 1 : vector<1x256xf32>, i32 -> vector<1x256xf32>
    %c44 = arith.constant 44 : index
    %751 = memref.load %arg3[%c44] : memref<98xf32, #tpu.memory_space<smem>>
    %cst_160 = arith.constant 0.000000e+00 : f32
    %752 = vector.broadcast %cst_160 : f32 to vector<1x256xf32>
    %753 = arith.select %749, %750, %752 : vector<1x256xi1>, vector<1x256xf32>
    %754 = vector.broadcast %751 : f32 to vector<1x256xf32>
    %755 = arith.mulf %753, %754 : vector<1x256xf32>
    %756 = arith.addf %748, %755 : vector<1x256xf32>
    %c209_i32_161 = arith.constant 209 : i32
    %757 = tpu.dynamic_rotate %14 by %c209_i32_161 dim 1 : vector<1x256xf32>, i32 -> vector<1x256xf32>
    %c93 = arith.constant 93 : index
    %758 = memref.load %arg3[%c93] : memref<98xf32, #tpu.memory_space<smem>>
    %cst_162 = arith.constant 0.000000e+00 : f32
    %759 = vector.broadcast %cst_162 : f32 to vector<1x256xf32>
    %760 = arith.select %749, %757, %759 : vector<1x256xi1>, vector<1x256xf32>
    %761 = vector.broadcast %758 : f32 to vector<1x256xf32>
    %762 = arith.mulf %760, %761 : vector<1x256xf32>
    %763 = arith.addf %756, %762 : vector<1x256xf32>
    %764 = arith.andi %81, %56 : vector<1x256xi1>
    %c208_i32_163 = arith.constant 208 : i32
    %765 = tpu.dynamic_rotate %9 by %c208_i32_163 dim 1 : vector<1x256xf32>, i32 -> vector<1x256xf32>
    %c45 = arith.constant 45 : index
    %766 = memref.load %arg3[%c45] : memref<98xf32, #tpu.memory_space<smem>>
    %cst_164 = arith.constant 0.000000e+00 : f32
    %767 = vector.broadcast %cst_164 : f32 to vector<1x256xf32>
    %768 = arith.select %764, %765, %767 : vector<1x256xi1>, vector<1x256xf32>
    %769 = vector.broadcast %766 : f32 to vector<1x256xf32>
    %770 = arith.mulf %768, %769 : vector<1x256xf32>
    %771 = arith.addf %763, %770 : vector<1x256xf32>
    %c208_i32_165 = arith.constant 208 : i32
    %772 = tpu.dynamic_rotate %14 by %c208_i32_165 dim 1 : vector<1x256xf32>, i32 -> vector<1x256xf32>
    %c94 = arith.constant 94 : index
    %773 = memref.load %arg3[%c94] : memref<98xf32, #tpu.memory_space<smem>>
    %cst_166 = arith.constant 0.000000e+00 : f32
    %774 = vector.broadcast %cst_166 : f32 to vector<1x256xf32>
    %775 = arith.select %764, %772, %774 : vector<1x256xi1>, vector<1x256xf32>
    %776 = vector.broadcast %773 : f32 to vector<1x256xf32>
    %777 = arith.mulf %775, %776 : vector<1x256xf32>
    %778 = arith.addf %771, %777 : vector<1x256xf32>
    %779 = arith.andi %81, %66 : vector<1x256xi1>
    %c207_i32 = arith.constant 207 : i32
    %780 = tpu.dynamic_rotate %9 by %c207_i32 dim 1 : vector<1x256xf32>, i32 -> vector<1x256xf32>
    %c46 = arith.constant 46 : index
    %781 = memref.load %arg3[%c46] : memref<98xf32, #tpu.memory_space<smem>>
    %cst_167 = arith.constant 0.000000e+00 : f32
    %782 = vector.broadcast %cst_167 : f32 to vector<1x256xf32>
    %783 = arith.select %779, %780, %782 : vector<1x256xi1>, vector<1x256xf32>
    %784 = vector.broadcast %781 : f32 to vector<1x256xf32>
    %785 = arith.mulf %783, %784 : vector<1x256xf32>
    %786 = arith.addf %778, %785 : vector<1x256xf32>
    %c207_i32_168 = arith.constant 207 : i32
    %787 = tpu.dynamic_rotate %14 by %c207_i32_168 dim 1 : vector<1x256xf32>, i32 -> vector<1x256xf32>
    %c95 = arith.constant 95 : index
    %788 = memref.load %arg3[%c95] : memref<98xf32, #tpu.memory_space<smem>>
    %cst_169 = arith.constant 0.000000e+00 : f32
    %789 = vector.broadcast %cst_169 : f32 to vector<1x256xf32>
    %790 = arith.select %779, %787, %789 : vector<1x256xi1>, vector<1x256xf32>
    %791 = vector.broadcast %788 : f32 to vector<1x256xf32>
    %792 = arith.mulf %790, %791 : vector<1x256xf32>
    %793 = arith.addf %786, %792 : vector<1x256xf32>
    %794 = arith.andi %81, %76 : vector<1x256xi1>
    %c206_i32 = arith.constant 206 : i32
    %795 = tpu.dynamic_rotate %9 by %c206_i32 dim 1 : vector<1x256xf32>, i32 -> vector<1x256xf32>
    %c47 = arith.constant 47 : index
    %796 = memref.load %arg3[%c47] : memref<98xf32, #tpu.memory_space<smem>>
    %cst_170 = arith.constant 0.000000e+00 : f32
    %797 = vector.broadcast %cst_170 : f32 to vector<1x256xf32>
    %798 = arith.select %794, %795, %797 : vector<1x256xi1>, vector<1x256xf32>
    %799 = vector.broadcast %796 : f32 to vector<1x256xf32>
    %800 = arith.mulf %798, %799 : vector<1x256xf32>
    %801 = arith.addf %793, %800 : vector<1x256xf32>
    %c206_i32_171 = arith.constant 206 : i32
    %802 = tpu.dynamic_rotate %14 by %c206_i32_171 dim 1 : vector<1x256xf32>, i32 -> vector<1x256xf32>
    %c96 = arith.constant 96 : index
    %803 = memref.load %arg3[%c96] : memref<98xf32, #tpu.memory_space<smem>>
    %cst_172 = arith.constant 0.000000e+00 : f32
    %804 = vector.broadcast %cst_172 : f32 to vector<1x256xf32>
    %805 = arith.select %794, %802, %804 : vector<1x256xi1>, vector<1x256xf32>
    %806 = vector.broadcast %803 : f32 to vector<1x256xf32>
    %807 = arith.mulf %805, %806 : vector<1x256xf32>
    %808 = arith.addf %801, %807 : vector<1x256xf32>
    %809 = arith.andi %81, %86 : vector<1x256xi1>
    %c205_i32 = arith.constant 205 : i32
    %810 = tpu.dynamic_rotate %9 by %c205_i32 dim 1 : vector<1x256xf32>, i32 -> vector<1x256xf32>
    %c48 = arith.constant 48 : index
    %811 = memref.load %arg3[%c48] : memref<98xf32, #tpu.memory_space<smem>>
    %cst_173 = arith.constant 0.000000e+00 : f32
    %812 = vector.broadcast %cst_173 : f32 to vector<1x256xf32>
    %813 = arith.select %809, %810, %812 : vector<1x256xi1>, vector<1x256xf32>
    %814 = vector.broadcast %811 : f32 to vector<1x256xf32>
    %815 = arith.mulf %813, %814 : vector<1x256xf32>
    %816 = arith.addf %808, %815 : vector<1x256xf32>
    %c205_i32_174 = arith.constant 205 : i32
    %817 = tpu.dynamic_rotate %14 by %c205_i32_174 dim 1 : vector<1x256xf32>, i32 -> vector<1x256xf32>
    %c97 = arith.constant 97 : index
    %818 = memref.load %arg3[%c97] : memref<98xf32, #tpu.memory_space<smem>>
    %cst_175 = arith.constant 0.000000e+00 : f32
    %819 = vector.broadcast %cst_175 : f32 to vector<1x256xf32>
    %820 = arith.select %809, %817, %819 : vector<1x256xi1>, vector<1x256xf32>
    %821 = vector.broadcast %818 : f32 to vector<1x256xf32>
    %822 = arith.mulf %820, %821 : vector<1x256xf32>
    %823 = arith.addf %816, %822 : vector<1x256xf32>
    %824 = arith.negf %823 : vector<1x256xf32>
    %825 = math.exp %824 : vector<1x256xf32>
    %cst_176 = arith.constant 1.000000e+00 : f32
    %826 = vector.broadcast %cst_176 : f32 to vector<1x256xf32>
    %827 = arith.addf %826, %825 : vector<1x256xf32>
    %828 = arith.divf %826, %827 : vector<1x256xf32>
    %829 = vector.shape_cast %828 : vector<1x256xf32> to vector<1x256xf32>
    %830 = vector.broadcast %829 : vector<1x256xf32> to vector<32x256xf32>
    %c0_i32_177 = arith.constant 0 : i32
    %c32_i32_178 = arith.constant 32 : i32
    %831 = arith.muli %c0_i32_177, %c32_i32_178 : i32
    %832 = tpu.assume_multiple %831, 32 : i32
    %c0_179 = arith.constant 0 : index
    %833 = arith.index_cast %832 : i32 to index
    %c0_180 = arith.constant 0 : index
    %834 = vector.load %arg1[%c0_179, %833, %c0_180] : memref<1x32x256xf32, #tpu.memory_space<vmem>>, vector<1x32x256xf32>
    %835 = vector.shape_cast %834 : vector<1x32x256xf32> to vector<32x256xf32>
    %836 = arith.mulf %835, %830 : vector<32x256xf32>
    %c0_181 = arith.constant 0 : index
    %837 = arith.index_cast %832 : i32 to index
    %c0_182 = arith.constant 0 : index
    %838 = vector.load %arg5[%c0_181, %837, %c0_182] : memref<1x32x256xf32, #tpu.memory_space<vmem>>, vector<1x32x256xf32>
    %839 = vector.shape_cast %838 : vector<1x32x256xf32> to vector<32x256xf32>
    %840 = vector.shape_cast %836 : vector<32x256xf32> to vector<1x32x256xf32>
    tpu.vector_store %arg5[%c0_181, %837, %c0_182], %840 {strides = array<i32>} : memref<1x32x256xf32, #tpu.memory_space<vmem>>, vector<1x32x256xf32>,
    %c1_i32_183 = arith.constant 1 : i32
    return
  }
  func.func @transform_0(%arg0: i32) -> (i32, i32, i32) {
    %c0_i32 = arith.constant 0 : i32
    %c0_i32_0 = arith.constant 0 : i32
    %c0_i32_1 = arith.constant 0 : i32
    return %arg0, %c0_i32, %c0_i32_0 : i32, i32, i32
  }
  func.func @transform_1(%arg0: i32) -> (i32, i32) {
    %c0_i32 = arith.constant 0 : i32
    %c0_i32_0 = arith.constant 0 : i32
    %c0_i32_1 = arith.constant 0 : i32
    return %c0_i32, %c0_i32_0 : i32, i32
  }
  func.func @transform_2(%arg0: i32) -> i32 {
    %c0_i32 = arith.constant 0 : i32
    %c0_i32_0 = arith.constant 0 : i32
    return %c0_i32 : i32
  }
  func.func @transform_3(%arg0: i32) -> i32 {
    %c0_i32 = arith.constant 0 : i32
    %c0_i32_0 = arith.constant 0 : i32
    return %c0_i32 : i32
  }
  func.func @transform_4(%arg0: i32) -> (i32, i32, i32) {
    %c0_i32 = arith.constant 0 : i32
    %c0_i32_0 = arith.constant 0 : i32
    %c0_i32_1 = arith.constant 0 : i32
    return %arg0, %c0_i32, %c0_i32_0 : i32, i32, i32
  }
}

</mosaic_0001>

<bundles_post_ra>
// kernel: tpu_custom_call.1
= control target key start
LH: loop header
LB: loop body
LE: loop exit
PB: predicated region body
PF: predicated region fallthrough
CT: control target
= control target key end

     0   :  { %s4961_s0 = inlined_call_operand.hbm [shape: f32[2,32,256], index: 0, kind: input, shape index: {}]   ;;  %s4962_s1 = inlined_call_operand.vmem [shape: s32[1,256], index: 1, kind: input, shape index: {}]   ;;  %s4963_s2 = inlined_call_operand.vmem [shape: f32[98], index: 2, kind: input, shape index: {}]   ;;  %s4964_s3 = inlined_call_operand.<no memory space> [shape: f32[1], index: 3, kind: input, shape index: {}]   ;;  %s4965_s4 = inlined_call_operand.hbm [shape: f32[2,32,256], index: 4, kind: output, shape index: {}]  }
   0x1   :  { %9 = sst [smem:[#allocation2]] %s4964_s3 }
   0x2   :  { %10 = vsyncpa [#allocation4], 0 }
   0x3   :  { %12 = vsyncpa [#allocation4 + $0x1], 0 }
   0x4   :  { %13 = vsyncpa [#allocation6], 0 }
   0x5   :  { %14 = vsyncpa [#allocation5], 0 }
   0x6   :  { %16 = vsyncpa [#allocation5 + $0x1], 0  ;;  %s2514_s17 = smov 0   ;;  %s2516_s18 = smov 0  }
   0x7   :  { %s2518_s19 = smov 0   ;;  %s2520_s20 = smov 0  }
   0x8 LB: > { %s2535_s3 = sadd.s32 4294967295, %s2429_s20   ;;  %s2072_s21 = sadd.s32 4294967294, %s2429_s20   ;;  %s2429_s20 = sphi %s2520_s20, %s5229_s20   ;;  %s2425_s19 = sphi %s2518_s19, %s5228_s19   ;;  %s2421_s18 = sphi %s2516_s18, %s5227_s18   ;;  %s2417_s17 = sphi %s2514_s17, %s5226_s17  }
   0x9   : > { %s2539_s22 = sadd.s32 1, %s2429_s20   ;;  %s29_s23 = sadd.s32 1, %s2425_s19 }
   0xa   : > { %s26_s24 = ssub.s32 %s2429_s20, %s2539_s22  ;;  %p36_p0 = scmp.ne.s32.totalorder %s2425_s19, %s2421_s18 }
   0xb   : > { %p27_p1 = scmp.eq.s32.totalorder %s26_s24, 0  ;;  %p37_p2 = scmp.eq.s32.totalorder %s2429_s20, 0 }
   0xc   : > { %p42_p3 = scmp.ne.s32.totalorder %s2421_s18, %s2417_s17  ;;  %p4967_p4 = scmp.eq.s32.totalorder %s2535_s3, 0 }
   0xd   : > { %s2551_s25 = scalar_select %p27_p1, %s2425_s19, %s29_s23  }
   0xe   : > { %p2553_p5 = por %p37_p2, %p36_p0  ;;  %p2559_p6 = por %p4967_p4, %p42_p3 }
   0xf   : > { %p129_p7 = scmp.eq.s32.totalorder %s2535_s3, 1  ;;  %p135_p8 = scmp.eq.s32.totalorder %s2072_s21, 1 }
  0x10   : > { %s5006_s27 = scalar_select %p2559_p6, 1, 0 }
  0x11   : > { %p2073_p9 = scmp.ge.s32.totalorder %s2429_s20, 1  ;;  %p142_p10 = scmp.lt.s32.totalorder %s2429_s20, 3 }
  0x12   : > { %p2566_p11 = por %p129_p7, %p36_p0  ;;  %p2570_p12 = por %p135_p8, %p42_p3 }
  0x13   : > { %p2574_p13 = pnand %p2073_p9, %p142_p10  ;;  %s158_s7 = sshll.u32 %s4963_s2, 4  ;;  %s159_s7 = int_to_ptr.vmem [resolvable:$true] %s158_s7 }
  0x14   : > { %s5007_s28 = scalar_select %p2566_p11, 1, 0 }
  0x15   : > { %s5008_s29 = scalar_select %p2570_p12, 1, 0 }
  0x16   : > { %p2197_p1 = pneg %p2574_p13  ;;  %p2210_p2 = scmp.lt.s32.totalorder %s2429_s20, 2 }
  0x17   : > { %s172_s9 = sand.u32 1, %s2425_s19   ;;  %s2314_s12 = scalar_lea.vmem %s159_s7, 16 }
  0x18   : > { %p2587_p7 = pnand %p2197_p1, %p4967_p4  ;;  %p2594_p3 = pnand %p2210_p2, %p2553_p5 }
  0x19   : > { %s2076_s11 = sshll.u32 %s172_s9, 6  ;;  %p2315_p8 = scmp.ne.s32.totalorder %s159_s7, %s2314_s12 }
  0x1a   : > { %p2316_p9 = pneg %p2587_p7  ;;  %p2322_p12 = scmp.lt.s32.totalorder %s159_s7, %s159_s7 }
  0x1b   : > { %p2323_p11 = scmp.lt.s32.totalorder %s2314_s12, %s2314_s12 }
  0x1c   : > { %p2317_p10 = pnand %p2316_p9, %p2315_p8 }
  0x1d   : > { %p2324_p1 = por %p2323_p11, %p2322_p12 }
  0x1e   : > { %p2318_p0 = pneg %p2317_p10 }
  0x20   : > { %p2325_p4 = pnand %p2324_p1, %p2318_p0 }
  0x22   : > { %2328 = shalt.err (!%p2325_p4)
}
  0x23   : > { %s2431_s13 = smov [#allocation7]   ;;  %s2187_s14 = sshll.u32 %s2429_s20, 10 }
  0x24   : > { %2200 = dma.vmem_to_smem (!%p2587_p7), %s159_s7, 16, %s2431_s13, [#allocation6]  }
  0x25   : > { %s176_s15 = scalar_lea.vmem [#allocation3], %s2076_s11  ;;  %s2606_s24 = scalar_lea.hbm %s4961_s0, %s2187_s14 }
  0x26   : > { %s183_s16 = sshll.u32 %s176_s15, 4  ;;  %s2610_s26 = scalar_lea.sflag [#allocation4], %s172_s9  ;;  %s2608_s16 = int_to_ptr.vmem [resolvable:$true] %s183_s16 }
  0x27   : > { %s2329_s5 = scalar_lea.hbm %s2606_s24, 1024  ;;  %p2331_p5 = pneg %p2594_p3 }
  0x28   : > { %p2330_p4 = scmp.ne.s32.totalorder %s2606_s24, %s2329_s5  ;;  %s2334_s8 = scalar_lea.hbm %s4961_s0, 2048 }
  0x29   : > { %p2335_p0 = scmp.lt.u32.totalorder %s2606_s24, %s4961_s0  ;;  %p2336_p2 = scmp.lt.u32.totalorder %s2334_s8, %s2329_s5 }
  0x2a   : > { %p2332_p11 = pnand %p2331_p5, %p2330_p4  ;;  %p2338_p8 = scmp.lt.u32.totalorder %s2329_s5, %s2606_s24 }
  0x2b   : > { %p2337_p7 = por %p2336_p2, %p2335_p0 }
  0x2c   : > { %p2333_p12 = pneg %p2332_p11 }
  0x2d   : > { %p2339_p9 = por %p2338_p8, %p2337_p7 }
  0x2f   : > { %p2340_p10 = pnand %p2339_p9, %p2333_p12 }
  0x31   : > { %2343 = shalt.err (!%p2340_p10)
}
  0x32   : > { %s2344_s9 = scalar_lea.vmem %s2608_s16, 1024  ;;  %s2432_s13 = smov [#allocation3]  }
  0x33   : > { %p2345_p1 = scmp.ne.s32.totalorder %s2608_s16, %s2344_s9  ;;  %s2349_s14 = sshll.u32 %s2432_s13, 4  ;;  %s2350_s14 = int_to_ptr.vmem [resolvable:$false] %s2349_s14 }
  0x34   : > { %s2351_s15 = scalar_lea.vmem %s2350_s14, 2048  ;;  %p2352_p6 = scmp.lt.s32.totalorder %s2608_s16, %s2350_s14 }
  0x35   : > { %p2347_p4 = pnand %p2345_p1, %p2331_p5  ;;  %p2353_p0 = scmp.lt.s32.totalorder %s2351_s15, %s2344_s9 }
  0x37   : > { %p2348_p11 = pneg %p2347_p4  ;;  %p2354_p2 = por %p2353_p0, %p2352_p6 }
  0x39   : > { %p2355_p7 = pnand %p2354_p2, %p2348_p11 }
  0x3b   : > { %2358 = shalt.err (!%p2355_p7)
}
  0x3c   : > { %s2433_s21 = smov 256   ;;  %s2434_s23 = smov 16  }
  0x3d   : > { %2204 = dma.hbm_to_vmem [thread:$0]  (!%p2594_p3), %s2606_s24, 1024, %s2608_s16, %s2610_s26, %s2433_s21, %s2433_s21, %s2434_s23  }
  0x3e   : > { %195 = sbr.rel (%p2574_p13) target bundleno = 649 (0x289), region = 36 }
  0x45   : > { %s2641_s5 = sand.u32 1, %s2421_s18   ;;  %p5012_p6 = scmp.ne.s32.totalorder %s5006_s27, 0 }
  0x46   : > { %s2080_s6 = sshll.u32 %s2641_s5, 6  ;;  %s198_s7 = scalar_lea.sflag [#allocation4], %s2641_s5 }
  0x47   : > { %s2647_s8 = scalar_lea.vmem [#allocation3], %s2080_s6 }
  0x48   : > { %2404 = dma.done.wait (%p5012_p6), %s198_s7, 1024  }
  0x49   : > { %2406 = vsyncadd (%p5012_p6), %s198_s7, 4294966272  ;;  %p5013_p3 = scmp.eq.s32.totalorder %s2535_s3, 0 }
  0x4b   : > { %2408 = dma.done.wait (%p5013_p3), [#allocation6], 16   ;;  %p5014_p13 = pmov %p5013_p3 }
  0x4d   : > { %2410 = vsyncadd (%p5014_p13), [#allocation6], 4294967280 }
  0x4e   : > { %210 = sfence }
  0x4f   : > { %v235_v0 = vld [vmem:[%s2647_s8 + $0x8] sm:$0xff]  ;;  %v237_v1 = vld [vmem:[%s2647_s8 + $0x18] sm:$0xff]  ;;  %v234_v5 = vld [vmem:[%s2647_s8] sm:$0xff]  ;;  %s2435_s27 = smov 50   ;;  %s2436_s30 = smov 51  }
  0x50   : > { %v239_v2 = vld [vmem:[%s2647_s8 + $0x28] sm:$0xff]  ;;  %v241_v3 = vld [vmem:[%s2647_s8 + $0x38] sm:$0xff]  ;;  %v236_v6 = vld [vmem:[%s2647_s8 + $0x10] sm:$0xff]  ;;  %v269_v7 = vadd.f32 %v237_v1, %v235_v0  ;;  %s2437_s10 = smov 49   ;;  %s2438_s16 = smov 48  }
  0x51   : > { %v251_v4 = vmax.f32 %v235_v0, %v239_v2  ;;  %v252_v8 = vmax.f32 %v237_v1, %v241_v3  ;;  %v238_v9 = vld [vmem:[%s2647_s8 + $0x20] sm:$0xff]  ;;  %v240_v10 = vld [vmem:[%s2647_s8 + $0x30] sm:$0xff]  ;;  %v260_v11 = vadd.f32 %v236_v6, %v234_v5  ;;  %s2439_s24 = smov 47   ;;  %s2440_s26 = smov 46  }
  0x52   : > { %v242_v12 = vmax.f32 %v234_v5, %v238_v9  ;;  %v243_v13 = vmax.f32 %v236_v6, %v240_v10  ;;  %v270_v14 = vadd.f32 %v269_v7, %v239_v2  ;;  %s2441_s11 = smov 45   ;;  %s2442_s12 = smov 35   ;;  %v282_v2 = vlaneseq }
  0x53   : > { %v253_v15 = vmax.f32 %v251_v4, %v252_v8  ;;  %v261_v16 = vadd.f32 %v260_v11, %v238_v9  ;;  %s2443_s9 = smov 34   ;;  %s2444_s13 = smov 33  }
  0x54   : > { %v244_v17 = vmax.f32 %v242_v12, %v243_v13  ;;  %v271_v18 = vadd.f32 %v270_v14, %v241_v3  ;;  %s2445_s14 = smov 32   ;;  %s2446_s15 = smov 31   ;;  %v2796_v3 = vld [vmem:[%s4962_s1] sm:$0x3]  ;;  %v354_v6 = vshrl.u32 %v282_v2, 7 }
  0x55   : > { %v254_v19 = vrot.slane %v253_v15, 4  ;;  %v262_v20 = vadd.f32 %v261_v16, %v240_v10  ;;  %s2447_s21 = smov 30   ;;  %s2448_s23 = smov 29   ;;  %vm292_vm0 = vcmp.ge.s32.totalorder %v2796_v3, 3  ;;  %vm293_vm1 = vcmp.lt.s32.totalorder %v2796_v3, 19 }
  0x56   : > { %v245_v21 = vrot.slane %v244_v17, 4  ;;  %v272_v22 = vrot.slane %v271_v18, 4  ;;  %s2449_s7 = smov 19   ;;  %vm294_vm2 = vmand %vm292_vm0, %vm293_vm1  ;;  %v2812_v9 = vsub.s32 0, %v354_v6  ;;  %v4969_v10 = vmov 0   ;;  %p5223_p12 = scmp.ne.s32.totalorder %s5007_s28, 0 }
  0x57   : > { %v255_v23 = vmax.f32 %v253_v15, %v254_v19  ;;  %v263_v24 = vrot.slane %v262_v20, 4  ;;  %v352_v11 = vsel %vm294_vm2, 1, %v4969_v10  ;;  %v2817_v12 = vsub.s32 1, %v354_v6 }
  0x58   : > { %v246_v25 = vmax.f32 %v244_v17, %v245_v21  ;;  %v273_v26 = vadd.f32 %v272_v22, %v271_v18  ;;  %vm301_vm3 = vcmp.ge.s32.totalorder %v2796_v3, 2  ;;  %vm302_vm4 = vcmp.lt.s32.totalorder %v2796_v3, 18 }
  0x59   : > { %v256_v27 = vrot.slane %v255_v23, 2  ;;  %v264_v28 = vadd.f32 %v263_v24, %v262_v20  ;;  %v2825_v15 = vand.u32 127, %v282_v2  ;;  %v356_v16 = vrot.slane %v352_v11, %v2812_v9  ;;  %vm303_vm5 = vmand %vm301_vm3, %vm302_vm4 }
  0x5a   : > { %v247_v29 = vrot.slane %v246_v25, 2  ;;  %v274_v30 = vrot.slane %v273_v26, 2  ;;  %v360_v17 = vrot.slane %v352_v11, %v2817_v12  ;;  %v394_v21 = vsel %vm303_vm5, 1, %v4969_v10 }
  0x5b   : > { %v257_v31 = vmax.f32 %v255_v23, %v256_v27  ;;  %v265_v32 = vrot.slane %v264_v28, 2  ;;  %vm4981_vm6 = vcmp.ge.s32.totalorder %v2825_v15, 48  ;;  %vm2840_vm7 = vcmp.ne.s32.totalorder %v356_v16, 0 }
  0x5c   : > { %v248_v33 = vmax.f32 %v246_v25, %v247_v29  ;;  %v275_v36 = vadd.f32 %v274_v30, %v273_v26  ;;  %vm369_vm8 = vcmp.lt.s32.totalorder %v2825_v15, 51  ;;  %vm2850_vm9 = vcmp.ne.s32.totalorder %v360_v17, 0  ;;  %vm2863_vm11 = vmand %vm4981_vm6, %vm2840_vm7 }
  0x5d   : > { %v258_v34 = vrot.slane %v257_v31, 1  ;;  %v266_v35 = vadd.f32 %v265_v32, %v264_v28  ;;  %v5017_v22 = vmov 0  ;;  %vm310_vm10 = vcmp.ge.s32.totalorder %v2796_v3, 1 }
  0x5e   : > { %v249_v37 = vrot.slane %v248_v33, 1  ;;  %v276_v42 = vrot.slane %v275_v36, 1  ;;  %v5018_v22 = vsel %vm2850_vm9, 4294967295, %v5017_v22  ;;  %v398_v27 = vrot.slane %v394_v21, %v2812_v9 }
  0x5f   : > { %v2665_v38 = vmax.f32 %v257_v31, %v258_v34  ;;  %v267_v39 = vrot.slane %v266_v35, 1  ;;  %vm311_vm12 = vcmp.lt.s32.totalorder %v2796_v3, 17  ;;  %v402_v34 = vrot.slane %v394_v21, %v2817_v12 }
  0x60   : > { %v2667_v40 = vmax.f32 %v248_v33, %v249_v37  ;;  %v277_v44 = vadd.f32 %v276_v42, %v275_v36  ;;  %vm312_vm13 = vmand %vm310_vm10, %vm311_vm12  ;;  %vm2899_vm14 = vcmp.ne.s32.totalorder %v398_v27, 0  ;;  %vm411_vm15 = vcmp.lt.s32.totalorder %v2825_v15, 50 }
  0x61   : > { %409 = vrot.lane.b32.xlu1 %v2665_v38, %s2435_s27  ;;  %v268_v41 = vadd.f32 %v267_v39, %v266_v35  ;;  %vm319_vm0 = vcmp.ge.s32.totalorder %v2796_v3, 0  ;;  %vm320_vm1 = vcmp.lt.s32.totalorder %v2796_v3, 16  ;;  %vm2919_vm2 = vcmp.ne.s32.totalorder %v402_v34, 0  ;;  %vm2927_vm3 = vmand %vm4981_vm6, %vm2899_vm14 }
  0x62   : > { %365 = vrot.lane.b32.xlu0 %v2667_v40, %s2436_s30  ;;  %v2676_v45 = vmul.f32 0.03125, %v277_v44  ;;  %vm2946_vm4 = vmand %vm319_vm0, %vm320_vm1  ;;  %vm328_vm5 = vcmp.ge.s32.totalorder %v2796_v3, 4294967295  ;;  %vm453_vm10 = vcmp.lt.s32.totalorder %v2825_v15, 49  ;;  %vm337_vm12 = vcmp.ge.s32.totalorder %v2796_v3, 4294967294 }
  0x63   : > { %v2672_v43 = vmul.f32 0.03125, %v268_v41  ;;  %v478_v34 = vsel %vm2946_vm4, 1, %v4969_v10  ;;  %vm346_vm4 = vcmp.ge.s32.totalorder %v2796_v3, 4294967293 }
  0x65   : > { %451 = vrot.lane.b32.xlu1 %v2665_v38, %s2437_s10 }
  0x66   : > { %367 = vrot.lane.b32.xlu0 %v2665_v38, %s2436_s30 }
  0x69   : > { %380 = vrot.lane.b32.xlu1 %v2672_v43, %s2436_s30 }
  0x6a   : > { %407 = vrot.lane.b32.xlu0 %v2667_v40, %s2435_s27 }
  0x6d   : > { %382 = vrot.lane.b32.xlu1 %v2676_v45, %s2436_s30  ;;  %s2451_s30 = smov 17  }
  0x6e   : > { %449 = vrot.lane.b32.xlu0 %v2667_v40, %s2437_s10 }
  0x71   : > { %424 = vrot.lane.b32.xlu1 %v2676_v45, %s2435_s27 }
  0x72   : > { %422 = vrot.lane.b32.xlu0 %v2672_v43, %s2435_s27  ;;  %s2450_s27 = smov 18  }
  0x75   : > { %466 = vrot.lane.b32.xlu1 %v2676_v45, %s2437_s10 }
  0x76   : > { %464 = vrot.lane.b32.xlu0 %v2672_v43, %s2437_s10  ;;  %s2452_s10 = smov 16  }
  0x79   : > { %493 = vrot.lane.b32.xlu1 %v2665_v38, %s2438_s16 }
  0x7a   : > { %491 = vrot.lane.b32.xlu0 %v2667_v40, %s2438_s16 }
  0x7d   : > { %508 = vrot.lane.b32.xlu1 %v2676_v45, %s2438_s16 }
  0x7e   : > { %506 = vrot.lane.b32.xlu0 %v2672_v43, %s2438_s16  ;;  %s2453_s16 = smov 15  }
  0x81   : > { %535 = vrot.lane.b32.xlu1 %v2665_v38, %s2439_s24 }
  0x82   : > { %533 = vrot.lane.b32.xlu0 %v2667_v40, %s2439_s24 }
  0x85   : > { %550 = vrot.lane.b32.xlu1 %v2676_v45, %s2439_s24 }
  0x86   : > { %548 = vrot.lane.b32.xlu0 %v2672_v43, %s2439_s24  ;;  %s2459_s24 = smov 1  }
  0x89   : > { %577 = vrot.lane.b32.xlu1 %v2665_v38, %s2440_s26 }
  0x8a   : > { %575 = vrot.lane.b32.xlu0 %v2667_v40, %s2440_s26 }
  0x8d   : > { %592 = vrot.lane.b32.xlu1 %v2676_v45, %s2440_s26 }
  0x8e   : > { %590 = vrot.lane.b32.xlu0 %v2672_v43, %s2440_s26  ;;  %s3044_s26 = sld [smem:[#allocation7 + $0x34]] }
  0x91   : > { %619 = vrot.lane.b32.xlu1 %v2665_v38, %s2441_s11 }
  0x92   : > { %617 = vrot.lane.b32.xlu0 %v2667_v40, %s2441_s11 }
  0x95   : > { %634 = vrot.lane.b32.xlu1 %v2676_v45, %s2441_s11 }
  0x96   : > { %632 = vrot.lane.b32.xlu0 %v2672_v43, %s2441_s11  ;;  %s2454_s11 = smov 14  }
  0x99   : > { %650 = vrot.lane.b32.xlu1 %v2665_v38, %s2442_s12 }
  0x9a   : > { %648 = vrot.lane.b32.xlu0 %v2667_v40, %s2442_s12 }
  0x9d   : > { %665 = vrot.lane.b32.xlu1 %v2676_v45, %s2442_s12 }
  0x9e   : > { %663 = vrot.lane.b32.xlu0 %v2672_v43, %s2442_s12  ;;  %s2455_s12 = smov 13  }
  0xa1   : > { %681 = vrot.lane.b32.xlu1 %v2665_v38, %s2443_s9 }
  0xa2   : > { %679 = vrot.lane.b32.xlu0 %v2667_v40, %s2443_s9 }
  0xa5   : > { %696 = vrot.lane.b32.xlu1 %v2676_v45, %s2443_s9 }
  0xa6   : > { %694 = vrot.lane.b32.xlu0 %v2672_v43, %s2443_s9  ;;  %s2831_s9 = sld [smem:[#allocation7]] }
  0xa9   : > { %712 = vrot.lane.b32.xlu1 %v2665_v38, %s2444_s13 }
  0xaa   : > { %710 = vrot.lane.b32.xlu0 %v2667_v40, %s2444_s13 }
  0xac   : > { %v375_v31 = vstv %s2831_s9  ;;  %s2460_s9 = smov 127  }
  0xad   : > { %727 = vrot.lane.b32.xlu1 %v2676_v45, %s2444_s13 }
  0xae   : > { %725 = vrot.lane.b32.xlu0 %v2672_v43, %s2444_s13  ;;  %s2835_s13 = sld [smem:[#allocation7 + $0x31]] }
  0xb1   : > { %743 = vrot.lane.b32.xlu1 %v2665_v38, %s2445_s14 }
  0xb2   : > { %741 = vrot.lane.b32.xlu0 %v2667_v40, %s2445_s14 }
  0xb4   : > { %v389_v37 = vstv %s2835_s13  ;;  %s3154_s13 = sld [smem:[#allocation7 + $0x5]] }
  0xb5   : > { %758 = vrot.lane.b32.xlu1 %v2676_v45, %s2445_s14 }
  0xb6   : > { %756 = vrot.lane.b32.xlu0 %v2672_v43, %s2445_s14  ;;  %s2457_s14 = smov 3  }
  0xb9   : > { %774 = vrot.lane.b32.xlu1 %v2665_v38, %s2446_s15 }
  0xba   : > { %772 = vrot.lane.b32.xlu0 %v2667_v40, %s2446_s15 }
  0xbd   : > { %789 = vrot.lane.b32.xlu1 %v2676_v45, %s2446_s15 }
  0xbe   : > { %787 = vrot.lane.b32.xlu0 %v2672_v43, %s2446_s15  ;;  %s2848_s15 = sld [smem:[#allocation2]] }
  0xc1   : > { %805 = vrot.lane.b32.xlu1 %v2665_v38, %s2447_s21 }
  0xc2   : > { %803 = vrot.lane.b32.xlu0 %v2667_v40, %s2447_s21 }
  0xc5   : > { %820 = vrot.lane.b32.xlu1 %v2676_v45, %s2447_s21 }
  0xc6   : > { %818 = vrot.lane.b32.xlu0 %v2672_v43, %s2447_s21  ;;  %s2854_s21 = sld [smem:[#allocation7 + $0x1]] }
  0xc9   : > { %836 = vrot.lane.b32.xlu1 %v2665_v38, %s2448_s23 }
  0xca   : > { %834 = vrot.lane.b32.xlu0 %v2667_v40, %s2448_s23 }
  0xcc   : > { %v417_v6 = vstv %s2854_s21  ;;  %s3221_s21 = sld [smem:[#allocation7 + $0x6]] }
  0xcd   : > { %851 = vrot.lane.b32.xlu1 %v2676_v45, %s2448_s23 }
  0xce   : > { %849 = vrot.lane.b32.xlu0 %v2672_v43, %s2448_s23  ;;  %s2911_s23 = sld [smem:[#allocation7 + $0x32]] }
  0xd1   : > { %867 = vrot.lane.b32.xlu1 %v2665_v38, %s2449_s7 }
  0xd2   : > { %865 = vrot.lane.b32.xlu0 %v2667_v40, %s2449_s7 }
  0xd3   : > { %v2731_v46 = vpop.permute.xlu1 %409 }
  0xd4   : > { %v2733_v47 = vpop.permute.xlu0 %365 }
  0xd5   : > { %882 = vrot.lane.b32.xlu1 %v2676_v45, %s2449_s7 }
  0xd6   : > { %880 = vrot.lane.b32.xlu0 %v2672_v43, %s2449_s7  ;;  %s2458_s7 = smov 2  }
  0xd7   : > { %v2737_v48 = vpop.permute.xlu1 %451 }
  0xd8   : > { %v2739_v49 = vpop.permute.xlu0 %367 }
  0xd9   : > { %898 = vrot.lane.b32.xlu1 %v2665_v38, %s2450_s27  ;;  %v370_v25 = vsel %vm369_vm8, %v2733_v47, %v2739_v49  ;;  %v371_v26 = vsel %vm369_vm8, %v2739_v49, %v2733_v47  ;;  %v436_v49 = vsel %vm312_vm13, 1, %v4969_v10  ;;  %vm338_vm13 = vcmp.lt.s32.totalorder %v2796_v3, 14 }
  0xda   : > { %896 = vrot.lane.b32.xlu0 %v2667_v40, %s2450_s27  ;;  %v373_v32 = vsel %vm2863_vm11, %v371_v26, 0.0  ;;  %v374_v33 = vsel %vm2850_vm9, %v370_v25, 0.0  ;;  %v440_v27 = vrot.slane %v436_v49, %v2812_v9  ;;  %v486_v25 = vrot.slane %v478_v34, %v2817_v12  ;;  %vm3026_vm1 = vmand %vm337_vm12, %vm338_vm13 }
  0xdb   : > { %v2743_v50 = vpop.permute.xlu1 %380  ;;  %v376_v44 = vmul.f32 %v375_v31, %v373_v32  ;;  %v377_v47 = vmul.f32 %v375_v31, %v374_v33 }
  0xdc   : > { %v2745_v51 = vpop.permute.xlu0 %407 }
  0xdd   : > { %913 = vrot.lane.b32.xlu1 %v2676_v45, %s2450_s27  ;;  %v412_v16 = vsel %vm411_vm15, %v2745_v51, %v2731_v46  ;;  %v413_v17 = vsel %vm411_vm15, %v2731_v46, %v2745_v51 }
  0xde   : > { %911 = vrot.lane.b32.xlu0 %v2672_v43, %s2450_s27  ;;  %s2954_s27 = sld [smem:[#allocation7 + $0x2]]  ;;  %v415_v32 = vsel %vm2927_vm3, %v413_v17, 0.0  ;;  %v416_v33 = vsel %vm2919_vm2, %v412_v16, 0.0 }
  0xdf   : > { %v2749_v52 = vpop.permute.xlu1 %382  ;;  %v418_v16 = vmul.f32 %v417_v6, %v415_v32  ;;  %v419_v17 = vmul.f32 %v417_v6, %v416_v33 }
  0xe0   : > { %v2751_v53 = vpop.permute.xlu0 %449  ;;  %v384_v29 = vsel %vm369_vm8, %v2743_v50, %v2749_v52  ;;  %v385_v30 = vsel %vm369_vm8, %v2749_v52, %v2743_v50  ;;  %v350_v50 = vstv %s2848_s15  ;;  %vm329_vm8 = vcmp.lt.s32.totalorder %v2796_v3, 15  ;;  %s2461_s15 = smov 126  }
  0xe1   : > { %929 = vrot.lane.b32.xlu1 %v2665_v38, %s2451_s30  ;;  %v387_v41 = vsel %vm2863_vm11, %v385_v30, 0.0  ;;  %v388_v42 = vsel %vm2850_vm9, %v384_v29, 0.0  ;;  %v444_v29 = vrot.slane %v436_v49, %v2817_v12  ;;  %v378_v46 = vadd.f32 %v376_v44, %v350_v50  ;;  %vm2986_vm11 = vmand %vm328_vm5, %vm329_vm8 }
  0xe2   : > { %927 = vrot.lane.b32.xlu0 %v2667_v40, %s2451_s30  ;;  %v390_v21 = vmul.f32 %v389_v37, %v387_v41  ;;  %v391_v24 = vmul.f32 %v389_v37, %v388_v42  ;;  %v379_v51 = vadd.f32 %v377_v47, %v350_v50  ;;  %v431_v47 = vstv %s2911_s23  ;;  %s3244_s23 = sld [smem:[#allocation7 + $0x37]] }
  0xe3   : > { %v2755_v54 = vpop.permute.xlu1 %424  ;;  %vm3004_vm0 = vcmp.ne.s32.totalorder %v444_v29, 0  ;;  %v454_v2 = vsel %vm453_vm10, %v2751_v53, %v2737_v48  ;;  %v455_v6 = vsel %vm453_vm10, %v2737_v48, %v2751_v53  ;;  %vm347_vm5 = vcmp.lt.s32.totalorder %v2796_v3, 13 }
  0xe4   : > { %v2757_v55 = vpop.permute.xlu0 %422  ;;  %v392_v41 = vadd.f32 %v390_v21, %v378_v46  ;;  %v393_v42 = vadd.f32 %v391_v24, %v379_v51  ;;  %v5033_v21 = vmov 0  ;;  %v482_v24 = vrot.slane %v478_v34, %v2812_v9  ;;  %vm3084_vm12 = vmand %vm346_vm4, %vm347_vm5 }
  0xe5   : > { %944 = vrot.lane.b32.xlu1 %v2676_v45, %s2451_s30  ;;  %v426_v30 = vsel %vm411_vm15, %v2757_v55, %v2755_v54  ;;  %v427_v31 = vsel %vm411_vm15, %v2755_v54, %v2757_v55  ;;  %vm2994_vm15 = vcmp.ne.s32.totalorder %v440_v27, 0  ;;  %v5034_v21 = vsel %vm3004_vm0, 4294967295, %v5033_v21 }
  0xe6   : > { %942 = vrot.lane.b32.xlu0 %v2672_v43, %s2451_s30  ;;  %s2956_s30 = sld [smem:[#allocation7 + $0x33]]  ;;  %v429_v49 = vsel %vm2927_vm3, %v427_v31, 0.0  ;;  %v430_v50 = vsel %vm2919_vm2, %v426_v30, 0.0  ;;  %5035 = vst [vmem:[#allocation12_spill] sm:$0xff] %v5034_v21  ;;  %v520_v27 = vsel %vm2986_vm11, 1, %v4969_v10  ;;  %v420_v51 = vadd.f32 %v418_v16, %v392_v41  ;;  %vm3036_vm3 = vmand %vm4981_vm6, %vm2994_vm15 }
  0xe7   : > { %v2761_v56 = vpop.permute.xlu1 %466  ;;  %v421_v30 = vadd.f32 %v419_v17, %v393_v42  ;;  %v432_v53 = vmul.f32 %v431_v47, %v429_v49  ;;  %v433_v31 = vmul.f32 %v431_v47, %v430_v50  ;;  %v459_v33 = vstv %s2954_s27  ;;  %s2462_s27 = smov 125  }
  0xe8   : > { %v2763_v57 = vpop.permute.xlu0 %464  ;;  %vm3057_vm8 = vcmp.ne.s32.totalorder %v482_v24, 0  ;;  %v5040_v54 = vmov 0  ;;  %v562_v47 = vsel %vm3026_vm1, 1, %v4969_v10  ;;  %v457_v49 = vsel %vm3036_vm3, %v455_v6, 0.0 }
  0xe9   : > { %960 = vrot.lane.b32.xlu1 %v2665_v38, %s2452_s10  ;;  %v468_v41 = vsel %vm453_vm10, %v2763_v57, %v2761_v56  ;;  %v469_v42 = vsel %vm453_vm10, %v2761_v56, %v2763_v57  ;;  %v5041_v54 = vsel %vm3057_vm8, 4294967295, %v5040_v54  ;;  %v458_v50 = vsel %vm3004_vm0, %v454_v2, 0.0  ;;  %vm3103_vm13 = vmand %vm4981_vm6, %vm3057_vm8 }
  0xea   : > { %958 = vrot.lane.b32.xlu0 %v2667_v40, %s2452_s10  ;;  %5042 = vst [vmem:[#allocation13_spill] sm:$0xff] %v5041_v54  ;;  %vm495_vm10 = vcmp.lt.s32.totalorder %v2825_v15, 48  ;;  %v524_v56 = vrot.slane %v520_v27, %v2812_v9  ;;  %v434_v16 = vadd.f32 %v432_v53, %v420_v51  ;;  %v435_v17 = vadd.f32 %v433_v31, %v421_v30 }
  0xeb   : > { %v2769_v58 = vpop.permute.xlu1 %493  ;;  %vm3075_vm11 = vcmp.ne.s32.totalorder %v486_v25, 0  ;;  %v5044_v24 = vmov 0  ;;  %v471_v10 = vsel %vm3036_vm3, %v469_v42, 0.0  ;;  %v472_v25 = vsel %vm3004_vm0, %v468_v41, 0.0 }
  0xec   : > { %v2771_v59 = vpop.permute.xlu0 %491  ;;  %v473_v34 = vstv %s2956_s30  ;;  %v5045_v24 = vsel %vm3075_vm11, 4294967295, %v5044_v24  ;;  %v528_v51 = vrot.slane %v520_v27, %v2817_v12  ;;  %v566_v30 = vrot.slane %v562_v47, %v2812_v9  ;;  %s3291_s30 = sld [smem:[#allocation7 + $0x38]] }
  0xed   : > { %975 = vrot.lane.b32.xlu1 %v2676_v45, %s2452_s10  ;;  %v460_v3 = vmul.f32 %v459_v33, %v457_v49  ;;  %v461_v53 = vmul.f32 %v459_v33, %v458_v50  ;;  %v496_v27 = vsel %vm495_vm10, %v2771_v59, %v2769_v58  ;;  %v497_v31 = vsel %vm495_vm10, %v2769_v58, %v2771_v59 }
  0xee   : > { %973 = vrot.lane.b32.xlu0 %v2672_v43, %s2452_s10  ;;  %vm3116_vm1 = vcmp.ne.s32.totalorder %v524_v56, 0  ;;  %v5051_v33 = vmov 0  ;;  %vm537_vm3 = vcmp.lt.s32.totalorder %v2825_v15, 47  ;;  %v570_v41 = vrot.slane %v562_v47, %v2817_v12 }
  0xef   : > { %v2777_v60 = vpop.permute.xlu1 %508  ;;  %v5052_v33 = vsel %vm3116_vm1, 4294967295, %v5051_v33  ;;  %v5054_v42 = vmov 0   ;;  %v462_v58 = vadd.f32 %v460_v3, %v434_v16  ;;  %v463_v59 = vadd.f32 %v461_v53, %v435_v17 }
  0xf0   : > { %v2779_v61 = vpop.permute.xlu0 %506  ;;  %5053 = vst [vmem:[#allocation16_spill] sm:$0xff] %v5052_v33  ;;  %v3125_v49 = vsel %vm3084_vm12, 1, %v5054_v42  ;;  %v474_v54 = vmul.f32 %v473_v34, %v471_v10  ;;  %v500_v21 = vsel %vm3075_vm11, %v496_v27, 0.0  ;;  %v515_v10 = vstv %s3044_s26  ;;  %s2463_s26 = smov 115  }
  0xf1   : > { %991 = vrot.lane.b32.xlu1 %v2665_v38, %s2453_s16  ;;  %v510_v47 = vsel %vm495_vm10, %v2779_v61, %v2777_v60  ;;  %v511_v16 = vsel %vm495_vm10, %v2777_v60, %v2779_v61  ;;  %vm3145_vm4 = vcmp.ne.s32.totalorder %v528_v51, 0  ;;  %vm3150_vm5 = vcmp.ne.s32.totalorder %v566_v30, 0  ;;  %vm3161_vm10 = vmand %vm4981_vm6, %vm3116_vm1 }
  0xf2   : > { %989 = vrot.lane.b32.xlu0 %v2667_v40, %s2453_s16  ;;  %v5058_v6 = vmov 0  ;;  %v608_v51 = vrot.slane %v3125_v49, %v2812_v9  ;;  %v513_v27 = vsel %vm3103_vm13, %v511_v16, 0.0  ;;  %vm3187_vm12 = vcmp.ne.s32.totalorder %v570_v41, 0 }
  0xf3   : > { %v2783_v62 = vpop.permute.xlu1 %535  ;;  %v5059_v6 = vsel %vm3150_vm5, 4294967295, %v5058_v6  ;;  %vm5066_vm1 = vcmp.lt.s32.totalorder %v2825_v15, 46  ;;  %v612_v16 = vrot.slane %v3125_v49, %v2817_v12 }
  0xf4   : > { %v2785_v63 = vpop.permute.xlu0 %533 }
  0xf5   : > { %1006 = vrot.lane.b32.xlu1 %v2676_v45, %s2453_s16  ;;  %v538_v61 = vsel %vm537_vm3, %v2785_v63, %v2783_v62 }
  0xf6   : > { %1004 = vrot.lane.b32.xlu0 %v2672_v43, %s2453_s16  ;;  %s2980_s16 = sld [smem:[#allocation7 + $0x3]] }
  0xf7   : > { %v2789_v0 = vpop.permute.xlu1 %550 }
  0xf8   : > { %v2791_v1 = vpop.permute.xlu0 %548 }
  0xf9   : > { %1022 = vrot.lane.b32.xlu1 %v2665_v38, %s2454_s11 }
  0xfa   : > { %1020 = vrot.lane.b32.xlu0 %v2667_v40, %s2454_s11 }
  0xfb   : > { %v2800_v4 = vpop.permute.xlu1 %577 }
  0xfc   : > { %v2804_v5 = vpop.permute.xlu0 %575  ;;  %v501_v29 = vstv %s2980_s16  ;;  %s3309_s16 = sld [smem:[#allocation7 + $0x8]] }
  0xfd   : > { %1037 = vrot.lane.b32.xlu1 %v2676_v45, %s2454_s11  ;;  %v503_v53 = vmul.f32 %v501_v29, %v500_v21 }
  0xfe   : > { %1035 = vrot.lane.b32.xlu0 %v2672_v43, %s2454_s11  ;;  %s3061_s11 = sld [smem:[#allocation7 + $0x4]] }
  0xff   : > { %v2808_v7 = vpop.permute.xlu1 %592 }
 0x100   : > { %v2810_v8 = vpop.permute.xlu0 %590 }
 0x101   : > { %1053 = vrot.lane.b32.xlu1 %v2665_v38, %s2455_s12 }
 0x102   : > { %1051 = vrot.lane.b32.xlu0 %v2667_v40, %s2455_s12 }
 0x103   : > { %v2821_v13 = vpop.permute.xlu1 %619 }
 0x104   : > { %v2823_v14 = vpop.permute.xlu0 %617  ;;  %v543_v17 = vstv %s3061_s11  ;;  %s3361_s11 = sld [smem:[#allocation7 + $0x9]] }
 0x105   : > { %1068 = vrot.lane.b32.xlu1 %v2676_v45, %s2455_s12 }
 0x106   : > { %1066 = vrot.lane.b32.xlu0 %v2672_v43, %s2455_s12  ;;  %s3095_s12 = sld [smem:[#allocation7 + $0x35]] }
 0x107   : > { %v2833_v18 = vpop.permute.xlu1 %634 }
 0x108   : > { %v2837_v19 = vpop.permute.xlu0 %632 }
 0x109   : > { %1084 = vrot.lane.b32.xlu1 %v2665_v38, %s2457_s14 }
 0x10a   : > { %1082 = vrot.lane.b32.xlu0 %v2667_v40, %s2457_s14 }
 0x10b   : > { %v2857_v23 = vpop.permute.xlu1 %650 }
 0x10c   : > { %v2877_v28 = vpop.permute.xlu0 %648  ;;  %v557_v33 = vstv %s3095_s12  ;;  %s3386_s12 = sld [smem:[#allocation7 + $0x3a]] }
 0x10d   : > { %1099 = vrot.lane.b32.xlu1 %v2676_v45, %s2457_s14 }
 0x10e   : > { %1097 = vrot.lane.b32.xlu0 %v2672_v43, %s2457_s14  ;;  %s3182_s14 = sld [smem:[#allocation7 + $0x36]] }
 0x10f   : > { %v2897_v35 = vpop.permute.xlu1 %665 }
 0x110   : > { %v2905_v39 = vpop.permute.xlu0 %663 }
 0x111   : > { %1115 = vrot.lane.b32.xlu1 %v2665_v38, %s2458_s7 }
 0x112   : > { %1113 = vrot.lane.b32.xlu0 %v2667_v40, %s2458_s7 }
 0x113   : > { %v2932_v11 = vpop.permute.xlu1 %681 }
 0x114   : > { %v2950_v26 = vpop.permute.xlu0 %679 }
 0x115   : > { %1130 = vrot.lane.b32.xlu1 %v2676_v45, %s2458_s7 }
 0x116   : > { %1128 = vrot.lane.b32.xlu0 %v2672_v43, %s2458_s7  ;;  %s3264_s7 = sld [smem:[#allocation7 + $0x7]] }
 0x117   : > { %v2978_v37 = vpop.permute.xlu1 %696 }
 0x118   : > { %v2992_v55 = vpop.permute.xlu0 %694 }
 0x119   : > { %1146 = vrot.lane.b32.xlu1 %v2665_v38, %s2459_s24 }
 0x11a   : > { %1144 = vrot.lane.b32.xlu0 %v2667_v40, %s2459_s24 }
 0x11b   : > { %v3030_v46 = vpop.permute.xlu1 %712 }
 0x11c   : > { %v3040_v32 = vpop.permute.xlu0 %710 }
 0x11d   : > { %1161 = vrot.lane.b32.xlu1 %v2676_v45, %s2459_s24 }
 0x11e   : > { %1159 = vrot.lane.b32.xlu0 %v2672_v43, %s2459_s24  ;;  %s3344_s24 = sld [smem:[#allocation7 + $0x39]] }
 0x11f   : > { %v3073_v57 = vpop.permute.xlu1 %727 }
 0x120   : > { %5043 = vst [vmem:[#allocation14_spill] sm:$0xff] %v3073_v57  ;;  %v3088_v2 = vpop.permute.xlu0 %725  ;;  %v499_v57 = vsel %vm3103_vm13, %v497_v31, 0.0  ;;  %v514_v31 = vsel %vm3075_vm11, %v510_v47, 0.0  ;;  %vm3209_vm13 = vmand %vm4981_vm6, %vm3150_vm5  ;;  %vm3227_vm6 = vcmp.ne.s32.totalorder %v608_v51, 0  ;;  %vm5077_vm5 = vcmp.lt.s32.totalorder %v2825_v15, 45 }
 0x121   : > { %5048 = vst [vmem:[#allocation15_spill] sm:$0xff] %v3088_v2  ;;  %1195 = vrot.lane.b32.xlu1 %v2665_v38, %s2460_s9  ;;  %v475_v2 = vmul.f32 %v473_v34, %v472_v25  ;;  %v5056_v34 = vmov 0  ;;  %v539_v25 = vsel %vm537_vm3, %v2783_v62, %v2785_v63  ;;  %v502_v3 = vmul.f32 %v501_v29, %v499_v57 }
 0x122   : > { %1193 = vrot.lane.b32.xlu0 %v2667_v40, %s2460_s9  ;;  %v5057_v34 = vsel %vm3145_vm4, 4294967295, %v5056_v34  ;;  %v476_v62 = vadd.f32 %v474_v54, %v462_v58  ;;  %v541_v21 = vsel %vm3161_vm10, %v539_v25, 0.0  ;;  %v542_v57 = vsel %vm3145_vm4, %v538_v61, 0.0 }
 0x123   : > { %v3127_v50 = vpop.permute.xlu1 %743  ;;  %v477_v63 = vadd.f32 %v475_v2, %v463_v59  ;;  %v552_v54 = vsel %vm537_vm3, %v2791_v1, %v2789_v0  ;;  %v553_v29 = vsel %vm537_vm3, %v2789_v0, %v2791_v1  ;;  %v516_v2 = vmul.f32 %v515_v10, %v513_v27  ;;  %vm5067_vm3 = vmmov %vm5066_vm1 }
 0x124   : > { %v3129_v56 = vpop.permute.xlu0 %741  ;;  %v517_v48 = vmul.f32 %v515_v10, %v514_v31  ;;  %v580_v58 = vsel %vm5066_vm1, %v2804_v5, %v2800_v4  ;;  %v581_v0 = vsel %vm5067_vm3, %v2800_v4, %v2804_v5  ;;  %v504_v59 = vadd.f32 %v502_v3, %v476_v62  ;;  %vm5071_vm3 = vmmov %vm5066_vm1 }
 0x125   : > { %5055 = vst [vmem:[#allocation17_spill] sm:$0xff] %v3129_v56  ;;  %1210 = vrot.lane.b32.xlu1 %v2676_v45, %s2460_s9  ;;  %v5062_v56 = vmov 0  ;;  %v505_v47 = vadd.f32 %v503_v53, %v477_v63  ;;  %v5068_v10 = vmov 0  ;;  %v544_v25 = vmul.f32 %v543_v17, %v541_v21 }
 0x126   : > { %1208 = vrot.lane.b32.xlu0 %v2672_v43, %s2460_s9  ;;  %v5063_v56 = vsel %vm3187_vm12, 4294967295, %v5062_v56  ;;  %v5069_v10 = vsel %vm3227_vm6, 4294967295, %v5068_v10  ;;  %v545_v27 = vmul.f32 %v543_v17, %v542_v57  ;;  %v555_v4 = vsel %vm3161_vm10, %v553_v29, 0.0  ;;  %vm5070_vm10 = vmmov %vm5066_vm1  ;;  %s3405_s9 = sld [smem:[#allocation7 + $0xa]] }
 0x127   : > { %v3176_v30 = vpop.permute.xlu1 %758  ;;  %v556_v5 = vsel %vm3145_vm4, %v552_v54, 0.0  ;;  %v585_v3 = vstv %s3154_s13  ;;  %v583_v12 = vsel %vm3209_vm13, %v581_v0, 0.0  ;;  %v584_v49 = vsel %vm3187_vm12, %v580_v58, 0.0  ;;  %s2464_s13 = smov 114  }
 0x128   : > { %v3184_v42 = vpop.permute.xlu0 %756  ;;  %v518_v17 = vadd.f32 %v516_v2, %v504_v59  ;;  %v519_v60 = vadd.f32 %v517_v48, %v505_v47  ;;  %v594_v51 = vsel %vm5070_vm10, %v2810_v8, %v2808_v7  ;;  %v595_v53 = vsel %vm5071_vm3, %v2808_v7, %v2810_v8 }
 0x129   : > { %1226 = vrot.lane.b32.xlu1 %v2665_v38, %s2461_s15  ;;  %v558_v62 = vmul.f32 %v557_v33, %v555_v4  ;;  %v559_v63 = vmul.f32 %v557_v33, %v556_v5  ;;  %v599_v21 = vstv %s3182_s14  ;;  %vm3258_vm1 = vcmp.ne.s32.totalorder %v612_v16, 0  ;;  %s3430_s14 = sld [smem:[#allocation7 + $0x3b]] }
 0x12a   : > { %1224 = vrot.lane.b32.xlu0 %v2667_v40, %s2461_s15  ;;  %v546_v29 = vadd.f32 %v544_v25, %v518_v17  ;;  %v547_v2 = vadd.f32 %v545_v27, %v519_v60  ;;  %v586_v48 = vmul.f32 %v585_v3, %v583_v12  ;;  %v587_v58 = vmul.f32 %v585_v3, %v584_v49 }
 0x12b   : > { %v3223_v1 = vpop.permute.xlu1 %774  ;;  %v597_v7 = vsel %vm3209_vm13, %v595_v53, 0.0  ;;  %v598_v8 = vsel %vm3187_vm12, %v594_v51, 0.0  ;;  %vm5074_vm10 = vcmp.ge.s32.totalorder %v2825_v15, 48  ;;  %v622_v0 = vsel %vm5077_vm5, %v2823_v14, %v2821_v13  ;;  %vm5078_vm13 = vmmov %vm5077_vm5 }
 0x12c   : > { %v3231_v61 = vpop.permute.xlu0 %772  ;;  %vm3275_vm3 = vmand %vm5074_vm10, %vm3227_vm6  ;;  %v623_v41 = vsel %vm5078_vm13, %v2821_v13, %v2823_v14  ;;  %v627_v59 = vstv %s3221_s21  ;;  %vm4986_vm12 = vcmp.ge.s32.totalorder %v2825_v15, 32  ;;  %vm652_vm10 = vcmp.lt.s32.totalorder %v2825_v15, 35  ;;  %s3483_s21 = sld [smem:[#allocation7 + $0x3c]] }
 0x12d   : > { %1241 = vrot.lane.b32.xlu1 %v2676_v45, %s2461_s15  ;;  %v560_v16 = vadd.f32 %v558_v62, %v546_v29  ;;  %v561_v25 = vadd.f32 %v559_v63, %v547_v2  ;;  %v636_v27 = vsel %vm5077_vm5, %v2837_v19, %v2833_v18  ;;  %vm5079_vm13 = vmmov %vm5077_vm5  ;;  %v600_v4 = vmul.f32 %v599_v21, %v597_v7 }
 0x12e   : > { %1239 = vrot.lane.b32.xlu0 %v2672_v43, %s2461_s15  ;;  %v637_v13 = vsel %vm5079_vm13, %v2833_v18, %v2837_v19  ;;  %v601_v5 = vmul.f32 %v599_v21, %v598_v8  ;;  %v625_v3 = vsel %vm3275_vm3, %v623_v41, 0.0  ;;  %v626_v12 = vsel %vm3258_vm1, %v622_v0, 0.0  ;;  %vm3322_vm5 = vmand %vm4986_vm12, %vm2840_vm7  ;;  %s3466_s15 = sld [smem:[#allocation7 + $0xb]] }
 0x12f   : > { %v3255_v31 = vpop.permute.xlu1 %789  ;;  %v588_v49 = vadd.f32 %v586_v48, %v560_v16  ;;  %v589_v17 = vadd.f32 %v587_v58, %v561_v25  ;;  %v641_v60 = vstv %s3244_s23  ;;  %v639_v18 = vsel %vm3275_vm3, %v637_v13, 0.0  ;;  %vm3413_vm13 = vmand %vm4986_vm12, %vm2994_vm15  ;;  %v5090_v13 = vld [vmem:[#allocation15_spill] sm:$0xff]  ;;  %s2465_s23 = smov 113  }
 0x130   : > { %v3262_v54 = vpop.permute.xlu0 %787  ;;  %v640_v19 = vsel %vm3258_vm1, %v636_v27, 0.0  ;;  %v653_v53 = vsel %vm652_vm10, %v2877_v28, %v2857_v23  ;;  %v654_v62 = vsel %vm652_vm10, %v2857_v23, %v2877_v28  ;;  %v628_v21 = vmul.f32 %v627_v59, %v625_v3 }
 0x131   : > { %1257 = vrot.lane.b32.xlu1 %v2665_v38, %s2462_s27  ;;  %v629_v29 = vmul.f32 %v627_v59, %v626_v12  ;;  %v667_v2 = vsel %vm652_vm10, %v2905_v39, %v2897_v35  ;;  %v668_v48 = vsel %vm652_vm10, %v2897_v35, %v2905_v39  ;;  %v602_v23 = vadd.f32 %v600_v4, %v588_v49  ;;  %vm3369_vm10 = vmand %vm4986_vm12, %vm2899_vm14 }
 0x132   : > { %1255 = vrot.lane.b32.xlu0 %v2667_v40, %s2462_s27  ;;  %v603_v28 = vadd.f32 %v601_v5, %v589_v17  ;;  %v658_v7 = vstv %s3264_s7  ;;  %vm683_vm3 = vcmp.lt.s32.totalorder %v2825_v15, 34  ;;  %v642_v8 = vmul.f32 %v641_v60, %v639_v18  ;;  %s3498_s7 = sld [smem:[#allocation7 + $0xc]] }
 0x133   : > { %v3293_v47 = vpop.permute.xlu1 %805  ;;  %v643_v33 = vmul.f32 %v641_v60, %v640_v19  ;;  %v656_v0 = vsel %vm3322_vm5, %v654_v62, 0.0  ;;  %v657_v35 = vsel %vm2850_vm9, %v653_v53, 0.0  ;;  %v672_v39 = vstv %s3291_s30  ;;  %s3528_s30 = sld [smem:[#allocation7 + $0xd]] }
 0x134   : > { %v3303_v14 = vpop.permute.xlu0 %803  ;;  %v670_v41 = vsel %vm3322_vm5, %v668_v48, 0.0  ;;  %v671_v59 = vsel %vm2850_vm9, %v667_v2, 0.0  ;;  %v630_v25 = vadd.f32 %v628_v21, %v602_v23  ;;  %v631_v27 = vadd.f32 %v629_v29, %v603_v28 }
 0x135   : > { %1272 = vrot.lane.b32.xlu1 %v2676_v45, %s2462_s27  ;;  %v684_v4 = vsel %vm683_vm3, %v2950_v26, %v2932_v11  ;;  %v685_v5 = vsel %vm683_vm3, %v2932_v11, %v2950_v26  ;;  %v659_v12 = vmul.f32 %v658_v7, %v656_v0  ;;  %v660_v49 = vmul.f32 %v658_v7, %v657_v35 }
 0x136   : > { %1270 = vrot.lane.b32.xlu0 %v2672_v43, %s2462_s27  ;;  %v689_v17 = vstv %s3309_s16  ;;  %v644_v60 = vadd.f32 %v642_v8, %v630_v25  ;;  %v645_v18 = vadd.f32 %v643_v33, %v631_v27  ;;  %v673_v19 = vmul.f32 %v672_v39, %v670_v41  ;;  %v5089_v27 = vld [vmem:[#allocation14_spill] sm:$0xff]  ;;  %s3526_s27 = sld [smem:[#allocation7 + $0x3d]]  ;;  %s2466_s16 = smov 112  }
 0x137   : > { %v3334_v63 = vpop.permute.xlu1 %820  ;;  %v674_v51 = vmul.f32 %v672_v39, %v671_v59  ;;  %v687_v11 = vsel %vm3369_vm10, %v685_v5, 0.0  ;;  %v688_v26 = vsel %vm2919_vm2, %v684_v4, 0.0  ;;  %v698_v53 = vsel %vm683_vm3, %v2992_v55, %v2978_v37 }
 0x138   : > { %v3346_v58 = vpop.permute.xlu0 %818  ;;  %v699_v62 = vsel %vm683_vm3, %v2978_v37, %v2992_v55  ;;  %v703_v29 = vstv %s3344_s24  ;;  %v661_v48 = vadd.f32 %v659_v12, %v644_v60  ;;  %v662_v23 = vadd.f32 %v660_v49, %v645_v18  ;;  %v5093_v60 = vld [vmem:[#allocation13_spill] sm:$0xff]  ;;  %s3578_s24 = sld [smem:[#allocation7 + $0x3e]] }
 0x139   : > { %1288 = vrot.lane.b32.xlu1 %v2665_v38, %s2463_s26  ;;  %vm5086_vm3 = vcmp.lt.s32.totalorder %v2825_v15, 33  ;;  %v690_v7 = vmul.f32 %v689_v17, %v687_v11  ;;  %v691_v8 = vmul.f32 %v689_v17, %v688_v26  ;;  %v701_v33 = vsel %vm3369_vm10, %v699_v62, 0.0 }
 0x13a   : > { %1286 = vrot.lane.b32.xlu0 %v2667_v40, %s2463_s26  ;;  %v715_v37 = vsel %vm5086_vm3, %v3040_v32, %v3030_v46  ;;  %vm5087_vm5 = vmmov %vm5086_vm3  ;;  %v702_v0 = vsel %vm2919_vm2, %v698_v53, 0.0  ;;  %v675_v35 = vadd.f32 %v673_v19, %v661_v48  ;;  %v676_v39 = vadd.f32 %v674_v51, %v662_v23  ;;  %v5096_v19 = vld [vmem:[#allocation17_spill] sm:$0xff] }
 0x13b   : > { %v3363_v16 = vpop.permute.xlu1 %836  ;;  %v716_v55 = vsel %vm5087_vm5, %v3030_v46, %v3040_v32  ;;  %v720_v41 = vstv %s3361_s11  ;;  %v719_v25 = vsel %vm3004_vm0, %v715_v37, 0.0  ;;  %vm5091_vm10 = vmmov %vm5086_vm3  ;;  %v704_v49 = vmul.f32 %v703_v29, %v701_v33  ;;  %s3621_s11 = sld [smem:[#allocation7 + $0x3f]] }
 0x13c   : > { %v3381_v3 = vpop.permute.xlu0 %834  ;;  %v718_v32 = vsel %vm3413_vm13, %v716_v55, 0.0  ;;  %v729_v4 = vsel %vm5091_vm10, %v5090_v13, %v5089_v27  ;;  %vm5092_vm5 = vmmov %vm5086_vm3  ;;  %v705_v17 = vmul.f32 %v703_v29, %v702_v0  ;;  %vm5097_vm10 = vcmp.lt.s32.totalorder %v2825_v15, 32 }
 0x13d   : > { %1303 = vrot.lane.b32.xlu1 %v2676_v45, %s2463_s26  ;;  %v730_v5 = vsel %vm5092_vm5, %v5089_v27, %v5090_v13  ;;  %vm3454_vm3 = vmand %vm4986_vm12, %vm3057_vm8  ;;  %v746_v51 = vsel %vm5097_vm10, %v5096_v19, %v3127_v50  ;;  %v692_v26 = vadd.f32 %v690_v7, %v675_v35  ;;  %v693_v53 = vadd.f32 %v691_v8, %v676_v39 }
 0x13e   : > { %1301 = vrot.lane.b32.xlu0 %v2672_v43, %s2463_s26  ;;  %vm5098_vm5 = vmmov %vm5097_vm10  ;;  %v734_v62 = vstv %s3386_s12  ;;  %v721_v29 = vmul.f32 %v720_v41, %v718_v32  ;;  %v722_v48 = vmul.f32 %v720_v41, %v719_v25  ;;  %v732_v23 = vsel %vm3413_vm13, %v730_v5, 0.0  ;;  %s3597_s26 = sld [smem:[#allocation7 + $0xe]]  ;;  %s2467_s12 = smov 111  }
 0x13f   : > { %v3401_v21 = vpop.permute.xlu1 %851  ;;  %v747_v11 = vsel %vm5098_vm5, %v3127_v50, %v5096_v19  ;;  %v733_v37 = vsel %vm3004_vm0, %v729_v4, 0.0  ;;  %v751_v50 = vstv %s3405_s9  ;;  %v750_v7 = vsel %vm3075_vm11, %v746_v51, 0.0  ;;  %vm5099_vm13 = vmmov %vm5098_vm5  ;;  %s3640_s9 = sld [smem:[#allocation7 + $0xf]] }
 0x140   : > { %v3407_v2 = vpop.permute.xlu0 %849  ;;  %v749_v33 = vsel %vm3454_vm3, %v747_v11, 0.0  ;;  %vm776_vm10 = vcmp.lt.s32.totalorder %v2825_v15, 31  ;;  %v706_v28 = vadd.f32 %v704_v49, %v692_v26  ;;  %v707_v0 = vadd.f32 %v705_v17, %v693_v53  ;;  %v5100_v17 = vld [vmem:[#allocation16_spill] sm:$0xff] }
 0x141   : > { %1319 = vrot.lane.b32.xlu1 %v2665_v38, %s2464_s13  ;;  %v760_v35 = vsel %vm5099_vm13, %v3184_v42, %v3176_v30  ;;  %v761_v39 = vsel %vm5098_vm5, %v3176_v30, %v3184_v42  ;;  %v735_v41 = vmul.f32 %v734_v62, %v732_v23  ;;  %v736_v32 = vmul.f32 %v734_v62, %v733_v37 }
 0x142   : > { %1317 = vrot.lane.b32.xlu0 %v2667_v40, %s2464_s13  ;;  %v765_v25 = vstv %s3430_s14  ;;  %v723_v27 = vadd.f32 %v721_v29, %v706_v28  ;;  %v724_v13 = vadd.f32 %v722_v48, %v707_v0  ;;  %v752_v4 = vmul.f32 %v751_v50, %v749_v33  ;;  %s3700_s14 = sld [smem:[#allocation7 + $0x10]] }
 0x143   : > { %v3434_v46 = vpop.permute.xlu1 %867  ;;  %v753_v5 = vmul.f32 %v751_v50, %v750_v7  ;;  %v763_v30 = vsel %vm3454_vm3, %v761_v39, 0.0  ;;  %v764_v42 = vsel %vm3075_vm11, %v760_v35, 0.0  ;;  %vm5101_vm13 = vnez %v5100_v17 }
 0x144   : > { %v3448_v12 = vpop.permute.xlu0 %865  ;;  %vm3510_vm5 = vmand %vm4986_vm12, %vm5101_vm13  ;;  %v777_v51 = vsel %vm776_vm10, %v3231_v61, %v3223_v1  ;;  %v778_v18 = vsel %vm776_vm10, %v3223_v1, %v3231_v61  ;;  %v782_v26 = vstv %s3466_s15  ;;  %v737_v53 = vadd.f32 %v735_v41, %v723_v27  ;;  %s2468_s15 = smov 110  }
 0x145   : > { %1334 = vrot.lane.b32.xlu1 %v2676_v45, %s2464_s13  ;;  %v738_v62 = vadd.f32 %v736_v32, %v724_v13  ;;  %v791_v29 = vsel %vm776_vm10, %v3262_v54, %v3255_v31  ;;  %v792_v1 = vsel %vm776_vm10, %v3255_v31, %v3262_v54  ;;  %v766_v61 = vmul.f32 %v765_v25, %v763_v30 }
 0x146   : > { %1332 = vrot.lane.b32.xlu0 %v2672_v43, %s2464_s13  ;;  %v767_v48 = vmul.f32 %v765_v25, %v764_v42  ;;  %v780_v23 = vsel %vm3510_vm5, %v778_v18, 0.0  ;;  %v781_v37 = vsel %vm3145_vm4, %v777_v51, 0.0  ;;  %v754_v33 = vadd.f32 %v752_v4, %v737_v53  ;;  %s3665_s13 = sld [smem:[#allocation7 + $0x40]] }
 0x147   : > { %v3475_v55 = vpop.permute.xlu1 %882  ;;  %v755_v7 = vadd.f32 %v753_v5, %v738_v62  ;;  %v796_v28 = vstv %s3483_s21  ;;  %v794_v31 = vsel %vm3510_vm5, %v792_v1, 0.0  ;;  %v795_v54 = vsel %vm3145_vm4, %v791_v29, 0.0  ;;  %s3718_s21 = sld [smem:[#allocation7 + $0x41]] }
 0x148   : > { %v3485_v8 = vpop.permute.xlu0 %880  ;;  %vm5104_vm10 = vnez %v5059_v6  ;;  %vm5107_vm13 = vcmp.lt.s32.totalorder %v2825_v15, 30  ;;  %v783_v32 = vmul.f32 %v782_v26, %v780_v23  ;;  %v784_v25 = vmul.f32 %v782_v26, %v781_v37 }
 0x149   : > { %1350 = vrot.lane.b32.xlu1 %v2665_v38, %s2465_s23  ;;  %vm3557_vm3 = vmand %vm4986_vm12, %vm5104_vm10  ;;  %v808_v39 = vsel %vm5107_vm13, %v3303_v14, %v3293_v47  ;;  %v813_v4 = vstv %s3498_s7  ;;  %v797_v30 = vmul.f32 %v796_v28, %v794_v31  ;;  %v798_v42 = vmul.f32 %v796_v28, %v795_v54  ;;  %s3760_s7 = sld [smem:[#allocation7 + $0x42]] }
 0x14a   : > { %1348 = vrot.lane.b32.xlu0 %v2667_v40, %s2465_s23  ;;  %vm5108_vm5 = vmmov %vm5107_vm13  ;;  %v827_v51 = vstv %s3526_s27  ;;  %v844_v53 = vstv %s3528_s30  ;;  %s3776_s27 = sld [smem:[#allocation7 + $0x12]]  ;;  %s2469_s30 = smov 109  }
 0x14b   : > { %v3500_v49 = vpop.permute.xlu1 %898  ;;  %v809_v41 = vsel %vm5108_vm5, %v3293_v47, %v3303_v14  ;;  %vm5109_vm12 = vmmov %vm5108_vm5  ;;  %v768_v47 = vadd.f32 %v766_v61, %v754_v33  ;;  %v769_v14 = vadd.f32 %v767_v48, %v755_v7 }
 0x14c   : > { %v3522_v11 = vpop.permute.xlu0 %896  ;;  %v822_v27 = vsel %vm5109_vm12, %v3346_v58, %v3334_v63  ;;  %vm5110_vm13 = vmmov %vm5108_vm5  ;;  %v811_v19 = vsel %vm3557_vm3, %v809_v41, 0.0  ;;  %vm5111_vm12 = vnez %v5063_v56 }
 0x14d   : > { %1365 = vrot.lane.b32.xlu1 %v2676_v45, %s2465_s23  ;;  %v823_v13 = vsel %vm5110_vm13, %v3334_v63, %v3346_v58  ;;  %v812_v63 = vsel %vm5111_vm12, %v808_v39, 0.0  ;;  %v826_v26 = vsel %vm5111_vm12, %v822_v27, 0.0  ;;  %v785_v62 = vadd.f32 %v783_v32, %v768_v47 }
 0x14e   : > { %1363 = vrot.lane.b32.xlu0 %v2672_v43, %s2465_s23  ;;  %v825_v18 = vsel %vm3557_vm3, %v823_v13, 0.0  ;;  %v786_v29 = vadd.f32 %v784_v25, %v769_v14  ;;  %vm5112_vm13 = vcmp.ge.s32.totalorder %v2825_v15, 32  ;;  %vm5115_vm3 = vcmp.lt.s32.totalorder %v2825_v15, 29  ;;  %s3734_s23 = sld [smem:[#allocation7 + $0x11]] }
 0x14f   : > { %v3544_v50 = vpop.permute.xlu1 %913  ;;  %vm3604_vm5 = vmand %vm5112_vm13, %vm3227_vm6  ;;  %v839_v61 = vsel %vm5115_vm3, %v3381_v3, %v3363_v16  ;;  %v814_v23 = vmul.f32 %v813_v4, %v811_v19  ;;  %v815_v37 = vmul.f32 %v813_v4, %v812_v63  ;;  %vm304_vm13 = vcmp.ge.s32.totalorder %v2825_v15, 16 }
 0x150   : > { %v3547_v0 = vpop.permute.xlu0 %911  ;;  %vm5116_vm12 = vmmov %vm5115_vm3  ;;  %v799_v7 = vadd.f32 %v797_v30, %v785_v62  ;;  %v800_v28 = vadd.f32 %v798_v42, %v786_v29  ;;  %v828_v31 = vmul.f32 %v827_v51, %v825_v18  ;;  %v829_v54 = vmul.f32 %v827_v51, %v826_v26 }
 0x151   : > { %1381 = vrot.lane.b32.xlu1 %v2665_v38, %s2466_s16  ;;  %v840_v48 = vsel %vm5116_vm12, %v3363_v16, %v3381_v3  ;;  %v843_v3 = vsel %vm3258_vm1, %v839_v61, 0.0  ;;  %vm5117_vm12 = vmmov %vm5115_vm3  ;;  %v854_v41 = vsel %vm5115_vm3, %v3401_v21, %v3407_v2  ;;  %v858_v32 = vstv %s3578_s24  ;;  %s3824_s24 = sld [smem:[#allocation7 + $0x13]] }
 0x152   : > { %1379 = vrot.lane.b32.xlu0 %v2667_v40, %s2466_s16  ;;  %v842_v16 = vsel %vm3604_vm5, %v840_v48, 0.0  ;;  %v853_v39 = vsel %vm5117_vm12, %v3407_v2, %v3401_v21  ;;  %v816_v25 = vadd.f32 %v814_v23, %v799_v7  ;;  %v817_v27 = vadd.f32 %v815_v37, %v800_v28  ;;  %vm3647_vm12 = vmand %vm304_vm13, %vm2840_vm7 }
 0x153   : > { %v3583_v5 = vpop.permute.xlu1 %929  ;;  %vm5120_vm3 = vcmp.lt.s32.totalorder %v2825_v15, 19  ;;  %v845_v14 = vmul.f32 %v844_v53, %v842_v16  ;;  %v846_v4 = vmul.f32 %v844_v53, %v843_v3  ;;  %v856_v30 = vsel %vm3604_vm5, %v854_v41, 0.0 }
 0x154   : > { %v3589_v58 = vpop.permute.xlu0 %927  ;;  %v870_v21 = vsel %vm5120_vm3, %v3448_v12, %v3434_v46  ;;  %vm5121_vm6 = vmmov %vm5120_vm3  ;;  %v857_v42 = vsel %vm3258_vm1, %v853_v39, 0.0  ;;  %v830_v63 = vadd.f32 %v828_v31, %v816_v25  ;;  %v831_v51 = vadd.f32 %v829_v54, %v817_v27 }
 0x155   : > { %1396 = vrot.lane.b32.xlu1 %v2676_v45, %s2466_s16  ;;  %v871_v2 = vsel %vm5121_vm6, %v3434_v46, %v3448_v12  ;;  %v875_v18 = vstv %s3597_s26  ;;  %v874_v12 = vsel %vm2850_vm9, %v870_v21, 0.0  ;;  %vm5122_vm6 = vmmov %vm5120_vm3  ;;  %v859_v62 = vmul.f32 %v858_v32, %v856_v30  ;;  %s2470_s26 = smov 99  }
 0x156   : > { %1394 = vrot.lane.b32.xlu0 %v2672_v43, %s2466_s16  ;;  %v873_v46 = vsel %vm3647_vm12, %v871_v2, 0.0  ;;  %v884_v26 = vsel %vm5122_vm6, %v3485_v8, %v3475_v55  ;;  %vm5123_vm5 = vmmov %vm5120_vm3  ;;  %v860_v29 = vmul.f32 %v858_v32, %v857_v42  ;;  %vm5126_vm6 = vcmp.lt.s32.totalorder %v2825_v15, 18  ;;  %s3809_s16 = sld [smem:[#allocation7 + $0x43]] }
 0x157   : > { %v3619_v33 = vpop.permute.xlu1 %944  ;;  %v885_v53 = vsel %vm5123_vm5, %v3475_v55, %v3485_v8  ;;  %vm3688_vm3 = vmand %vm304_vm13, %vm2899_vm14  ;;  %v901_v61 = vsel %vm5126_vm6, %v3522_v11, %v3500_v49  ;;  %v847_v48 = vadd.f32 %v845_v14, %v830_v63  ;;  %v848_v23 = vadd.f32 %v846_v4, %v831_v51 }
 0x158   : > { %v3623_v35 = vpop.permute.xlu0 %942  ;;  %vm5127_vm5 = vmmov %vm5126_vm6  ;;  %v889_v37 = vstv %s3621_s11  ;;  %v876_v28 = vmul.f32 %v875_v18, %v873_v46  ;;  %v877_v31 = vmul.f32 %v875_v18, %v874_v12  ;;  %v887_v54 = vsel %vm3647_vm12, %v885_v53, 0.0  ;;  %s3845_s11 = sld [smem:[#allocation7 + $0x44]] }
 0x159   : > { %1412 = vrot.lane.b32.xlu1 %v2665_v38, %s2467_s12  ;;  %v902_v55 = vsel %vm5127_vm5, %v3500_v49, %v3522_v11  ;;  %v888_v16 = vsel %vm2850_vm9, %v884_v26, 0.0  ;;  %v906_v49 = vstv %s3640_s9  ;;  %v905_v3 = vsel %vm2919_vm2, %v901_v61, 0.0  ;;  %vm5128_vm12 = vmmov %vm5127_vm5  ;;  %s3880_s9 = sld [smem:[#allocation7 + $0x45]] }
 0x15a   : > { %1410 = vrot.lane.b32.xlu0 %v2667_v40, %s2467_s12  ;;  %v904_v11 = vsel %vm3688_vm3, %v902_v55, 0.0  ;;  %vm931_vm6 = vcmp.lt.s32.totalorder %v2825_v15, 17  ;;  %v861_v39 = vadd.f32 %v859_v62, %v847_v48  ;;  %v862_v41 = vadd.f32 %v860_v29, %v848_v23 }
 0x15b   : > { %v3659_v47 = vpop.permute.xlu1 %960  ;;  %v915_v32 = vsel %vm5128_vm12, %v3547_v0, %v3544_v50  ;;  %v916_v25 = vsel %vm5127_vm5, %v3544_v50, %v3547_v0  ;;  %v890_v13 = vmul.f32 %v889_v37, %v887_v54  ;;  %v891_v21 = vmul.f32 %v889_v37, %v888_v16  ;;  %vm3745_vm12 = vmand %vm304_vm13, %vm2994_vm15 }
 0x15c   : > { %v3667_v19 = vpop.permute.xlu0 %958  ;;  %v920_v2 = vstv %s3665_s13  ;;  %v878_v4 = vadd.f32 %v876_v28, %v861_v39  ;;  %v879_v30 = vadd.f32 %v877_v31, %v862_v41  ;;  %v907_v42 = vmul.f32 %v906_v49, %v904_v11  ;;  %s2471_s13 = smov 98  }
 0x15d   : > { %1427 = vrot.lane.b32.xlu1 %v2676_v45, %s2467_s12  ;;  %v908_v63 = vmul.f32 %v906_v49, %v905_v3  ;;  %v918_v51 = vsel %vm3688_vm3, %v916_v25, 0.0  ;;  %v919_v50 = vsel %vm2919_vm2, %v915_v32, 0.0  ;;  %v932_v18 = vsel %vm931_vm6, %v3589_v58, %v3583_v5 }
 0x15e   : > { %1425 = vrot.lane.b32.xlu0 %v2672_v43, %s2467_s12  ;;  %v933_v46 = vsel %vm931_vm6, %v3583_v5, %v3589_v58  ;;  %v937_v12 = vstv %s3700_s14  ;;  %vm962_vm3 = vcmp.lt.s32.totalorder %v2825_v15, 16  ;;  %v892_v53 = vadd.f32 %v890_v13, %v878_v4  ;;  %s3860_s12 = sld [smem:[#allocation7 + $0x14]]  ;;  %s3904_s14 = sld [smem:[#allocation7 + $0x15]] }
 0x15f   : > { %v3702_v8 = vpop.permute.xlu1 %975  ;;  %v893_v62 = vadd.f32 %v891_v21, %v879_v30  ;;  %v946_v29 = vsel %vm931_vm6, %v3623_v35, %v3619_v33  ;;  %v947_v5 = vsel %vm931_vm6, %v3619_v33, %v3623_v35  ;;  %v921_v1 = vmul.f32 %v920_v2, %v918_v51  ;;  %vm3789_vm6 = vmand %vm304_vm13, %vm3057_vm8 }
 0x160   : > { %v3705_v7 = vpop.permute.xlu0 %973  ;;  %v922_v61 = vmul.f32 %v920_v2, %v919_v50  ;;  %v935_v55 = vsel %vm3745_vm12, %v933_v46, 0.0  ;;  %v936_v48 = vsel %vm3004_vm0, %v932_v18, 0.0  ;;  %v909_v23 = vadd.f32 %v907_v42, %v892_v53 }
 0x161   : > { %1443 = vrot.lane.b32.xlu1 %v2665_v38, %s2468_s15  ;;  %v910_v37 = vadd.f32 %v908_v63, %v893_v62  ;;  %v951_v28 = vstv %s3718_s21  ;;  %v949_v33 = vsel %vm3745_vm12, %v947_v5, 0.0  ;;  %v950_v35 = vsel %vm3004_vm0, %v946_v29, 0.0  ;;  %s3927_s21 = sld [smem:[#allocation7 + $0x16]] }
 0x162   : > { %1441 = vrot.lane.b32.xlu0 %v2667_v40, %s2468_s15  ;;  %v963_v54 = vsel %vm962_vm3, %v3667_v19, %v3659_v47  ;;  %v964_v16 = vsel %vm962_vm3, %v3659_v47, %v3667_v19  ;;  %v938_v11 = vmul.f32 %v937_v12, %v935_v55  ;;  %v939_v3 = vmul.f32 %v937_v12, %v936_v48 }
 0x163   : > { %v3729_v27 = vpop.permute.xlu1 %991  ;;  %v977_v39 = vsel %vm962_vm3, %v3705_v7, %v3702_v8  ;;  %v978_v41 = vsel %vm962_vm3, %v3702_v8, %v3705_v7  ;;  %v923_v25 = vadd.f32 %v921_v1, %v909_v23  ;;  %v924_v13 = vadd.f32 %v922_v61, %v910_v37 }
 0x164   : > { %v3732_v14 = vpop.permute.xlu0 %989  ;;  %v968_v47 = vstv %s3734_s23  ;;  %vm993_vm5 = vcmp.lt.s32.totalorder %v2825_v15, 15  ;;  %v952_v19 = vmul.f32 %v951_v28, %v949_v33  ;;  %v953_v21 = vmul.f32 %v951_v28, %v950_v35  ;;  %s2472_s23 = smov 97  }
 0x165   : > { %1458 = vrot.lane.b32.xlu1 %v2676_v45, %s2468_s15  ;;  %v966_v2 = vsel %vm3789_vm6, %v964_v16, 0.0  ;;  %v967_v4 = vsel %vm3075_vm11, %v963_v54, 0.0  ;;  %v982_v8 = vstv %s3760_s7  ;;  %v980_v7 = vsel %vm3789_vm6, %v978_v41, 0.0  ;;  %s3940_s7 = sld [smem:[#allocation7 + $0x47]] }
 0x166   : > { %1456 = vrot.lane.b32.xlu0 %v2672_v43, %s2468_s15  ;;  %v981_v30 = vsel %vm3075_vm11, %v977_v39, 0.0  ;;  %v940_v63 = vadd.f32 %v938_v11, %v923_v25  ;;  %v941_v51 = vadd.f32 %v939_v3, %v924_v13  ;;  %vm5133_vm12 = vnez %v5100_v17  ;;  %s3918_s15 = sld [smem:[#allocation7 + $0x46]] }
 0x167   : > { %v3762_v26 = vpop.permute.xlu1 %1006  ;;  %vm3830_vm3 = vmand %vm304_vm13, %vm5133_vm12  ;;  %v994_v0 = vsel %vm993_vm5, %v3732_v14, %v3729_v27  ;;  %v995_v18 = vsel %vm993_vm5, %v3729_v27, %v3732_v14  ;;  %v969_v12 = vmul.f32 %v968_v47, %v966_v2  ;;  %v970_v53 = vmul.f32 %v968_v47, %v967_v4 }
 0x168   : > { %v1005_v58 = vpop.permute.xlu0 %1004  ;;  %v999_v62 = vstv %s3776_s27  ;;  %v954_v29 = vadd.f32 %v952_v19, %v940_v63  ;;  %v955_v5 = vadd.f32 %v953_v21, %v941_v51  ;;  %v983_v1 = vmul.f32 %v982_v8, %v980_v7  ;;  %vm3866_vm12 = vmand %vm304_vm13, %vm5104_vm10  ;;  %s3951_s27 = sld [smem:[#allocation7 + $0x17]] }
 0x169   : > { %1474 = vrot.lane.b32.xlu1 %v2665_v38, %s2469_s30  ;;  %v984_v61 = vmul.f32 %v982_v8, %v981_v30  ;;  %v997_v27 = vsel %vm3830_vm3, %v995_v18, 0.0  ;;  %v998_v14 = vsel %vm3145_vm4, %v994_v0, 0.0  ;;  %v1008_v55 = vsel %vm993_vm5, %v1005_v58, %v3762_v26 }
 0x16a   : > { %1472 = vrot.lane.b32.xlu0 %v2667_v40, %s2469_s30  ;;  %v1009_v48 = vsel %vm993_vm5, %v3762_v26, %v1005_v58  ;;  %v1013_v37 = vstv %s3809_s16  ;;  %v971_v33 = vadd.f32 %v969_v12, %v954_v29  ;;  %v972_v35 = vadd.f32 %v970_v53, %v955_v5  ;;  %s3966_s16 = sld [smem:[#allocation7 + $0x18]] }
 0x16b   : > { %v1023_v49 = vpop.permute.xlu1 %1022  ;;  %vm5138_vm5 = vcmp.lt.s32.totalorder %v2825_v15, 14  ;;  %v1000_v54 = vmul.f32 %v999_v62, %v997_v27  ;;  %v1001_v16 = vmul.f32 %v999_v62, %v998_v14  ;;  %v1011_v11 = vsel %vm3830_vm3, %v1009_v48, 0.0 }
 0x16c   : > { %v1021_v32 = vpop.permute.xlu0 %1020  ;;  %vm5139_vm8 = vmmov %vm5138_vm5  ;;  %v1012_v3 = vsel %vm3145_vm4, %v1008_v55, 0.0  ;;  %v985_v39 = vadd.f32 %v983_v1, %v971_v33  ;;  %v986_v41 = vadd.f32 %v984_v61, %v972_v35  ;;  %v1030_v25 = vstv %s3824_s24  ;;  %s3973_s24 = sld [smem:[#allocation7 + $0x49]] }
 0x16d   : > { %1489 = vrot.lane.b32.xlu1 %v2676_v45, %s2469_s30  ;;  %v1025_v26 = vsel %vm5138_vm5, %v1021_v32, %v1023_v49  ;;  %v1026_v58 = vsel %vm5139_vm8, %v1023_v49, %v1021_v32  ;;  %vm5140_vm8 = vnez %v5063_v56  ;;  %vm5141_vm3 = vmmov %vm5138_vm5  ;;  %v1014_v2 = vmul.f32 %v1013_v37, %v1011_v11 }
 0x16e   : > { %1487 = vrot.lane.b32.xlu0 %v2672_v43, %s2469_s30  ;;  %v1028_v49 = vsel %vm3866_vm12, %v1026_v58, 0.0  ;;  %v1029_v32 = vsel %vm5140_vm8, %v1025_v26, 0.0  ;;  %vm5142_vm5 = vmmov %vm5141_vm3  ;;  %v1015_v4 = vmul.f32 %v1013_v37, %v1012_v3  ;;  %vm5143_vm6 = vnez %v5069_v10  ;;  %s3954_s30 = sld [smem:[#allocation7 + $0x48]] }
 0x16f   : > { %v1038_v42 = vpop.permute.xlu1 %1037  ;;  %vm3895_vm10 = vmand %vm304_vm13, %vm5143_vm6  ;;  %vm5146_vm4 = vcmp.lt.s32.totalorder %v2825_v15, 13  ;;  %v1003_v63 = vadd.f32 %v1001_v16, %v986_v41  ;;  %v1044_v51 = vstv %s3845_s11  ;;  %v1031_v50 = vmul.f32 %v1030_v25, %v1028_v49  ;;  %s3992_s11 = sld [smem:[#allocation7 + $0x19]] }
 0x170   : > { %v1036_v46 = vpop.permute.xlu0 %1035  ;;  %v1032_v0 = vmul.f32 %v1030_v25, %v1029_v32  ;;  %v1061_v53 = vstv %s3860_s12  ;;  %v1092_v3 = vstv %s3904_s14  ;;  %v1106_v8 = vstv %s3918_s15  ;;  %s4016_s12 = sld [smem:[#allocation7 + $0x4a]]  ;;  %s4042_s14 = sld [smem:[#allocation7 + $0x4b]] }
 0x171   : > { %1505 = vrot.lane.b32.xlu1 %v2665_v38, %s2470_s26  ;;  %v1039_v47 = vsel %vm5141_vm3, %v1036_v46, %v1038_v42  ;;  %v1040_v19 = vsel %vm5142_vm5, %v1038_v42, %v1036_v46  ;;  %vm5147_vm3 = vmmov %vm5146_vm4  ;;  %v1002_v42 = vadd.f32 %v1000_v54, %v985_v39  ;;  %v1017_v61 = vadd.f32 %v1015_v4, %v1003_v63  ;;  %s2475_s15 = smov 94  }
 0x172   : > { %1503 = vrot.lane.b32.xlu0 %v2667_v40, %s2470_s26  ;;  %v1042_v18 = vsel %vm3866_vm12, %v1040_v19, 0.0  ;;  %v1043_v46 = vsel %vm5140_vm8, %v1039_v47, 0.0  ;;  %vm5148_vm13 = vmmov %vm5147_vm3  ;;  %vm1117_vm5 = vcmp.lt.s32.totalorder %v2825_v15, 2 }
 0x173   : > { %v1054_v23 = vpop.permute.xlu1 %1053  ;;  %v1016_v1 = vadd.f32 %v1014_v2, %v1002_v42  ;;  %vm5149_vm12 = vmmov %vm5147_vm3  ;;  %v1045_v55 = vmul.f32 %v1044_v51, %v1042_v18  ;;  %v1046_v48 = vmul.f32 %v1044_v51, %v1043_v46 }
 0x174   : > { %v1052_v28 = vpop.permute.xlu0 %1051 }
 0x175   : > { %1520 = vrot.lane.b32.xlu1 %v2676_v45, %s2470_s26  ;;  %v1056_v7 = vsel %vm5146_vm4, %v1052_v28, %v1054_v23  ;;  %v1057_v30 = vsel %vm5147_vm3, %v1054_v23, %v1052_v28  ;;  %vm1086_vm4 = vcmp.lt.s32.totalorder %v2825_v15, 3  ;;  %v1075_v23 = vstv %s3880_s9  ;;  %s2474_s9 = smov 95  }
 0x176   : > { %1518 = vrot.lane.b32.xlu0 %v2672_v43, %s2470_s26  ;;  %v1059_v62 = vsel %vm3895_vm10, %v1057_v30, 0.0  ;;  %v1060_v29 = vsel %vm3258_vm1, %v1056_v7, 0.0  ;;  %v1033_v37 = vadd.f32 %v1031_v50, %v1016_v1  ;;  %v1034_v28 = vadd.f32 %v1032_v0, %v1017_v61  ;;  %s2473_s26 = smov 96  }
 0x177   : > { %v1069_v13 = vpop.permute.xlu1 %1068  ;;  %v1062_v33 = vmul.f32 %v1061_v53, %v1059_v62  ;;  %v1063_v35 = vmul.f32 %v1061_v53, %v1060_v29  ;;  %vm5150_vm3 = vnez %v5093_v60 }
 0x178   : > { %v1067_v21 = vpop.permute.xlu0 %1066  ;;  %v1047_v39 = vadd.f32 %v1045_v55, %v1033_v37  ;;  %v1048_v41 = vadd.f32 %v1046_v48, %v1034_v28 }
 0x179   : > { %1536 = vrot.lane.b32.xlu1 %v2665_v38, %s2471_s13  ;;  %v1070_v27 = vsel %vm5148_vm13, %v1067_v21, %v1069_v13  ;;  %v1071_v14 = vsel %vm5149_vm12, %v1069_v13, %v1067_v21  ;;  %vm5151_vm13 = vnez %v5100_v17  ;;  %vm5152_vm12 = vnez %v5057_v34 }
 0x17a   : > { %1534 = vrot.lane.b32.xlu0 %v2667_v40, %s2471_s13  ;;  %v1073_v26 = vsel %vm3895_vm10, %v1071_v14, 0.0  ;;  %v1074_v58 = vsel %vm3258_vm1, %v1070_v27, 0.0  ;;  %v1064_v2 = vadd.f32 %v1062_v33, %v1047_v39  ;;  %v1065_v4 = vadd.f32 %v1063_v35, %v1048_v41 }
 0x17b   : > { %v1085_v12 = vpop.permute.xlu1 %1084  ;;  %v1076_v49 = vmul.f32 %v1075_v23, %v1073_v26  ;;  %v1077_v32 = vmul.f32 %v1075_v23, %v1074_v58  ;;  %v1137_v27 = vstv %s3940_s7  ;;  %vm1148_vm10 = vcmp.lt.s32.totalorder %v2825_v15, 1  ;;  %s2476_s7 = smov 93  }
 0x17c   : > { %v1083_v5 = vpop.permute.xlu0 %1082  ;;  %v1154_v26 = vstv %s3951_s27  ;;  %s4086_s27 = sld [smem:[#allocation7 + $0x1c]] }
 0x17d   : > { %1551 = vrot.lane.b32.xlu1 %v2676_v45, %s2471_s13  ;;  %v1087_v54 = vsel %vm1086_vm4, %v1083_v5, %v1085_v12  ;;  %v1088_v16 = vsel %vm1086_vm4, %v1085_v12, %v1083_v5  ;;  %v1078_v18 = vadd.f32 %v1076_v49, %v1064_v2  ;;  %v1079_v46 = vadd.f32 %v1077_v32, %v1065_v4 }
 0x17e   : > { %1549 = vrot.lane.b32.xlu0 %v2672_v43, %s2471_s13  ;;  %v1090_v47 = vsel %vm2840_vm7, %v1088_v16, 0.0  ;;  %v1091_v19 = vsel %vm2850_vm9, %v1087_v54, 0.0  ;;  %v1123_v12 = vstv %s3927_s21  ;;  %s4029_s13 = sld [smem:[#allocation7 + $0x1a]]  ;;  %s4056_s21 = sld [smem:[#allocation7 + $0x1b]] }
 0x17f   : > { %v1100_v31 = vpop.permute.xlu1 %1099  ;;  %v1093_v50 = vmul.f32 %v1092_v3, %v1090_v47  ;;  %v1094_v0 = vmul.f32 %v1092_v3, %v1091_v19  ;;  %v1177_v3 = vsel %vm3075_vm11, %v2665_v38, 0.0  ;;  %v1178_v47 = vstv %s3966_s16  ;;  %s2477_s16 = smov 83  }
 0x180   : > { %v1098_v11 = vpop.permute.xlu0 %1097  ;;  %v1176_v19 = vsel %vm5150_vm3, %v2667_v40, 0.0 }
 0x181   : > { %1567 = vrot.lane.b32.xlu1 %v2665_v38, %s2472_s23  ;;  %v1101_v25 = vsel %vm1086_vm4, %v1098_v11, %v1100_v31  ;;  %v1102_v13 = vsel %vm1086_vm4, %v1100_v31, %v1098_v11  ;;  %v1095_v48 = vadd.f32 %v1093_v50, %v1078_v18  ;;  %v1096_v23 = vadd.f32 %v1094_v0, %v1079_v46 }
 0x182   : > { %1565 = vrot.lane.b32.xlu0 %v2667_v40, %s2472_s23  ;;  %v1104_v30 = vsel %vm2840_vm7, %v1102_v13, 0.0  ;;  %v1105_v42 = vsel %vm2850_vm9, %v1101_v25, 0.0  ;;  %v1168_v11 = vstv %s3954_s30  ;;  %vm1197_vm4 = vcmp.lt.s32.totalorder %v2825_v15, 127  ;;  %s4100_s30 = sld [smem:[#allocation7 + $0x4d]] }
 0x183   : > { %v1116_v21 = vpop.permute.xlu1 %1115  ;;  %v1107_v62 = vmul.f32 %v1106_v8, %v1104_v30  ;;  %v1108_v29 = vmul.f32 %v1106_v8, %v1105_v42  ;;  %v1184_v30 = vsel %vm5150_vm3, %v2672_v43, 0.0  ;;  %v1185_v42 = vsel %vm3075_vm11, %v2676_v45, 0.0 }
 0x184   : > { %v1114_v7 = vpop.permute.xlu0 %1113 }
 0x185   : > { %v1118_v63 = vsel %vm1117_vm5, %v1114_v7, %v1116_v21  ;;  %v1119_v51 = vsel %vm1117_vm5, %v1116_v21, %v1114_v7  ;;  %1582 = vrot.lane.b32.xlu1 %v2676_v45, %s2472_s23  ;;  %v1109_v58 = vadd.f32 %v1107_v62, %v1095_v48  ;;  %v1110_v54 = vadd.f32 %v1108_v29, %v1096_v23 }
 0x186   : > { %1580 = vrot.lane.b32.xlu0 %v2672_v43, %s2472_s23  ;;  %v1121_v5 = vsel %vm2899_vm14, %v1119_v51, 0.0  ;;  %v1122_v1 = vsel %vm2919_vm2, %v1118_v63, 0.0  ;;  %v1186_v63 = vstv %s3973_s24  ;;  %v1179_v29 = vmul.f32 %v1178_v47, %v1176_v19  ;;  %s4069_s23 = sld [smem:[#allocation7 + $0x4c]]  ;;  %s4122_s24 = sld [smem:[#allocation7 + $0x1d]] }
 0x187   : > { %v1131_v53 = vpop.permute.xlu1 %1130  ;;  %v1124_v33 = vmul.f32 %v1123_v12, %v1121_v5  ;;  %v1125_v35 = vmul.f32 %v1123_v12, %v1122_v1  ;;  %v1180_v12 = vmul.f32 %v1178_v47, %v1177_v3  ;;  %v1188_v48 = vmul.f32 %v1186_v63, %v1185_v42 }
 0x188   : > { %v1129_v61 = vpop.permute.xlu0 %1128  ;;  %v1203_v23 = vstv %s3992_s11  ;;  %v1234_v42 = vstv %s4029_s13  ;;  %s2478_s11 = smov 82   ;;  %s2479_s13 = smov 81  }
 0x189   : > { %v1132_v14 = vsel %vm1117_vm5, %v1129_v61, %v1131_v53  ;;  %v1133_v55 = vsel %vm1117_vm5, %v1131_v53, %v1129_v61  ;;  %1598 = vrot.lane.b32.xlu1 %v2665_v38, %s2473_s26  ;;  %v1126_v21 = vadd.f32 %v1124_v33, %v1109_v58  ;;  %v1127_v2 = vadd.f32 %v1125_v35, %v1110_v54 }
 0x18a   : > { %v1135_v37 = vsel %vm2899_vm14, %v1133_v55, 0.0  ;;  %v1136_v28 = vsel %vm2919_vm2, %v1132_v14, 0.0  ;;  %1596 = vrot.lane.b32.xlu0 %v2667_v40, %s2473_s26  ;;  %v1187_v55 = vmul.f32 %v1186_v63, %v1184_v30  ;;  %vm1228_vm5 = vcmp.lt.s32.totalorder %v2825_v15, 126 }
 0x18b   : > { %v1147_v31 = vpop.permute.xlu1 %1146  ;;  %v1138_v39 = vmul.f32 %v1137_v27, %v1135_v37  ;;  %v1139_v41 = vmul.f32 %v1137_v27, %v1136_v28 }
 0x18c   : > { %v1145_v16 = vpop.permute.xlu0 %1144 }
 0x18d   : > { %v1149_v25 = vsel %vm1148_vm10, %v1145_v16, %v1147_v31  ;;  %v1150_v13 = vsel %vm1148_vm10, %v1147_v31, %v1145_v16  ;;  %1613 = vrot.lane.b32.xlu1 %v2676_v45, %s2473_s26  ;;  %v1140_v50 = vadd.f32 %v1138_v39, %v1126_v21  ;;  %v1141_v0 = vadd.f32 %v1139_v41, %v1127_v2 }
 0x18e   : > { %v1152_v49 = vsel %vm2994_vm15, %v1150_v13, 0.0  ;;  %v1153_v32 = vsel %vm3004_vm0, %v1149_v25, 0.0  ;;  %1611 = vrot.lane.b32.xlu0 %v2672_v43, %s2473_s26  ;;  %v1217_v41 = vstv %s4016_s12  ;;  %s4135_s26 = sld [smem:[#allocation7 + $0x4e]] }
 0x18f   : > { %v1155_v4 = vmul.f32 %v1154_v26, %v1152_v49  ;;  %v1156_v8 = vmul.f32 %v1154_v26, %v1153_v32  ;;  %v1162_v7 = vpop.permute.xlu1 %1161  ;;  %s4157_s12 = sld [smem:[#allocation7 + $0x1e]] }
 0x190   : > { %v1160_v51 = vpop.permute.xlu0 %1159 }
 0x191   : > { %v1163_v18 = vsel %vm1148_vm10, %v1160_v51, %v1162_v7  ;;  %v1164_v46 = vsel %vm1148_vm10, %v1162_v7, %v1160_v51  ;;  %1629 = vrot.lane.b32.xlu1 %v2665_v38, %s2474_s9  ;;  %v1157_v5 = vadd.f32 %v1155_v4, %v1140_v50  ;;  %v1158_v1 = vadd.f32 %v1156_v8, %v1141_v0 }
 0x192   : > { %v1166_v53 = vsel %vm2994_vm15, %v1164_v46, 0.0  ;;  %v1167_v62 = vsel %vm3004_vm0, %v1163_v18, 0.0  ;;  %1627 = vrot.lane.b32.xlu0 %v2667_v40, %s2474_s9  ;;  %vm5153_vm10 = vnez %v5059_v6 }
 0x193   : > { %v1169_v61 = vmul.f32 %v1168_v11, %v1166_v53  ;;  %v1170_v27 = vmul.f32 %v1168_v11, %v1167_v62  ;;  %v1196_v14 = vpop.permute.xlu1 %1195 }
 0x194   : > { %v1194_v37 = vpop.permute.xlu0 %1193 }
 0x195   : > { %v1171_v28 = vadd.f32 %v1169_v61, %v1157_v5  ;;  %v1172_v33 = vadd.f32 %v1170_v27, %v1158_v1  ;;  %v1198_v35 = vsel %vm1197_vm4, %v1194_v37, %v1196_v14  ;;  %v1199_v31 = vsel %vm1197_vm4, %v1196_v14, %v1194_v37  ;;  %1644 = vrot.lane.b32.xlu1 %v2676_v45, %s2474_s9 }
 0x196   : > { %v1201_v26 = vsel %vm5151_vm13, %v1198_v35, 0.0  ;;  %v1202_v58 = vsel %vm5152_vm12, %v1199_v31, 0.0  ;;  %1642 = vrot.lane.b32.xlu0 %v2672_v43, %s2474_s9  ;;  %v1248_v5 = vstv %s4042_s14  ;;  %v1265_v35 = vstv %s4056_s21  ;;  %s4170_s9 = sld [smem:[#allocation7 + $0x4f]]  ;;  %s2480_s21 = smov 80  }
 0x197   : > { %v1181_v54 = vadd.f32 %v1179_v29, %v1171_v28  ;;  %v1182_v16 = vadd.f32 %v1180_v12, %v1172_v33  ;;  %v1211_v11 = vpop.permute.xlu1 %1210  ;;  %v1204_v3 = vmul.f32 %v1203_v23, %v1201_v26  ;;  %v1205_v39 = vmul.f32 %v1203_v23, %v1202_v58  ;;  %s4192_s14 = sld [smem:[#allocation7 + $0x1f]] }
 0x198   : > { %v1209_v25 = vpop.permute.xlu0 %1208  ;;  %v4084_v26 = vadd.s32 128, %v2825_v15 }
 0x199   : > { %v1189_v13 = vadd.f32 %v1187_v55, %v1181_v54  ;;  %v1190_v49 = vadd.f32 %v1188_v48, %v1182_v16  ;;  %v1212_v32 = vsel %vm1197_vm4, %v1209_v25, %v1211_v11  ;;  %v1213_v47 = vsel %vm1197_vm4, %v1211_v11, %v1209_v25  ;;  %1660 = vrot.lane.b32.xlu1 %v2665_v38, %s2475_s15 }
 0x19a   : > { %v1215_v19 = vsel %vm5151_vm13, %v1212_v32, 0.0  ;;  %v1216_v21 = vsel %vm5152_vm12, %v1213_v47, 0.0  ;;  %1658 = vrot.lane.b32.xlu0 %v2667_v40, %s2475_s15  ;;  %vm1259_vm4 = vcmp.lt.s32.totalorder %v2825_v15, 125 }
 0x19b   : > { %v1206_v2 = vadd.f32 %v1204_v3, %v1189_v13  ;;  %v1207_v4 = vadd.f32 %v1205_v39, %v1190_v49  ;;  %v1218_v8 = vmul.f32 %v1217_v41, %v1215_v19  ;;  %v1219_v7 = vmul.f32 %v1217_v41, %v1216_v21  ;;  %v1227_v30 = vpop.permute.xlu1 %1226 }
 0x19c   : > { %v1225_v63 = vpop.permute.xlu0 %1224  ;;  %v1279_v49 = vstv %s4069_s23  ;;  %s4227_s23 = sld [smem:[#allocation7 + $0x20]] }
 0x19d   : > { %v1220_v51 = vadd.f32 %v1218_v8, %v1206_v2  ;;  %v1221_v50 = vadd.f32 %v1219_v7, %v1207_v4  ;;  %v1229_v0 = vsel %vm1228_vm5, %v1225_v63, %v1227_v30  ;;  %v1230_v18 = vsel %vm1228_vm5, %v1227_v30, %v1225_v63  ;;  %1675 = vrot.lane.b32.xlu1 %v2676_v45, %s2475_s15 }
 0x19e   : > { %v1232_v46 = vsel %vm5153_vm10, %v1229_v0, 0.0  ;;  %v1233_v12 = vsel %vm5140_vm8, %v1230_v18, 0.0  ;;  %1673 = vrot.lane.b32.xlu0 %v2672_v43, %s2475_s15  ;;  %s4205_s15 = sld [smem:[#allocation7 + $0x50]] }
 0x19f   : > { %v1235_v53 = vmul.f32 %v1234_v42, %v1232_v46  ;;  %v1236_v62 = vmul.f32 %v1234_v42, %v1233_v12  ;;  %v1242_v29 = vpop.permute.xlu1 %1241 }
 0x1a0   : > { %v1240_v1 = vpop.permute.xlu0 %1239 }
 0x1a1   : > { %v1237_v61 = vadd.f32 %v1235_v53, %v1220_v51  ;;  %v1238_v27 = vadd.f32 %v1236_v62, %v1221_v50  ;;  %v1243_v14 = vsel %vm1228_vm5, %v1240_v1, %v1242_v29  ;;  %v1244_v55 = vsel %vm1228_vm5, %v1242_v29, %v1240_v1  ;;  %1691 = vrot.lane.b32.xlu1 %v2665_v38, %s2476_s7 }
 0x1a2   : > { %v1246_v48 = vsel %vm5153_vm10, %v1243_v14, 0.0  ;;  %v1247_v23 = vsel %vm5140_vm8, %v1244_v55, 0.0  ;;  %1689 = vrot.lane.b32.xlu0 %v2667_v40, %s2476_s7  ;;  %vm1290_vm5 = vcmp.lt.s32.totalorder %v2825_v15, 115  ;;  %v1296_v51 = vstv %s4086_s27  ;;  %s2481_s27 = smov 79  }
 0x1a3   : > { %v1249_v37 = vmul.f32 %v1248_v5, %v1246_v48  ;;  %v1250_v28 = vmul.f32 %v1248_v5, %v1247_v23  ;;  %v1258_v33 = vpop.permute.xlu1 %1257 }
 0x1a4   : > { %v1256_v31 = vpop.permute.xlu0 %1255 }
 0x1a5   : > { %v1251_v58 = vadd.f32 %v1249_v37, %v1237_v61  ;;  %v1252_v54 = vadd.f32 %v1250_v28, %v1238_v27  ;;  %v1260_v16 = vsel %vm1259_vm4, %v1256_v31, %v1258_v33  ;;  %v1261_v11 = vsel %vm1259_vm4, %v1258_v33, %v1256_v31  ;;  %1706 = vrot.lane.b32.xlu1 %v2676_v45, %s2476_s7 }
 0x1a6   : > { %v1263_v3 = vsel %vm5143_vm6, %v1260_v16, 0.0  ;;  %v1264_v39 = vsel %vm3258_vm1, %v1261_v11, 0.0  ;;  %1704 = vrot.lane.b32.xlu0 %v2672_v43, %s2476_s7  ;;  %v1310_v61 = vstv %s4100_s30  ;;  %s4240_s7 = sld [smem:[#allocation7 + $0x51]]  ;;  %s2482_s30 = smov 78  }
 0x1a7   : > { %v1266_v41 = vmul.f32 %v1265_v35, %v1263_v3  ;;  %v1267_v25 = vmul.f32 %v1265_v35, %v1264_v39  ;;  %v1273_v13 = vpop.permute.xlu1 %1272 }
 0x1a8   : > { %v1271_v32 = vpop.permute.xlu0 %1270 }
 0x1a9   : > { %v1268_v47 = vadd.f32 %v1266_v41, %v1251_v58  ;;  %v1269_v19 = vadd.f32 %v1267_v25, %v1252_v54  ;;  %v1274_v21 = vsel %vm1259_vm4, %v1271_v32, %v1273_v13  ;;  %v1275_v2 = vsel %vm1259_vm4, %v1273_v13, %v1271_v32  ;;  %1722 = vrot.lane.b32.xlu1 %v2665_v38, %s2477_s16 }
 0x1aa   : > { %v1277_v4 = vsel %vm5143_vm6, %v1274_v21, 0.0  ;;  %v1278_v8 = vsel %vm3258_vm1, %v1275_v2, 0.0  ;;  %1720 = vrot.lane.b32.xlu0 %v2667_v40, %s2477_s16  ;;  %vm5154_vm4 = vcmp.lt.s32.totalorder %v4084_v26, 240  ;;  %v1327_v54 = vstv %s4122_s24  ;;  %s2148_s24 = sld [smem:[#allocation7 + $0x21]] }
 0x1ab   : > { %v1280_v7 = vmul.f32 %v1279_v49, %v1277_v4  ;;  %v1281_v30 = vmul.f32 %v1279_v49, %v1278_v8  ;;  %v1289_v42 = vpop.permute.xlu1 %1288  ;;  %vm4117_vm10 = vmand %vm5154_vm4, %vm2850_vm9  ;;  %vm1321_vm4 = vcmp.lt.s32.totalorder %v2825_v15, 114 }
 0x1ac   : > { %v1287_v50 = vpop.permute.xlu0 %1286 }
 0x1ad   : > { %v1282_v0 = vadd.f32 %v1280_v7, %v1268_v47  ;;  %v1283_v18 = vadd.f32 %v1281_v30, %v1269_v19  ;;  %v1291_v46 = vsel %vm1290_vm5, %v1287_v50, %v1289_v42  ;;  %v1292_v12 = vsel %vm1290_vm5, %v1289_v42, %v1287_v50  ;;  %1737 = vrot.lane.b32.xlu1 %v2676_v45, %s2477_s16 }
 0x1ae   : > { %v1294_v53 = vsel %vm2840_vm7, %v1291_v46, 0.0  ;;  %v1295_v62 = vsel %vm4117_vm10, %v1292_v12, 0.0  ;;  %1735 = vrot.lane.b32.xlu0 %v2672_v43, %s2477_s16  ;;  %v1341_v19 = vstv %s4135_s26  ;;  %s2483_s16 = smov 77   ;;  %s4311_s26 = sld [smem:[#allocation7 + $0x52]] }
 0x1af   : > { %v1297_v29 = vmul.f32 %v1296_v51, %v1294_v53  ;;  %v1298_v5 = vmul.f32 %v1296_v51, %v1295_v62  ;;  %v1304_v1 = vpop.permute.xlu1 %1303 }
 0x1b0   : > { %v1302_v27 = vpop.permute.xlu0 %1301 }
 0x1b1   : > { %v1299_v14 = vadd.f32 %v1297_v29, %v1282_v0  ;;  %v1300_v55 = vadd.f32 %v1298_v5, %v1283_v18  ;;  %v1305_v48 = vsel %vm1290_vm5, %v1302_v27, %v1304_v1  ;;  %v1306_v23 = vsel %vm1290_vm5, %v1304_v1, %v1302_v27  ;;  %1753 = vrot.lane.b32.xlu1 %v2665_v38, %s2478_s11 }
 0x1b2   : > { %v1308_v37 = vsel %vm2840_vm7, %v1305_v48, 0.0  ;;  %v1309_v28 = vsel %vm4117_vm10, %v1306_v23, 0.0  ;;  %1751 = vrot.lane.b32.xlu0 %v2667_v40, %s2478_s11  ;;  %vm5157_vm5 = vcmp.lt.s32.totalorder %v4084_v26, 240  ;;  %vm1352_vm10 = vcmp.lt.s32.totalorder %v2825_v15, 113 }
 0x1b3   : > { %v1311_v33 = vmul.f32 %v1310_v61, %v1308_v37  ;;  %v1312_v35 = vmul.f32 %v1310_v61, %v1309_v28  ;;  %v1320_v31 = vpop.permute.xlu1 %1319  ;;  %vm4152_vm9 = vmand %vm5157_vm5, %vm2919_vm2  ;;  %v1358_v18 = vstv %s4157_s12  ;;  %s4331_s12 = sld [smem:[#allocation7 + $0x53]] }
 0x1b4   : > { %v1318_v16 = vpop.permute.xlu0 %1317 }
 0x1b5   : > { %v1313_v11 = vadd.f32 %v1311_v33, %v1299_v14  ;;  %v1314_v3 = vadd.f32 %v1312_v35, %v1300_v55  ;;  %v1322_v39 = vsel %vm1321_vm4, %v1318_v16, %v1320_v31  ;;  %v1323_v41 = vsel %vm1321_vm4, %v1320_v31, %v1318_v16  ;;  %1768 = vrot.lane.b32.xlu1 %v2676_v45, %s2478_s11 }
 0x1b6   : > { %v1325_v25 = vsel %vm2899_vm14, %v1322_v39, 0.0  ;;  %v1326_v13 = vsel %vm4152_vm9, %v1323_v41, 0.0  ;;  %1766 = vrot.lane.b32.xlu0 %v2672_v43, %s2478_s11  ;;  %v1372_v55 = vstv %s4170_s9  ;;  %s4316_s11 = sld [smem:[#allocation7 + $0x22]]  ;;  %s4340_s9 = sld [smem:[#allocation7 + $0x23]] }
 0x1b7   : > { %v1328_v49 = vmul.f32 %v1327_v54, %v1325_v25  ;;  %v1329_v32 = vmul.f32 %v1327_v54, %v1326_v13  ;;  %v1335_v47 = vpop.permute.xlu1 %1334 }
 0x1b8   : > { %v1333_v21 = vpop.permute.xlu0 %1332 }
 0x1b9   : > { %v1330_v2 = vadd.f32 %v1328_v49, %v1313_v11  ;;  %v1331_v4 = vadd.f32 %v1329_v32, %v1314_v3  ;;  %v1336_v8 = vsel %vm1321_vm4, %v1333_v21, %v1335_v47  ;;  %v1337_v7 = vsel %vm1321_vm4, %v1335_v47, %v1333_v21  ;;  %1784 = vrot.lane.b32.xlu1 %v2665_v38, %s2479_s13  ;;  %vm5160_vm4 = vmmov %vm5157_vm5 }
 0x1ba   : > { %v1339_v30 = vsel %vm2899_vm14, %v1336_v8, 0.0  ;;  %v1340_v42 = vsel %vm4152_vm9, %v1337_v7, 0.0  ;;  %1782 = vrot.lane.b32.xlu0 %v2667_v40, %s2479_s13  ;;  %vm4187_vm5 = vmand %vm5160_vm4, %vm3004_vm0  ;;  %vm1383_vm9 = vcmp.lt.s32.totalorder %v2825_v15, 112  ;;  %v1389_v3 = vstv %s4192_s14  ;;  %s4389_s14 = sld [smem:[#allocation7 + $0x24]] }
 0x1bb   : > { %v1342_v63 = vmul.f32 %v1341_v19, %v1339_v30  ;;  %v1343_v51 = vmul.f32 %v1341_v19, %v1340_v42  ;;  %v1351_v50 = vpop.permute.xlu1 %1350 }
 0x1bc   : > { %v1349_v46 = vpop.permute.xlu0 %1348 }
 0x1bd   : > { %v1344_v12 = vadd.f32 %v1342_v63, %v1330_v2  ;;  %v1345_v53 = vadd.f32 %v1343_v51, %v1331_v4  ;;  %v1353_v62 = vsel %vm1352_vm10, %v1349_v46, %v1351_v50  ;;  %v1354_v29 = vsel %vm1352_vm10, %v1351_v50, %v1349_v46  ;;  %1799 = vrot.lane.b32.xlu1 %v2676_v45, %s2479_s13 }
 0x1be   : > { %v1356_v5 = vsel %vm2994_vm15, %v1353_v62, 0.0  ;;  %v1357_v1 = vsel %vm4187_vm5, %v1354_v29, 0.0  ;;  %1797 = vrot.lane.b32.xlu0 %v2672_v43, %s2479_s13  ;;  %v1403_v4 = vstv %s4205_s15  ;;  %s4362_s13 = sld [smem:[#allocation7 + $0x54]]  ;;  %s4406_s15 = sld [smem:[#allocation7 + $0x55]] }
 0x1bf   : > { %v1359_v61 = vmul.f32 %v1358_v18, %v1356_v5  ;;  %v1360_v27 = vmul.f32 %v1358_v18, %v1357_v1  ;;  %v1366_v14 = vpop.permute.xlu1 %1365 }
 0x1c0   : > { %v1364_v48 = vpop.permute.xlu0 %1363 }
 0x1c1   : > { %v1361_v23 = vadd.f32 %v1359_v61, %v1344_v12  ;;  %v1362_v37 = vadd.f32 %v1360_v27, %v1345_v53  ;;  %v1367_v28 = vsel %vm1352_vm10, %v1364_v48, %v1366_v14  ;;  %v1368_v33 = vsel %vm1352_vm10, %v1366_v14, %v1364_v48  ;;  %1815 = vrot.lane.b32.xlu1 %v2665_v38, %s2480_s21  ;;  %vm5163_vm10 = vmmov %vm5160_vm4 }
 0x1c2   : > { %v1370_v35 = vsel %vm2994_vm15, %v1367_v28, 0.0  ;;  %v1371_v31 = vsel %vm4187_vm5, %v1368_v33, 0.0  ;;  %1813 = vrot.lane.b32.xlu0 %v2667_v40, %s2480_s21  ;;  %vm4222_vm4 = vmand %vm5163_vm10, %vm3075_vm11  ;;  %vm1414_vm5 = vcmp.lt.s32.totalorder %v2825_v15, 111  ;;  %v1420_v53 = vstv %s4227_s23  ;;  %s4447_s23 = sld [smem:[#allocation7 + $0x56]] }
 0x1c3   : > { %v1373_v58 = vmul.f32 %v1372_v55, %v1370_v35  ;;  %v1374_v54 = vmul.f32 %v1372_v55, %v1371_v31  ;;  %v1382_v16 = vpop.permute.xlu1 %1381 }
 0x1c4   : > { %v1380_v39 = vpop.permute.xlu0 %1379 }
 0x1c5   : > { %v1375_v41 = vadd.f32 %v1373_v58, %v1361_v23  ;;  %v1376_v25 = vadd.f32 %v1374_v54, %v1362_v37  ;;  %v1384_v13 = vsel %vm1383_vm9, %v1380_v39, %v1382_v16  ;;  %v1385_v49 = vsel %vm1383_vm9, %v1382_v16, %v1380_v39  ;;  %1830 = vrot.lane.b32.xlu1 %v2676_v45, %s2480_s21 }
 0x1c6   : > { %v1387_v32 = vsel %vm5150_vm3, %v1384_v13, 0.0  ;;  %v1388_v47 = vsel %vm4222_vm4, %v1385_v49, 0.0  ;;  %1828 = vrot.lane.b32.xlu0 %v2672_v43, %s2480_s21  ;;  %v1434_v37 = vstv %s4240_s7  ;;  %s4419_s21 = sld [smem:[#allocation7 + $0x25]]  ;;  %s4461_s7 = sld [smem:[#allocation7 + $0x26]] }
 0x1c7   : > { %v1390_v19 = vmul.f32 %v1389_v3, %v1387_v32  ;;  %v1391_v21 = vmul.f32 %v1389_v3, %v1388_v47  ;;  %v1397_v2 = vpop.permute.xlu1 %1396 }
 0x1c8   : > { %v1395_v8 = vpop.permute.xlu0 %1394 }
 0x1c9   : > { %v1392_v7 = vadd.f32 %v1390_v19, %v1375_v41  ;;  %v1393_v30 = vadd.f32 %v1391_v21, %v1376_v25  ;;  %v1398_v42 = vsel %vm1383_vm9, %v1395_v8, %v1397_v2  ;;  %v1399_v63 = vsel %vm1383_vm9, %v1397_v2, %v1395_v8  ;;  %1846 = vrot.lane.b32.xlu1 %v2665_v38, %s2481_s27  ;;  %vm5166_vm9 = vmmov %vm5163_vm10 }
 0x1ca   : > { %v1401_v51 = vsel %vm5150_vm3, %v1398_v42, 0.0  ;;  %v1402_v50 = vsel %vm4222_vm4, %v1399_v63, 0.0  ;;  %1844 = vrot.lane.b32.xlu0 %v2667_v40, %s2481_s27  ;;  %vm4257_vm10 = vmand %vm5166_vm9, %vm5152_vm12  ;;  %vm1445_vm4 = vcmp.lt.s32.totalorder %v2825_v15, 110  ;;  %vm5003_vm12 = vcmp.lt.s32.totalorder %v4084_v26, 224 }
 0x1cb   : > { %v1404_v0 = vmul.f32 %v1403_v4, %v1401_v51  ;;  %v1405_v18 = vmul.f32 %v1403_v4, %v1402_v50  ;;  %v1413_v46 = vpop.permute.xlu1 %1412  ;;  %vm1507_vm3 = vcmp.lt.s32.totalorder %v2825_v15, 99 }
 0x1cc   : > { %v1411_v62 = vpop.permute.xlu0 %1410 }
 0x1cd   : > { %v1406_v29 = vadd.f32 %v1404_v0, %v1392_v7  ;;  %v1407_v5 = vadd.f32 %v1405_v18, %v1393_v30  ;;  %v1415_v1 = vsel %vm1414_vm5, %v1411_v62, %v1413_v46  ;;  %v1416_v61 = vsel %vm1414_vm5, %v1413_v46, %v1411_v62  ;;  %1861 = vrot.lane.b32.xlu1 %v2676_v45, %s2481_s27 }
 0x1ce   : > { %v1418_v27 = vsel %vm5151_vm13, %v1415_v1, 0.0  ;;  %v1419_v14 = vsel %vm4257_vm10, %v1416_v61, 0.0  ;;  %1859 = vrot.lane.b32.xlu0 %v2672_v43, %s2481_s27  ;;  %v1451_v62 = vstv %s2148_s24  ;;  %s4496_s27 = sld [smem:[#allocation7 + $0x57]]  ;;  %s4553_s24 = sld [smem:[#allocation7 + $0x28]] }
 0x1cf   : > { %v1421_v55 = vmul.f32 %v1420_v53, %v1418_v27  ;;  %v1422_v48 = vmul.f32 %v1420_v53, %v1419_v14  ;;  %v1428_v23 = vpop.permute.xlu1 %1427  ;;  %v1465_v14 = vstv %s4311_s26  ;;  %s4577_s26 = sld [smem:[#allocation7 + $0x59]] }
 0x1d0   : > { %v1426_v28 = vpop.permute.xlu0 %1425 }
 0x1d1   : > { %v1423_v33 = vadd.f32 %v1421_v55, %v1406_v29  ;;  %v1424_v35 = vadd.f32 %v1422_v48, %v1407_v5  ;;  %v1429_v31 = vsel %vm1414_vm5, %v1426_v28, %v1428_v23  ;;  %v1430_v58 = vsel %vm1414_vm5, %v1428_v23, %v1426_v28  ;;  %1877 = vrot.lane.b32.xlu1 %v2665_v38, %s2482_s30  ;;  %vm5169_vm5 = vmmov %vm5166_vm9 }
 0x1d2   : > { %v1432_v54 = vsel %vm5151_vm13, %v1429_v31, 0.0  ;;  %v1433_v16 = vsel %vm4257_vm10, %v1430_v58, 0.0  ;;  %1875 = vrot.lane.b32.xlu0 %v2667_v40, %s2482_s30  ;;  %vm4324_vm9 = vmand %vm5169_vm5, %vm5140_vm8  ;;  %vm5172_vm13 = vnez %v5059_v6  ;;  %vm5175_vm8 = vcmp.lt.s32.totalorder %v2825_v15, 109 }
 0x1d3   : > { %v1435_v11 = vmul.f32 %v1434_v37, %v1432_v54  ;;  %v1436_v3 = vmul.f32 %v1434_v37, %v1433_v16  ;;  %v1444_v39 = vpop.permute.xlu1 %1443  ;;  %vm4348_vm10 = vmand %vm5169_vm5, %vm3258_vm1  ;;  %v1482_v58 = vstv %s4316_s11  ;;  %s4610_s11 = sld [smem:[#allocation7 + $0x29]] }
 0x1d4   : > { %v1442_v41 = vpop.permute.xlu0 %1441 }
 0x1d5   : > { %v4283_v25 = vadd.f32 %v1435_v11, %v1423_v33  ;;  %v4285_v13 = vadd.f32 %v1436_v3, %v1424_v35  ;;  %1892 = vrot.lane.b32.xlu1 %v2676_v45, %s2482_s30  ;;  %v1446_v46 = vsel %vm1445_vm4, %v1442_v41, %v1444_v39  ;;  %v1447_v12 = vsel %vm1445_vm4, %v1444_v39, %v1442_v41 }
 0x1d6   : > { %1890 = vrot.lane.b32.xlu0 %v2672_v43, %s2482_s30  ;;  %v1449_v29 = vsel %vm5172_vm13, %v1446_v46, 0.0  ;;  %v1450_v5 = vsel %vm4324_vm9, %v1447_v12, 0.0  ;;  %v1496_v46 = vstv %s4331_s12  ;;  %s4513_s30 = sld [smem:[#allocation7 + $0x27]]  ;;  %s4623_s12 = sld [smem:[#allocation7 + $0x5a]] }
 0x1d7   : > { %v1459_v49 = vpop.permute.xlu1 %1458  ;;  %v1452_v28 = vmul.f32 %v1451_v62, %v1449_v29  ;;  %v1453_v33 = vmul.f32 %v1451_v62, %v1450_v5 }
 0x1d8   : > { %v1457_v32 = vpop.permute.xlu0 %1456 }
 0x1d9   : > { %1908 = vrot.lane.b32.xlu1 %v2665_v38, %s2483_s16  ;;  %v1460_v1 = vsel %vm1445_vm4, %v1457_v32, %v1459_v49  ;;  %v1461_v61 = vsel %vm1445_vm4, %v1459_v49, %v1457_v32  ;;  %vm5176_vm4 = vmmov %vm5175_vm8 }
 0x1da   : > { %1906 = vrot.lane.b32.xlu0 %v2667_v40, %s2483_s16  ;;  %v1463_v35 = vsel %vm5172_vm13, %v1460_v1, 0.0  ;;  %v1464_v31 = vsel %vm4324_vm9, %v1461_v61, 0.0  ;;  %vm5178_vm5 = vmmov %vm5176_vm4  ;;  %vm5179_vm9 = vnez %v5018_v22  ;;  %v1513_v61 = vstv %s4340_s9  ;;  %s4636_s9 = sld [smem:[#allocation7 + $0x2a]] }
 0x1db   : > { %v1475_v47 = vpop.permute.xlu1 %1474  ;;  %v1466_v49 = vmul.f32 %v1465_v14, %v1463_v35  ;;  %v1467_v32 = vmul.f32 %v1465_v14, %v1464_v31 }
 0x1dc   : > { %v1473_v19 = vpop.permute.xlu0 %1472 }
 0x1dd   : > { %1923 = vrot.lane.b32.xlu1 %v2676_v45, %s2483_s16  ;;  %v1477_v23 = vsel %vm5175_vm8, %v1473_v19, %v1475_v47  ;;  %v1478_v37 = vsel %vm5176_vm4, %v1475_v47, %v1473_v19  ;;  %vm5177_vm8 = vmmov %vm5176_vm4  ;;  %v1544_v47 = vstv %s4389_s14  ;;  %s4675_s14 = sld [smem:[#allocation7 + $0x2b]] }
 0x1de   : > { %1921 = vrot.lane.b32.xlu0 %v2672_v43, %s2483_s16  ;;  %v1480_v16 = vsel %vm5143_vm6, %v1477_v23, 0.0  ;;  %v1481_v11 = vsel %vm4348_vm10, %v1478_v37, 0.0  ;;  %vm4381_vm4 = vmand %vm5003_vm12, %vm5179_vm9  ;;  %s4535_s16 = sld [smem:[#allocation7 + $0x58]] }
 0x1df   : > { %v1490_v21 = vpop.permute.xlu1 %1489  ;;  %v1483_v12 = vmul.f32 %v1482_v58, %v1480_v16  ;;  %v1484_v62 = vmul.f32 %v1482_v58, %v1481_v11 }
 0x1e0   : > { %v1488_v2 = vpop.permute.xlu0 %1487 }
 0x1e1   : > { %v1491_v3 = vsel %vm5177_vm8, %v1488_v2, %v1490_v21  ;;  %v1492_v39 = vsel %vm5178_vm5, %v1490_v21, %v1488_v2  ;;  %v1454_v21 = vadd.f32 %v1452_v28, %v4283_v25  ;;  %v1455_v2 = vadd.f32 %v1453_v33, %v4285_v13  ;;  %vm4476_vm5 = vmand %vm5003_vm12, %vm3004_vm0 }
 0x1e2   : > { %v1494_v29 = vsel %vm5143_vm6, %v1491_v3, 0.0  ;;  %v1495_v5 = vsel %vm4348_vm10, %v1492_v39, 0.0  ;;  %vm1538_vm8 = vcmp.lt.s32.totalorder %v2825_v15, 98  ;;  %v1527_v33 = vstv %s4362_s13  ;;  %s4661_s13 = sld [smem:[#allocation7 + $0x5b]] }
 0x1e3   : > { %v1506_v4 = vpop.permute.xlu1 %1505  ;;  %v1469_v14 = vadd.f32 %v1467_v32, %v1455_v2  ;;  %v1497_v37 = vmul.f32 %v1496_v46, %v1494_v29  ;;  %v1498_v28 = vmul.f32 %v1496_v46, %v1495_v5  ;;  %vm1569_vm10 = vcmp.lt.s32.totalorder %v2825_v15, 97 }
 0x1e4   : > { %v1504_v8 = vpop.permute.xlu0 %1503 }
 0x1e5   : > { %v1508_v19 = vsel %vm1507_vm3, %v1504_v8, %v1506_v4  ;;  %v1509_v18 = vsel %vm1507_vm3, %v1506_v4, %v1504_v8  ;;  %v1468_v8 = vadd.f32 %v1466_v49, %v1454_v21  ;;  %v1486_v31 = vadd.f32 %v1484_v62, %v1469_v14 }
 0x1e6   : > { %v1511_v4 = vsel %vm2840_vm7, %v1508_v19, 0.0  ;;  %v1512_v25 = vsel %vm4381_vm4, %v1509_v18, 0.0 }
 0x1e7   : > { %v4293_v7 = vpop.permute.xlu1 %1520  ;;  %v1485_v35 = vadd.f32 %v1483_v12, %v1468_v8  ;;  %v1514_v58 = vmul.f32 %v1513_v61, %v1511_v4  ;;  %v1515_v16 = vmul.f32 %v1513_v61, %v1512_v25  ;;  %v1500_v18 = vadd.f32 %v1498_v28, %v1486_v31 }
 0x1e8   : > { %v4295_v30 = vpop.permute.xlu0 %1518  ;;  %v1558_v61 = vstv %s4406_s15  ;;  %v1575_v31 = vstv %s4419_s21  ;;  %v1620_v25 = vstv %s4496_s27  ;;  %s4702_s15 = sld [smem:[#allocation7 + $0x5c]]  ;;  %s4763_s27 = sld [smem:[#allocation7 + $0x5e]] }
 0x1e9   : > { %v1522_v48 = vsel %vm1507_vm3, %v4295_v30, %v4293_v7  ;;  %v1523_v23 = vsel %vm1507_vm3, %v4293_v7, %v4295_v30  ;;  %vm4431_vm3 = vmand %vm5003_vm12, %vm2919_vm2  ;;  %v1499_v19 = vadd.f32 %v1497_v37, %v1485_v35  ;;  %v1517_v5 = vadd.f32 %v1515_v16, %v1500_v18  ;;  %s4715_s21 = sld [smem:[#allocation7 + $0x2c]] }
 0x1ea   : > { %v1525_v3 = vsel %vm2840_vm7, %v1522_v48, 0.0  ;;  %v1526_v39 = vsel %vm4381_vm4, %v1523_v23, 0.0  ;;  %vm1600_vm4 = vcmp.lt.s32.totalorder %v2825_v15, 96 }
 0x1eb   : > { %v4297_v42 = vpop.permute.xlu1 %1536  ;;  %v1529_v2 = vmul.f32 %v1527_v33, %v1526_v39  ;;  %v1516_v29 = vadd.f32 %v1514_v58, %v1499_v19 }
 0x1ec   : > { %v4299_v63 = vpop.permute.xlu0 %1534 }
 0x1ed   : > { %v1539_v30 = vsel %vm1538_vm8, %v4299_v63, %v4297_v42  ;;  %v1540_v49 = vsel %vm1538_vm8, %v4297_v42, %v4299_v63  ;;  %v1528_v63 = vmul.f32 %v1527_v33, %v1525_v3  ;;  %v1531_v35 = vadd.f32 %v1529_v2, %v1517_v5 }
 0x1ee   : > { %v1542_v46 = vsel %vm2899_vm14, %v1539_v30, 0.0  ;;  %v1543_v12 = vsel %vm4431_vm3, %v1540_v49, 0.0 }
 0x1ef   : > { %v4301_v38 = vpop.permute.xlu1 %1551  ;;  %v1545_v48 = vmul.f32 %v1544_v47, %v1542_v46  ;;  %v1546_v23 = vmul.f32 %v1544_v47, %v1543_v12  ;;  %v1530_v33 = vadd.f32 %v1528_v63, %v1516_v29  ;;  %v1606_v63 = vstv %s4461_s7  ;;  %s4745_s7 = sld [smem:[#allocation7 + $0x2d]] }
 0x1f0   : > { %v4303_v40 = vpop.permute.xlu0 %1549 }
 0x1f1   : > { %v1553_v21 = vsel %vm1538_vm8, %v4303_v40, %v4301_v38  ;;  %v1554_v42 = vsel %vm1538_vm8, %v4301_v38, %v4303_v40  ;;  %v1547_v30 = vadd.f32 %v1545_v48, %v1530_v33  ;;  %v1548_v49 = vadd.f32 %v1546_v23, %v1531_v35  ;;  %vm4519_vm8 = vmand %vm5003_vm12, %vm3075_vm11 }
 0x1f2   : > { %v1556_v38 = vsel %vm2899_vm14, %v1553_v21, 0.0  ;;  %v1557_v40 = vsel %vm4431_vm3, %v1554_v42, 0.0  ;;  %vm5189_vm3 = vnez %v5057_v34 }
 0x1f3   : > { %v4305_v51 = vpop.permute.xlu1 %1567  ;;  %v1560_v58 = vmul.f32 %v1558_v61, %v1557_v40  ;;  %vm4559_vm11 = vmand %vm5003_vm12, %vm5189_vm3  ;;  %vm5196_vm12 = vnez %v5063_v56  ;;  %vm5197_vm3 = vcmp.lt.s32.totalorder %v4084_v26, 224 }
 0x1f4   : > { %v4307_v45 = vpop.permute.xlu0 %1565 }
 0x1f5   : > { %v1570_v8 = vsel %vm1569_vm10, %v4307_v45, %v4305_v51  ;;  %v1571_v14 = vsel %vm1569_vm10, %v4305_v51, %v4307_v45  ;;  %v1559_v45 = vmul.f32 %v1558_v61, %v1556_v38  ;;  %v1562_v12 = vadd.f32 %v1560_v58, %v1548_v49 }
 0x1f6   : > { %v1573_v16 = vsel %vm2994_vm15, %v1570_v8, 0.0  ;;  %v1574_v3 = vsel %vm4476_vm5, %v1571_v14, 0.0 }
 0x1f7   : > { %v4309_v43 = vpop.permute.xlu1 %1582  ;;  %v1576_v21 = vmul.f32 %v1575_v31, %v1573_v16  ;;  %v1577_v42 = vmul.f32 %v1575_v31, %v1574_v3  ;;  %v1561_v46 = vadd.f32 %v1559_v45, %v1547_v30  ;;  %v1637_v16 = vstv %s4513_s30  ;;  %s4786_s30 = sld [smem:[#allocation7 + $0x2e]] }
 0x1f8   : > { %v4313_v50 = vpop.permute.xlu0 %1580 }
 0x1f9   : > { %v1584_v37 = vsel %vm1569_vm10, %v4313_v50, %v4309_v43  ;;  %v1585_v28 = vsel %vm1569_vm10, %v4309_v43, %v4313_v50  ;;  %v1589_v43 = vstv %s4447_s23  ;;  %vm5188_vm10 = vnez %v5093_v60  ;;  %s4733_s23 = sld [smem:[#allocation7 + $0x5d]] }
 0x1fa   : > { %v1587_v50 = vsel %vm2994_vm15, %v1584_v37, 0.0  ;;  %v1588_v7 = vsel %vm4476_vm5, %v1585_v28, 0.0  ;;  %v1578_v8 = vadd.f32 %v1576_v21, %v1561_v46  ;;  %v1579_v14 = vadd.f32 %v1577_v42, %v1562_v12 }
 0x1fb   : > { %v4318_v0 = vpop.permute.xlu1 %1598  ;;  %v1590_v29 = vmul.f32 %v1589_v43, %v1587_v50  ;;  %v1591_v5 = vmul.f32 %v1589_v43, %v1588_v7 }
 0x1fc   : > { %v4328_v53 = vpop.permute.xlu0 %1596 }
 0x1fd   : > { %v1601_v19 = vsel %vm1600_vm4, %v4328_v53, %v4318_v0  ;;  %v1602_v18 = vsel %vm1600_vm4, %v4318_v0, %v4328_v53  ;;  %v1592_v45 = vadd.f32 %v1590_v29, %v1578_v8  ;;  %v1593_v58 = vadd.f32 %v1591_v5, %v1579_v14 }
 0x1fe   : > { %v1604_v38 = vsel %vm5188_vm10, %v1601_v19, 0.0  ;;  %v1605_v0 = vsel %vm4519_vm8, %v1602_v18, 0.0  ;;  %v1651_v18 = vstv %s4535_s16  ;;  %v1668_v29 = vstv %s4553_s24  ;;  %s4799_s16 = sld [smem:[#allocation7 + $0x5f]] }
 0x1ff   : > { %v4337_v27 = vpop.permute.xlu1 %1613  ;;  %v1607_v37 = vmul.f32 %v1606_v63, %v1604_v38  ;;  %v1608_v28 = vmul.f32 %v1606_v63, %v1605_v0  ;;  %v1682_v14 = vstv %s4577_s26  ;;  %s4806_s24 = sld [smem:[#allocation7 + $0x2f]]  ;;  %s4826_s26 = sld [smem:[#allocation7 + $0x60]] }
 0x200   : > { %v4342_v55 = vpop.permute.xlu0 %1611 }
 0x201   : > { %v1615_v53 = vsel %vm1600_vm4, %v4342_v55, %v4337_v27  ;;  %v1616_v40 = vsel %vm1600_vm4, %v4337_v27, %v4342_v55  ;;  %vm5192_vm4 = vcmp.lt.s32.totalorder %v2825_v15, 95  ;;  %v1609_v47 = vadd.f32 %v1607_v37, %v1592_v45 }
 0x202   : > { %vm5193_vm5 = vmmov %vm5192_vm4  ;;  %v1618_v33 = vsel %vm5188_vm10, %v1615_v53, 0.0  ;;  %v1619_v35 = vsel %vm4519_vm8, %v1616_v40, 0.0  ;;  %v1610_v19 = vadd.f32 %v1608_v28, %v1593_v58  ;;  %v1699_v58 = vstv %s4610_s11  ;;  %s4837_s11 = sld [smem:[#allocation7 + $0x30]] }
 0x203   : > { %v4365_v54 = vpop.permute.xlu1 %1629  ;;  %vm5195_vm8 = vmmov %vm5192_vm4  ;;  %v1621_v50 = vmul.f32 %v1620_v25, %v1618_v33  ;;  %v1622_v7 = vmul.f32 %v1620_v25, %v1619_v35 }
 0x204   : > { %v4375_v41 = vpop.permute.xlu0 %1627  ;;  %vm4598_vm10 = vmand %vm5197_vm3, %vm5196_vm12  ;;  %vm1693_vm3 = vcmp.lt.s32.totalorder %v2825_v15, 93 }
 0x205   : > { %v1632_v27 = vsel %vm5192_vm4, %v4375_v41, %v4365_v54  ;;  %v1633_v55 = vsel %vm5193_vm5, %v4365_v54, %v4375_v41  ;;  %vm5194_vm5 = vnez %v5100_v17  ;;  %v1623_v5 = vadd.f32 %v1621_v50, %v1609_v47 }
 0x206   : > { %v1635_v54 = vsel %vm5194_vm5, %v1632_v27, 0.0  ;;  %v1636_v41 = vsel %vm4559_vm11, %v1633_v55, 0.0  ;;  %v1624_v38 = vadd.f32 %v1622_v7, %v1610_v19  ;;  %v1713_v47 = vstv %s4623_s12  ;;  %s4860_s12 = sld [smem:[#allocation7 + $0x61]] }
 0x207   : > { %v4398_v1 = vpop.permute.xlu1 %1644  ;;  %v1638_v42 = vmul.f32 %v1637_v16, %v1635_v54  ;;  %v1639_v63 = vmul.f32 %v1637_v16, %v1636_v41 }
 0x208   : > { %v4408_v13 = vpop.permute.xlu0 %1642 }
 0x209   : > { %v1646_v3 = vsel %vm5192_vm4, %v4408_v13, %v4398_v1  ;;  %v1647_v43 = vsel %vm5195_vm8, %v4398_v1, %v4408_v13  ;;  %vm5200_vm4 = vcmp.lt.s32.totalorder %v2825_v15, 94  ;;  %v1640_v27 = vadd.f32 %v1638_v42, %v1623_v5 }
 0x20a   : > { %vm5201_vm8 = vmmov %vm5200_vm4  ;;  %v1649_v46 = vsel %vm5194_vm5, %v1646_v3, 0.0  ;;  %v1650_v12 = vsel %vm4559_vm11, %v1647_v43, 0.0  ;;  %v1641_v55 = vadd.f32 %v1639_v63, %v1624_v38  ;;  %v1730_v38 = vstv %s4636_s9  ;;  %s2188_s9 = sshll.u32 %s2535_s3, 10 }
 0x20b   : > { %v4421_v11 = vpop.permute.xlu1 %1660  ;;  %vm5202_vm11 = vmmov %vm5200_vm4  ;;  %v1652_v25 = vmul.f32 %v1651_v18, %v1649_v46  ;;  %v1653_v8 = vmul.f32 %v1651_v18, %v1650_v12 }
 0x20c   : > { %v4443_v32 = vpop.permute.xlu0 %1658 }
 0x20d   : > { %v1663_v49 = vsel %vm5200_vm4, %v4443_v32, %v4421_v11  ;;  %v1664_v1 = vsel %vm5201_vm8, %v4421_v11, %v4443_v32  ;;  %vm5203_vm8 = vcmp.lt.s32.totalorder %v4084_v26, 224  ;;  %v1654_v54 = vadd.f32 %v1652_v25, %v1640_v27 }
 0x20e   : > { %v1666_v11 = vsel %vm5172_vm13, %v1663_v49, 0.0  ;;  %v1667_v32 = vsel %vm4598_vm10, %v1664_v1, 0.0  ;;  %v1655_v41 = vadd.f32 %v1653_v8, %v1641_v55  ;;  %v1744_v25 = vstv %s4661_s13  ;;  %s230_s13 = scalar_lea.vmem [#allocation8], %s2080_s6  ;;  %s1974_s6 = scalar_lea.sflag [#allocation5], %s2641_s5 }
 0x20f   : > { %v4463_v62 = vpop.permute.xlu1 %1675  ;;  %v1669_v37 = vmul.f32 %v1668_v29, %v1666_v11  ;;  %v1670_v28 = vmul.f32 %v1668_v29, %v1667_v32 }
 0x210   : > { %v4466_v4 = vpop.permute.xlu0 %1673 }
 0x211   : > { %v1677_v0 = vsel %vm5200_vm4, %v4466_v4, %v4463_v62  ;;  %v1678_v53 = vsel %vm5202_vm11, %v4463_v62, %v4466_v4  ;;  %vm4646_vm4 = vmand %vm5203_vm8, %vm3258_vm1  ;;  %vm1724_vm11 = vcmp.lt.s32.totalorder %v2825_v15, 83  ;;  %v1671_v49 = vadd.f32 %v1669_v37, %v1654_v54 }
 0x212   : > { %v1680_v33 = vsel %vm5172_vm13, %v1677_v0, 0.0  ;;  %v1681_v35 = vsel %vm4598_vm10, %v1678_v53, 0.0  ;;  %vm343_vm10 = vcmp.lt.s32.totalorder %v4084_v26, 208  ;;  %v1672_v1 = vadd.f32 %v1670_v28, %v1655_v41 }
 0x213   : > { %v4500_v51 = vpop.permute.xlu1 %1691  ;;  %v1683_v43 = vmul.f32 %v1682_v14, %v1680_v33  ;;  %v1684_v50 = vmul.f32 %v1682_v14, %v1681_v35  ;;  %vm4721_vm8 = vmand %vm343_vm10, %vm2919_vm2  ;;  %v1761_v62 = vstv %s4675_s14  ;;  %vm1817_vm2 = vcmp.lt.s32.totalorder %v2825_v15, 80  ;;  %s1987_s14 = sshll.u32 %s230_s13, 4  ;;  %s4916_s14 = int_to_ptr.vmem [resolvable:$true] %s1987_s14 }
 0x214   : > { %v4506_v39 = vpop.permute.xlu0 %1689 }
 0x215   : > { %v1694_v4 = vsel %vm1693_vm3, %v4506_v39, %v4500_v51  ;;  %v1695_v45 = vsel %vm1693_vm3, %v4500_v51, %v4506_v39  ;;  %v1685_v32 = vadd.f32 %v1683_v43, %v1671_v49  ;;  %v1686_v5 = vadd.f32 %v1684_v50, %v1672_v1 }
 0x216   : > { %v1697_v7 = vsel %vm5143_vm6, %v1694_v4, 0.0  ;;  %v1698_v30 = vsel %vm4646_vm4, %v1695_v45, 0.0 }
 0x217   : > { %v4533_v2 = vpop.permute.xlu1 %1706  ;;  %v1700_v46 = vmul.f32 %v1699_v58, %v1697_v7  ;;  %v1701_v22 = vmul.f32 %v1699_v58, %v1698_v30 }
 0x218   : > { %v4537_v61 = vpop.permute.xlu0 %1704 }
 0x219   : > { %v1708_v3 = vsel %vm1693_vm3, %v4537_v61, %v4533_v2  ;;  %v1709_v51 = vsel %vm1693_vm3, %v4533_v2, %v4537_v61  ;;  %vm4686_vm3 = vmand %vm343_vm10, %vm5179_vm9  ;;  %vm1755_vm9 = vcmp.lt.s32.totalorder %v2825_v15, 82  ;;  %v1702_v14 = vadd.f32 %v1700_v46, %v1685_v32 }
 0x21a   : > { %v1711_v19 = vsel %vm5143_vm6, %v1708_v3, 0.0  ;;  %v1712_v2 = vsel %vm4646_vm4, %v1709_v51, 0.0  ;;  %v1703_v27 = vadd.f32 %v1701_v22, %v1686_v5  ;;  %v1775_v51 = vstv %s4702_s15  ;;  %vm4751_vm4 = vmand %vm343_vm10, %vm3004_vm0 }
 0x21b   : > { %v4571_v23 = vpop.permute.xlu1 %1722  ;;  %v1714_v0 = vmul.f32 %v1713_v47, %v1711_v19  ;;  %v1792_v61 = vstv %s4715_s21  ;;  %s4910_s21 = scalar_lea.hbm %s4965_s4, %s2188_s9 }
 0x21c   : > { %v4579_v31 = vpop.permute.xlu0 %1720 }
 0x21d   : > { %v1725_v18 = vsel %vm1724_vm11, %v4579_v31, %v4571_v23  ;;  %v1726_v42 = vsel %vm1724_vm11, %v4571_v23, %v4579_v31  ;;  %v1715_v23 = vmul.f32 %v1713_v47, %v1712_v2  ;;  %v1716_v52 = vadd.f32 %v1714_v0, %v1702_v14 }
 0x21e   : > { %v1728_v31 = vsel %vm2840_vm7, %v1725_v18, 0.0  ;;  %v1729_v53 = vsel %vm4686_vm3, %v1726_v42, 0.0 }
 0x21f   : > { %v1738_v13 = vpop.permute.xlu1 %1737  ;;  %v1731_v33 = vmul.f32 %v1730_v38, %v1728_v31  ;;  %v1732_v35 = vmul.f32 %v1730_v38, %v1729_v53  ;;  %v1717_v4 = vadd.f32 %v1715_v23, %v1703_v27  ;;  %v1806_v23 = vstv %s4733_s23  ;;  %s2359_s23 = scalar_lea.vmem %s4916_s14, 1024 }
 0x220   : > { %v1736_v21 = vpop.permute.xlu0 %1735  ;;  %p2360_p5 = scmp.ne.s32.totalorder %s4916_s14, %s2359_s23 }
 0x221   : > { %v1739_v12 = vsel %vm1724_vm11, %v1736_v21, %v1738_v13  ;;  %v1740_v29 = vsel %vm1724_vm11, %v1738_v13, %v1736_v21  ;;  %v1733_v50 = vadd.f32 %v1731_v33, %v1716_v52  ;;  %v1734_v7 = vadd.f32 %v1732_v35, %v1717_v4 }
 0x222   : > { %v1742_v13 = vsel %vm2840_vm7, %v1739_v12, 0.0  ;;  %v1743_v21 = vsel %vm4686_vm3, %v1740_v29, 0.0  ;;  %vm1786_vm7 = vcmp.lt.s32.totalorder %v2825_v15, 81  ;;  %vm5215_vm11 = vnez %v5093_v60  ;;  %p2361_p8 = pnand %p2360_p5, %p5223_p12 }
 0x223   : > { %v4633_v40 = vpop.permute.xlu1 %1753  ;;  %v1745_v45 = vmul.f32 %v1744_v25, %v1742_v13  ;;  %v1746_v58 = vmul.f32 %v1744_v25, %v1743_v21  ;;  %v1823_v21 = vstv %s4745_s7  ;;  %vm1848_vm3 = vcmp.lt.s32.totalorder %v2825_v15, 79 }
 0x224   : > { %v1752_v48 = vpop.permute.xlu0 %1751  ;;  %v1837_v35 = vstv %s4763_s27  ;;  %p2362_p9 = pneg %p2361_p8 }
 0x225   : > { %v1756_v20 = vsel %vm1755_vm9, %v1752_v48, %v4633_v40  ;;  %v1757_v37 = vsel %vm1755_vm9, %v4633_v40, %v1752_v48  ;;  %v1747_v19 = vadd.f32 %v1745_v45, %v1733_v50  ;;  %v1748_v2 = vadd.f32 %v1746_v58, %v1734_v7 }
 0x226   : > { %v1759_v54 = vsel %vm2899_vm14, %v1756_v20, 0.0  ;;  %v1760_v41 = vsel %vm4721_vm8, %v1757_v37, 0.0 }
 0x227   : > { %v1769_v16 = vpop.permute.xlu1 %1768  ;;  %v1762_v49 = vmul.f32 %v1761_v62, %v1759_v54  ;;  %v1763_v1 = vmul.f32 %v1761_v62, %v1760_v41 }
 0x228   : > { %v1767_v39 = vpop.permute.xlu0 %1766 }
 0x229   : > { %v1770_v40 = vsel %vm1755_vm9, %v1767_v39, %v1769_v16  ;;  %v1771_v48 = vsel %vm1755_vm9, %v1769_v16, %v1767_v39  ;;  %v1764_v38 = vadd.f32 %v1762_v49, %v1747_v19  ;;  %v1765_v0 = vadd.f32 %v1763_v1, %v1748_v2 }
 0x22a   : > { %v1773_v47 = vsel %vm2899_vm14, %v1770_v40, 0.0  ;;  %v1774_v59 = vsel %vm4721_vm8, %v1771_v48, 0.0  ;;  %vm5212_vm14 = vnez %v5045_v24  ;;  %vm1879_vm8 = vcmp.lt.s32.totalorder %v2825_v15, 78 }
 0x22b   : > { %v1785_v63 = vpop.permute.xlu1 %1784  ;;  %v1776_v12 = vmul.f32 %v1775_v51, %v1773_v47  ;;  %v1777_v29 = vmul.f32 %v1775_v51, %v1774_v59  ;;  %vm4778_vm0 = vmand %vm343_vm10, %vm5212_vm14  ;;  %v1854_v51 = vstv %s4786_s30  ;;  %v1868_v19 = vstv %s4799_s16 }
 0x22c   : > { %v1783_v11 = vpop.permute.xlu0 %1782 }
 0x22d   : > { %v1787_v16 = vsel %vm1786_vm7, %v1783_v11, %v1785_v63  ;;  %v1788_v39 = vsel %vm1786_vm7, %v1785_v63, %v1783_v11  ;;  %v1778_v55 = vadd.f32 %v1776_v12, %v1764_v38  ;;  %v1779_v44 = vadd.f32 %v1777_v29, %v1765_v0 }
 0x22e   : > { %v1790_v42 = vsel %vm2994_vm15, %v1787_v16, 0.0  ;;  %v1791_v63 = vsel %vm4751_vm4, %v1788_v39, 0.0  ;;  %v1885_v29 = vstv %s4806_s24 }
 0x22f   : > { %v1800_v8 = vpop.permute.xlu1 %1799  ;;  %v1793_v31 = vmul.f32 %v1792_v61, %v1790_v42  ;;  %v1794_v53 = vmul.f32 %v1792_v61, %v1791_v63 }
 0x230   : > { %v1798_v28 = vpop.permute.xlu0 %1797 }
 0x231   : > { %v1801_v36 = vsel %vm1786_vm7, %v1798_v28, %v1800_v8  ;;  %v1802_v46 = vsel %vm1786_vm7, %v1800_v8, %v1798_v28  ;;  %v1795_v62 = vadd.f32 %v1793_v31, %v1778_v55  ;;  %v1796_v52 = vadd.f32 %v1794_v53, %v1779_v44  ;;  %vm4847_vm7 = vmand %vm343_vm10, %vm5196_vm12 }
 0x232   : > { %v1804_v24 = vsel %vm2994_vm15, %v1801_v36, 0.0  ;;  %v1805_v25 = vsel %vm4751_vm4, %v1802_v46, 0.0  ;;  %vm5216_vm15 = vnez %v5057_v34  ;;  %vm1910_vm12 = vcmp.lt.s32.totalorder %v2825_v15, 77 }
 0x233   : > { %v1816_v3 = vpop.permute.xlu1 %1815  ;;  %v1807_v28 = vmul.f32 %v1806_v23, %v1804_v24  ;;  %v1808_v33 = vmul.f32 %v1806_v23, %v1805_v25  ;;  %vm4816_vm9 = vmand %vm343_vm10, %vm5216_vm15  ;;  %v1899_v23 = vstv %s4826_s26 }
 0x234   : > { %v1814_v43 = vpop.permute.xlu0 %1813 }
 0x235   : > { %v1818_v32 = vsel %vm1817_vm2, %v1814_v43, %v1816_v3  ;;  %v1819_v5 = vsel %vm1817_vm2, %v1816_v3, %v1814_v43  ;;  %v1809_v34 = vadd.f32 %v1807_v28, %v1795_v62  ;;  %v1810_v43 = vadd.f32 %v1808_v33, %v1796_v52 }
 0x236   : > { %v1821_v8 = vsel %vm5215_vm11, %v1818_v32, 0.0  ;;  %v1822_v14 = vsel %vm4778_vm0, %v1819_v5, 0.0 }
 0x237   : > { %v1831_v18 = vpop.permute.xlu1 %1830  ;;  %v1824_v4 = vmul.f32 %v1823_v21, %v1821_v8  ;;  %v1825_v45 = vmul.f32 %v1823_v21, %v1822_v14 }
 0x238   : > { %v1829_v22 = vpop.permute.xlu0 %1828 }
 0x239   : > { %v1832_v20 = vsel %vm1817_vm2, %v1829_v22, %v1831_v18  ;;  %v1833_v37 = vsel %vm1817_vm2, %v1831_v18, %v1829_v22  ;;  %v1826_v47 = vadd.f32 %v1824_v4, %v1809_v34  ;;  %v1827_v59 = vadd.f32 %v1825_v45, %v1810_v43 }
 0x23a   : > { %v1835_v54 = vsel %vm5215_vm11, %v1832_v20, 0.0  ;;  %v1836_v41 = vsel %vm4778_vm0, %v1833_v37, 0.0  ;;  %v1916_v37 = vstv %s4837_s11 }
 0x23b   : > { %v1847_v13 = vpop.permute.xlu1 %1846  ;;  %v1838_v30 = vmul.f32 %v1837_v35, %v1835_v54  ;;  %v1839_v16 = vmul.f32 %v1837_v35, %v1836_v41  ;;  %v1930_v41 = vstv %s4860_s12 }
 0x23c   : > { %v1845_v27 = vpop.permute.xlu0 %1844 }
 0x23d   : > { %v1849_v48 = vsel %vm1848_vm3, %v1845_v27, %v1847_v13  ;;  %v1850_v3 = vsel %vm1848_vm3, %v1847_v13, %v1845_v27  ;;  %v1840_v22 = vadd.f32 %v1838_v30, %v1826_v47  ;;  %v1841_v12 = vadd.f32 %v1839_v16, %v1827_v59 }
 0x23e   : > { %v1852_v39 = vsel %vm5194_vm5, %v1849_v48, 0.0  ;;  %v1853_v49 = vsel %vm4816_vm9, %v1850_v3, 0.0 }
 0x23f   : > { %v1862_v58 = vpop.permute.xlu1 %1861  ;;  %v1855_v17 = vmul.f32 %v1854_v51, %v1852_v39  ;;  %v1856_v46 = vmul.f32 %v1854_v51, %v1853_v49 }
 0x240   : > { %v1860_v60 = vpop.permute.xlu0 %1859 }
 0x241   : > { %v1863_v50 = vsel %vm1848_vm3, %v1860_v60, %v1862_v58  ;;  %v1864_v7 = vsel %vm1848_vm3, %v1862_v58, %v1860_v60  ;;  %v1857_v24 = vadd.f32 %v1855_v17, %v1840_v22  ;;  %v1858_v25 = vadd.f32 %v1856_v46, %v1841_v12  ;;  %v2307_v17 = vld [vmem:[%s2647_s8 + $0x10] sm:$0xff]  ;;  %v2308_v22 = vld [vmem:[%s2647_s8 + $0x20] sm:$0xff] }
 0x242   : > { %v1866_v61 = vsel %vm5194_vm5, %v1863_v50, 0.0  ;;  %v1867_v18 = vsel %vm4816_vm9, %v1864_v7, 0.0  ;;  %vm4876_vm5 = vmand %vm343_vm10, %vm3258_vm1 }
 0x243   : > { %v1878_v1 = vpop.permute.xlu1 %1877  ;;  %v1869_v56 = vmul.f32 %v1868_v19, %v1866_v61  ;;  %v1870_v32 = vmul.f32 %v1868_v19, %v1867_v18 }
 0x244   : > { %v1876_v2 = vpop.permute.xlu0 %1875 }
 0x245   : > { %v1880_v63 = vsel %vm1879_vm8, %v1876_v2, %v1878_v1  ;;  %v1881_v36 = vsel %vm1879_vm8, %v1878_v1, %v1876_v2  ;;  %v1871_v44 = vadd.f32 %v1869_v56, %v1857_v24  ;;  %v1872_v20 = vadd.f32 %v1870_v32, %v1858_v25  ;;  %v2310_v56 = vld [vmem:[%s2647_s8 + $0x8] sm:$0xff] }
 0x246   : > { %v1883_v5 = vsel %vm5172_vm13, %v1880_v63, 0.0  ;;  %v1884_v38 = vsel %vm4847_vm7, %v1881_v36, 0.0  ;;  %v2306_v63 = vld [vmem:[%s2647_s8] sm:$0xff] }
 0x247   : > { %v1893_v11 = vpop.permute.xlu1 %1892  ;;  %v1886_v8 = vmul.f32 %v1885_v29, %v1883_v5  ;;  %v1887_v14 = vmul.f32 %v1885_v29, %v1884_v38  ;;  %v2309_v29 = vld [vmem:[%s2647_s8 + $0x30] sm:$0xff]  ;;  %v2311_v5 = vld [vmem:[%s2647_s8 + $0x18] sm:$0xff] }
 0x248   : > { %v1891_v0 = vpop.permute.xlu0 %1890 }
 0x249   : > { %v1894_v31 = vsel %vm1879_vm8, %v1891_v0, %v1893_v11  ;;  %v1895_v53 = vsel %vm1879_vm8, %v1893_v11, %v1891_v0  ;;  %v1888_v52 = vadd.f32 %v1886_v8, %v1871_v44  ;;  %v1889_v4 = vadd.f32 %v1887_v14, %v1872_v20 }
 0x24a   : > { %v1897_v13 = vsel %vm5172_vm13, %v1894_v31, 0.0  ;;  %v1898_v21 = vsel %vm4847_vm7, %v1895_v53, 0.0 }
 0x24b   : > { %v1909_v27 = vpop.permute.xlu1 %1908  ;;  %v1900_v28 = vmul.f32 %v1899_v23, %v1897_v13  ;;  %v1901_v33 = vmul.f32 %v1899_v23, %v1898_v21  ;;  %v2313_v23 = vld [vmem:[%s2647_s8 + $0x38] sm:$0xff] }
 0x24c   : > { %v1907_v6 = vpop.permute.xlu0 %1906 }
 0x24d   : > { %v1911_v35 = vsel %vm1910_vm12, %v1907_v6, %v1909_v27  ;;  %v1912_v62 = vsel %vm1910_vm12, %v1909_v27, %v1907_v6  ;;  %v1902_v48 = vadd.f32 %v1900_v28, %v1888_v52  ;;  %v1903_v3 = vadd.f32 %v1901_v33, %v1889_v4 }
 0x24e   : > { %v1914_v57 = vsel %vm5143_vm6, %v1911_v35, 0.0  ;;  %v1915_v26 = vsel %vm4876_vm5, %v1912_v62, 0.0 }
 0x24f   : > { %v1917_v45 = vmul.f32 %v1916_v37, %v1914_v57  ;;  %v1918_v58 = vmul.f32 %v1916_v37, %v1915_v26  ;;  %v1924_v54 = vpop.permute.xlu1 %1923 }
 0x250   : > { %v1922_v40 = vpop.permute.xlu0 %1921 }
 0x251   : > { %v1925_v60 = vsel %vm1910_vm12, %v1922_v40, %v1924_v54  ;;  %v1926_v51 = vsel %vm1910_vm12, %v1924_v54, %v1922_v40  ;;  %v1919_v50 = vadd.f32 %v1917_v45, %v1902_v48  ;;  %v1920_v7 = vadd.f32 %v1918_v58, %v1903_v3 }
 0x252   : > { %v1928_v34 = vsel %vm5143_vm6, %v1925_v60, 0.0  ;;  %v1929_v43 = vsel %vm4876_vm5, %v1926_v51, 0.0 }
 0x253   : > { %v1931_v30 = vmul.f32 %v1930_v41, %v1928_v34  ;;  %v1932_v16 = vmul.f32 %v1930_v41, %v1929_v43 }
 0x255   : > { %v1933_v39 = vadd.f32 %v1931_v30, %v1919_v50  ;;  %v1934_v49 = vadd.f32 %v1932_v16, %v1920_v7 }
 0x257   : > { %v2180_v1 = vmul.f32 -1.442695, %v1933_v39  ;;  %v2181_v47 = vmul.f32 -1.442695, %v1934_v49 }
 0x259   : > { %2298 = vpow2.f32 %v2180_v1 }
 0x25a   : > { %2300 = vpow2.f32 %v2181_v47 }
 0x263   : > { %v2299_v15 = vpop.eup %2298 }
 0x264   : > { %v2301_v10 = vpop.eup %2300  ;;  %v1941_v59 = vadd.f32 1.0, %v2299_v15 }
 0x265   : > { %v1942_v19 = vadd.f32 1.0, %v2301_v10 }
 0x266   : > { %2302 = vrcp.f32 %v1941_v59 }
 0x267   : > { %2304 = vrcp.f32 %v1942_v19 }
 0x270   : > { %v2303_v2 = vpop.eup %2302 }
 0x271   : > { %v2305_v61 = vpop.eup %2304  ;;  %v1950_v18 = vrot.slane %v2303_v2, %v2812_v9 }
 0x272   : > { %v1954_v42 = vrot.slane %v2305_v61, %v2812_v9  ;;  %v2312_v9 = vld [vmem:[%s2647_s8 + $0x28] sm:$0xff]  ;;  %s2484_s8 = smov [#allocation8]  }
 0x273   : > { %v1955_v36 = vmul.f32 %v2306_v63, %v1950_v18  ;;  %v1957_v46 = vmul.f32 %v2307_v17, %v1950_v18  ;;  %v1959_v12 = vmul.f32 %v2308_v22, %v1950_v18  ;;  %v1961_v11 = vmul.f32 %v2309_v29, %v1950_v18  ;;  %s2363_s7 = sshll.u32 %s2484_s8, 4  ;;  %s2364_s7 = int_to_ptr.vmem [resolvable:$false] %s2363_s7 }
 0x274   : > { %v1956_v32 = vmul.f32 %v2310_v56, %v1954_v42  ;;  %v1958_v38 = vmul.f32 %v2311_v5, %v1954_v42  ;;  %v1960_v0 = vmul.f32 %v2312_v9, %v1954_v42  ;;  %v1962_v31 = vmul.f32 %v2313_v23, %v1954_v42  ;;  %s2365_s27 = scalar_lea.vmem %s2364_s7, 2048  ;;  %p2366_p10 = scmp.lt.s32.totalorder %s4916_s14, %s2364_s7 }
 0x275   : > { %1965 = vst [vmem:[%s230_s13] sm:$0xff] %v1955_v36  ;;  %1967 = vst [vmem:[%s230_s13 + $0x10] sm:$0xff] %v1957_v46  ;;  %p2367_p1 = scmp.lt.s32.totalorder %s2365_s27, %s2359_s23 }
 0x276   : > { %1969 = vst [vmem:[%s230_s13 + $0x20] sm:$0xff] %v1959_v12  ;;  %1971 = vst [vmem:[%s230_s13 + $0x30] sm:$0xff] %v1961_v11 }
 0x277   : > { %1966 = vst [vmem:[%s230_s13 + $0x8] sm:$0xff] %v1956_v32  ;;  %1968 = vst [vmem:[%s230_s13 + $0x18] sm:$0xff] %v1958_v38  ;;  %p2368_p4 = por %p2367_p1, %p2366_p10 }
 0x278   : > { %1970 = vst [vmem:[%s230_s13 + $0x28] sm:$0xff] %v1960_v0  ;;  %1972 = vst [vmem:[%s230_s13 + $0x38] sm:$0xff] %v1962_v31 }
 0x279   : > { %p2369_p11 = pnand %p2368_p4, %p2362_p9 }
 0x27b   : > { %2372 = shalt.err (!%p2369_p11)
}
 0x27c   : > { %s2373_s30 = scalar_lea.hbm %s4910_s21, 1024  ;;  %s2377_s26 = scalar_lea.hbm %s4965_s4, 2048 }
 0x27d   : > { %p2374_p0 = scmp.ne.s32.totalorder %s4910_s21, %s2373_s30  ;;  %p2378_p6 = scmp.lt.u32.totalorder %s4910_s21, %s4965_s4 }
 0x27e   : > { %p2379_p3 = scmp.lt.u32.totalorder %s2377_s26, %s2373_s30  ;;  %p2381_p5 = scmp.lt.u32.totalorder %s2373_s30, %s4910_s21 }
 0x27f   : > { %p2375_p2 = pnand %p2374_p0, %p5223_p12 }
 0x280   : > { %p2380_p13 = por %p2379_p3, %p2378_p6 }
 0x281   : > { %p2376_p7 = pneg %p2375_p2 }
 0x282   : > { %p2382_p8 = por %p2381_p5, %p2380_p13 }
 0x284   : > { %p2383_p9 = pnand %p2382_p8, %p2376_p7 }
 0x286   : > { %2386 = shalt.err (!%p2383_p9)
}
 0x287   : > { %s2485_s9 = smov 256  }
 0x288   : > { %2195 = dma.vmem_to_hbm [thread:$0]  (%p5223_p12), %s4916_s14, 1024, %s4910_s21, %s1974_s6, %s2485_s9, %s2485_s9, %s2452_s10  }
 0x289 PF: > { %s2002_s13 = sand.u32 1, %s2417_s17   ;;  %p5224_p10 = scmp.ne.s32.totalorder %s5008_s29, 0 }
 0x28a   : > { %p5225_p1 = scmp.ge.s32.totalorder %s2429_s20, 2  ;;  %s2003_s3 = scalar_lea.sflag [#allocation5], %s2002_s13 }
 0x28c   : > { %p2206_p4 = pnand %p5225_p1, %p5224_p10 }
 0x28e   : > { %2412 = dma.done.wait (!%p2206_p4), %s2003_s3, 1024  }
 0x28f   : > { %2414 = vsyncadd (!%p2206_p4), %s2003_s3, 4294966272  ;;  %p19_p11 = scmp.ge.s32.totalorder %s2539_s22, 4   ;;  %s5226_s17 = smov %s2421_s18 }
 0x290   : > { %s5227_s18 = smov %s2425_s19  ;;  %s5228_s19 = smov %s2551_s25 }
 0x291   : > { %s5229_s20 = smov %s2539_s22  ;;  %21 = sbr.rel (!%p19_p11) target bundleno = 8 (0x8), region = 88 }
 0x298   :  { %2008 = vsyncpa [#allocation4], 1 }
 0x299   :  { %2010 = vsyncpa [#allocation4 + $0x1], 1 }
 0x29a   :  { %2011 = vsyncpa [#allocation5], 1 }
 0x29b   :  { %2013 = vsyncpa [#allocation5 + $0x1], 1 }
 0x29c   :  { %2014 = vsyncpa [#allocation6], 1 }
 0x29d   :  { %2016 = vsyncpa [#allocation6 + $0x1], 1 }

</bundles_post_ra>
